<compile_context>
chip_gen: v7x
topology: tpu7x:2x2x1
jax: 0.10.0
libtpu: 0.0.40
codegen_flags: <defaults>
</compile_context>

<pallas_src>
import functools

import jax
import jax.numpy as jnp
from jax import lax
from jax.experimental import pallas as pl
from jax.experimental.pallas import tpu as pltpu


# ----------------------------------------------------------------------------
# helpers
# ----------------------------------------------------------------------------
def _largest_divisor(n, target, multiple=1):
    """Largest d <= target with n % d == 0 and (d % multiple == 0 or d == n)."""
    for d in range(min(target, n), 0, -1):
        if n % d == 0 and (d % multiple == 0 or d == n):
            return d
    return n


def _vmem_budget(nbytes):
    """Explicit VMEM budget with headroom, clamped to a portable range."""
    return int(min(max(nbytes + (4 << 20), 16 << 20), 48 << 20))


# ----------------------------------------------------------------------------
# Kernel 1: tiled input projection  gx = x @ w + b
#   x: (M, D) bf16   w: (D, 8H) bf16   b: (1, 8H) f32   ->   gx: (M, 8H) bf16
# Tiled over M ("parallel") so the HBM DMA pipelines under the MXU.
# ----------------------------------------------------------------------------
def _proj_kernel(x_ref, w_ref, b_ref, o_ref):
    acc = jnp.dot(x_ref[...], w_ref[...], preferred_element_type=jnp.float32)
    o_ref[...] = (acc + b_ref[...]).astype(o_ref.dtype)


def input_projection(x, w, b, *, m_tile=512, out_dtype=jnp.bfloat16):
    M, D = x.shape
    Dw, N = w.shape
    assert Dw == D and b.shape == (1, N)
    tm = _largest_divisor(M, m_tile, multiple=16)
    grid = (M // tm,)

    est = (2 * tm * D * x.dtype.itemsize                 # double-buffered x tile
           + 2 * tm * N * jnp.dtype(out_dtype).itemsize  # double-buffered out tile
           + 2 * D * N * w.dtype.itemsize                # weights
           + 2 * N * 4)                                  # bias
    return pl.pallas_call(
        _proj_kernel,
        out_shape=jax.ShapeDtypeStruct((M, N), out_dtype),
        grid_spec=pltpu.PrefetchScalarGridSpec(
            num_scalar_prefetch=0,
            grid=grid,
            in_specs=[
                pl.BlockSpec((tm, D), lambda i: (i, 0)),
                pl.BlockSpec((D, N), lambda i: (0, 0)),
                pl.BlockSpec((1, N), lambda i: (0, 0)),
            ],
            out_specs=pl.BlockSpec((tm, N), lambda i: (i, 0)),
        ),
        compiler_params=pltpu.CompilerParams(
            dimension_semantics=("parallel",),
            vmem_limit_bytes=_vmem_budget(est),
        ),
    )(x, w, b)


# ----------------------------------------------------------------------------
# Kernel 2: fused bidirectional LSTM recurrence, time-chunked.
# grid=(num_chunks,) "arbitrary".  At chunk step ci:
#   forward  consumes gx chunk ci          (lanes [0:4H]),   local time 0..Tc-1
#   backward consumes gx chunk nc-1-ci     (lanes [4H:8H]),  local time Tc-1..0
# Output is a single (T, B, 2H) slab, resident across chunks; forward writes
# lanes [0:H], backward writes lanes [H:2H].  h/c state lives in VMEM scratch
# (f32) and carries across chunks.
# ----------------------------------------------------------------------------
def _bidir_lstm_kernel(gx_f_ref, gx_b_ref, whh_ref, out_ref,
                       hf_s, cf_s, hb_s, cb_s):
    ci = pl.program_id(0)
    nc = pl.num_programs(0)
    Tc = gx_f_ref.shape[0]
    H = whh_ref.shape[1]

    @pl.when(ci == 0)
    def _():
        hf_s[...] = jnp.zeros_like(hf_s)
        cf_s[...] = jnp.zeros_like(cf_s)
        hb_s[...] = jnp.zeros_like(hb_s)
        cb_s[...] = jnp.zeros_like(cb_s)

    t_base_f = ci * Tc              # global start of the forward chunk
    t_base_b = (nc - 1 - ci) * Tc   # global start of the backward chunk

    def lstm_gates(gates, c_prev):
        # full-tile transcendentals (lane-dense EUP work), slice afterwards
        sig = jax.nn.sigmoid(gates)
        tnh = jnp.tanh(gates)
        i_g = sig[:, 0 * H:1 * H]
        f_g = sig[:, 1 * H:2 * H]
        o_g = sig[:, 3 * H:4 * H]
        g_g = tnh[:, 2 * H:3 * H]
        c_new = f_g * c_prev + i_g * g_g
        h_new = o_g * jnp.tanh(c_new)
        return h_new, c_new

    def step(t, carry):
        # ---- forward direction (local time increases with t) ----
        g_f = gx_f_ref[t].astype(jnp.float32) + jnp.dot(
            hf_s[...], whh_ref[0], preferred_element_type=jnp.float32)
        h_f, c_f = lstm_gates(g_f, cf_s[...])
        hf_s[...] = h_f
        cf_s[...] = c_f
        out_ref[t_base_f + t, :, 0:H] = h_f.astype(out_ref.dtype)

        # ---- backward direction (walks its chunk in reverse) ----
        tb = Tc - 1 - t
        g_b = gx_b_ref[tb].astype(jnp.float32) + jnp.dot(
            hb_s[...], whh_ref[1], preferred_element_type=jnp.float32)
        h_b, c_b = lstm_gates(g_b, cb_s[...])
        hb_s[...] = h_b
        cb_s[...] = c_b
        out_ref[t_base_b + tb, :, H:2 * H] = h_b.astype(out_ref.dtype)
        return carry

    lax.fori_loop(0, Tc, step, 0, unroll=min(8, Tc))


def bidir_recurrence(gx_tbg, whh, *, time_chunk=128, out_dtype=jnp.float32):
    T, B, G = gx_tbg.shape
    H = whh.shape[1]
    assert G == 8 * H and whh.shape == (2, H, 4 * H)
    # TODO(synk): pad weights/state for H not a multiple of 32 (BiDAF H=100).
    assert (4 * H) % 128 == 0, "H must be a multiple of 32 (lane alignment)"
    assert B % 8 == 0, "batch must be a multiple of 8 (sublane alignment)"

    Tc = _largest_divisor(T, time_chunk, multiple=1)
    nc = T // Tc

    est = (T * B * 2 * H * jnp.dtype(out_dtype).itemsize          # resident out
           + 2 * 2 * Tc * B * 4 * H * gx_tbg.dtype.itemsize       # gx chunks x2buf
           + 2 * 2 * H * 4 * H * 4                                # whh x2buf
           + 4 * B * H * 4)                                       # h/c scratch
    return pl.pallas_call(
        _bidir_lstm_kernel,
        out_shape=jax.ShapeDtypeStruct((T, B, 2 * H), out_dtype),
        grid_spec=pltpu.PrefetchScalarGridSpec(
            num_scalar_prefetch=0,
            grid=(nc,),
            in_specs=[
                # forward gate chunk: lanes [0:4H], chunk ci
                pl.BlockSpec((Tc, B, 4 * H), lambda c: (c, 0, 0)),
                # backward gate chunk: lanes [4H:8H], chunk nc-1-ci
                pl.BlockSpec((Tc, B, 4 * H), lambda c: (nc - 1 - c, 0, 1)),
                # recurrent weights (both directions), resident
                pl.BlockSpec((2, H, 4 * H), lambda c: (0, 0, 0)),
            ],
            out_specs=pl.BlockSpec((T, B, 2 * H), lambda c: (0, 0, 0)),
            scratch_shapes=[
                pltpu.VMEM((B, H), jnp.float32),   # h forward
                pltpu.VMEM((B, H), jnp.float32),   # c forward
                pltpu.VMEM((B, H), jnp.float32),   # h backward
                pltpu.VMEM((B, H), jnp.float32),   # c backward
            ],
        ),
        compiler_params=pltpu.CompilerParams(
            dimension_semantics=("arbitrary",),    # chunks carry state serially
            vmem_limit_bytes=_vmem_budget(est),
        ),
    )(gx_tbg, gx_tbg, whh)


# ----------------------------------------------------------------------------
# Full ModelingLayer forward.
# ----------------------------------------------------------------------------
def modeling_layer_forward(inputs_btd, layer_params, *, m_tile=512,
                           time_chunk=128):
    """inputs_btd: (B, T, 8H) batch_first -> (B, T, 2H)."""
    B, T, D0 = inputs_btd.shape
    H = layer_params[0]["whh"].shape[1]
    n_layers = len(layer_params)

    # time-major, flattened for the projection; bf16 MXU operands
    x = jnp.transpose(inputs_btd, (1, 0, 2)).reshape(T * B, D0)
    x = x.astype(jnp.bfloat16)

    out = None
    for li, p in enumerate(layer_params):
        gx = input_projection(x, p["w_ih"], p["b"], m_tile=m_tile)  # (T*B, 8H) bf16
        gx = gx.reshape(T, B, 8 * H)
        out_dtype = jnp.float32 if li == n_layers - 1 else jnp.bfloat16
        out = bidir_recurrence(gx, p["whh"], time_chunk=time_chunk,
                               out_dtype=out_dtype)                 # (T, B, 2H)
        x = out.reshape(T * B, 2 * H)                               # next layer input
    return jnp.transpose(out, (1, 0, 2))                            # (B, T, 2H)


# ----------------------------------------------------------------------------
# Pure-JAX reference (lax.scan over raw PyTorch-layout weights, all f32).
# ----------------------------------------------------------------------------
def _ref_dir(x_tbd, w_ih, w_hh, b_ih, b_hh, reverse):
    H = w_hh.shape[1]
    B = x_tbd.shape[1]
    xs = x_tbd[::-1] if reverse else x_tbd

    def step(carry, x_t):
        h, c = carry
        gates = x_t @ w_ih.T + h @ w_hh.T + b_ih + b_hh
        i_g = jax.nn.sigmoid(gates[:, 0 * H:1 * H])
        f_g = jax.nn.sigmoid(gates[:, 1 * H:2 * H])
        g_g = jnp.tanh(gates[:, 2 * H:3 * H])
        o_g = jax.nn.sigmoid(gates[:, 3 * H:4 * H])
        c_new = f_g * c + i_g * g_g
        h_new = o_g * jnp.tanh(c_new)
        return (h_new, c_new), h_new

    init = (jnp.zeros((B, H), jnp.float32), jnp.zeros((B, H), jnp.float32))
    _, hs = lax.scan(step, init, xs)
    return hs[::-1] if reverse else hs


def _ref_forward(inputs_btd, raw_params):
    x = jnp.transpose(inputs_btd, (1, 0, 2))
    for p in raw_params:
        f = _ref_dir(x, p["w_ih_f"], p["w_hh_f"], p["b_ih_f"], p["b_hh_f"], False)
        b = _ref_dir(x, p["w_ih_b"], p["w_hh_b"], p["b_ih_b"], p["b_hh_b"], True)
        x = jnp.concatenate([f, b], axis=-1)
    return jnp.transpose(x, (1, 0, 2))


# ----------------------------------------------------------------------------
# Parameters: raw PyTorch-shaped weights + prepped kernel layout.
# ----------------------------------------------------------------------------
def make_params(key, hidden_size):
    H = hidden_size
    scale = 1.0 / jnp.sqrt(H)
    raw = []
    in_dims = [8 * H, 2 * H]   # layer0 input = 8H, layer1 input = 2H (bidir)
    for d_in in in_dims:
        p = {}
        for tag in ("f", "b"):
            key, k1, k2, k3, k4 = jax.random.split(key, 5)
            p[f"w_ih_{tag}"] = jax.random.uniform(
                k1, (4 * H, d_in), jnp.float32, -scale, scale)
            p[f"w_hh_{tag}"] = jax.random.uniform(
                k2, (4 * H, H), jnp.float32, -scale, scale)
            p[f"b_ih_{tag}"] = jax.random.uniform(
                k3, (4 * H,), jnp.float32, -scale, scale)
            p[f"b_hh_{tag}"] = jax.random.uniform(
                k4, (4 * H,), jnp.float32, -scale, scale)
        raw.append(p)
    return raw


def prep_params(raw, hidden_size):
    """Convert PyTorch-layout weights to the kernel layout."""
    H = hidden_size
    prepped = []
    for p in raw:
        # input-gate weights: (D, 8H), lanes [0:4H] fwd / [4H:8H] bwd, bf16
        w_ih = jnp.concatenate([p["w_ih_f"].T, p["w_ih_b"].T], axis=1)
        # fused bias (b_ih + b_hh), f32
        b = jnp.concatenate([p["b_ih_f"] + p["b_hh_f"],
                             p["b_ih_b"] + p["b_hh_b"]]).reshape(1, 8 * H)
        # recurrent weights, pre-transposed, f32
        whh = jnp.stack([p["w_hh_f"].T, p["w_hh_b"].T], axis=0)   # (2, H, 4H)
        prepped.append({"w_ih": w_ih.astype(jnp.bfloat16),
                        "b": b.astype(jnp.float32),
                        "whh": whh.astype(jnp.float32)})
    return prepped


if __name__ == "__main__":
    hidden_size = 32     # input feature dim = 8*32 = 256, output dim = 64
    B, T = 8, 8

    key = jax.random.PRNGKey(0)
    key, k_in = jax.random.split(key)
    inputs = jax.random.normal(k_in, (B, T, 8 * hidden_size), jnp.float32)
    raw_params = make_params(key, hidden_size)
    params = prep_params(raw_params, hidden_size)

    # Small m_tile / time_chunk so the tiled projection and the chunked,
    # state-carrying recurrence paths are actually exercised at these shapes.
    fwd = jax.jit(functools.partial(modeling_layer_forward,
                                    m_tile=16, time_chunk=4))
    out = jax.block_until_ready(fwd(inputs, params))

    ref = jax.block_until_ready(_ref_forward(inputs, raw_params))
    assert out.shape == (B, T, 2 * hidden_size), out.shape
    max_err = float(jnp.max(jnp.abs(out - ref)))
    # bf16 projection operands + bf16 gate cache vs. pure-f32 reference ->
    # looser tolerance (expected precision change, not a bug).
    assert jnp.allclose(out, ref, rtol=5e-2, atol=5e-2), max_err
    print("KERNEL_OK")
</pallas_src>

<mosaic_0001>
module attributes {stable_mosaic.version = 11 : i64} {
  func.func @_proj_kernel(%arg0: i32, %arg1: memref<16x256xbf16, #tpu.memory_space<vmem>>, %arg2: memref<256x256xbf16, #tpu.memory_space<vmem>>, %arg3: memref<1x256xf32, #tpu.memory_space<vmem>>, %arg4: memref<16x256xbf16, #tpu.memory_space<vmem>>) attributes {dimension_semantics = [#tpu.dimension_semantics<parallel>], iteration_bounds = array<i64: 4>, scalar_prefetch = 0 : i64, scratch_operands = 0 : i64, tpu.core_type = #tpu.core_type<tc>, window_params = [{transform_indices = @transform_0, window_bounds = array<i64: 16, 256>}, {pipeline_mode = #tpu.pipeline_mode<synchronous>, transform_indices = @transform_1, window_bounds = array<i64: 256, 256>}, {pipeline_mode = #tpu.pipeline_mode<synchronous>, transform_indices = @transform_2, window_bounds = array<i64: 1, 256>}, {transform_indices = @transform_3, window_bounds = array<i64: 16, 256>}]} {
    %c0 = arith.constant 0 : index
    %c0_0 = arith.constant 0 : index
    %0 = vector.load %arg1[%c0, %c0_0] : memref<16x256xbf16, #tpu.memory_space<vmem>>, vector<16x256xbf16>
    %c0_1 = arith.constant 0 : index
    %c0_2 = arith.constant 0 : index
    %1 = vector.load %arg2[%c0_1, %c0_2] : memref<256x256xbf16, #tpu.memory_space<vmem>>, vector<256x256xbf16>
    %cst = arith.constant dense<0.000000e+00> : vector<16x256xf32>
    %2 = tpu.matmul %0, %1, %cst {dimension_numbers = #tpu.dot_dimension_numbers<[1], [0], [0], [1], [0, 0, 1, 1], [], []>} : vector<16x256xbf16>, vector<256x256xbf16>, vector<16x256xf32> -> vector<16x256xf32>
    %c0_3 = arith.constant 0 : index
    %c0_4 = arith.constant 0 : index
    %3 = vector.load %arg3[%c0_3, %c0_4] : memref<1x256xf32, #tpu.memory_space<vmem>>, vector<1x256xf32>
    %4 = vector.broadcast %3 : vector<1x256xf32> to vector<16x256xf32>
    %5 = arith.addf %2, %4 : vector<16x256xf32>
    %6 = arith.truncf %5 : vector<16x256xf32> to vector<16x256xbf16>
    %c0_5 = arith.constant 0 : index
    %c0_6 = arith.constant 0 : index
    %7 = vector.load %arg4[%c0_5, %c0_6] : memref<16x256xbf16, #tpu.memory_space<vmem>>, vector<16x256xbf16>
    tpu.vector_store %arg4[%c0_5, %c0_6], %6 {strides = array<i32>} : memref<16x256xbf16, #tpu.memory_space<vmem>>, vector<16x256xbf16>,
    return
  }
  func.func @transform_0(%arg0: i32) -> (i32, i32) {
    %c0_i32 = arith.constant 0 : i32
    %c0_i32_0 = arith.constant 0 : i32
    return %arg0, %c0_i32 : i32, i32
  }
  func.func @transform_1(%arg0: i32) -> (i32, i32) {
    %c0_i32 = arith.constant 0 : i32
    %c0_i32_0 = arith.constant 0 : i32
    %c0_i32_1 = arith.constant 0 : i32
    return %c0_i32, %c0_i32_0 : i32, i32
  }
  func.func @transform_2(%arg0: i32) -> (i32, i32) {
    %c0_i32 = arith.constant 0 : i32
    %c0_i32_0 = arith.constant 0 : i32
    %c0_i32_1 = arith.constant 0 : i32
    return %c0_i32, %c0_i32_0 : i32, i32
  }
  func.func @transform_3(%arg0: i32) -> (i32, i32) {
    %c0_i32 = arith.constant 0 : i32
    %c0_i32_0 = arith.constant 0 : i32
    return %arg0, %c0_i32 : i32, i32
  }
}

module attributes {stable_mosaic.version = 11 : i64} {
  func.func @_bidir_lstm_kernel(%arg0: i32, %arg1: memref<4x8x128xbf16, #tpu.memory_space<vmem>>, %arg2: memref<4x8x128xbf16, #tpu.memory_space<vmem>>, %arg3: memref<2x32x128xf32, #tpu.memory_space<vmem>>, %arg4: memref<8x8x64xbf16, #tpu.memory_space<vmem>>, %arg5: memref<8x32xf32, #tpu.memory_space<vmem>>, %arg6: memref<8x32xf32, #tpu.memory_space<vmem>>, %arg7: memref<8x32xf32, #tpu.memory_space<vmem>>, %arg8: memref<8x32xf32, #tpu.memory_space<vmem>>) attributes {dimension_semantics = [#tpu.dimension_semantics<arbitrary>], iteration_bounds = array<i64: 2>, scalar_prefetch = 0 : i64, scratch_operands = 4 : i64, tpu.core_type = #tpu.core_type<tc>, window_params = [{transform_indices = @transform_0, window_bounds = array<i64: 4, 8, 128>}, {transform_indices = @transform_1, window_bounds = array<i64: 4, 8, 128>}, {pipeline_mode = #tpu.pipeline_mode<synchronous>, transform_indices = @transform_2, window_bounds = array<i64: 2, 32, 128>}, {pipeline_mode = #tpu.pipeline_mode<synchronous>, transform_indices = @transform_3, window_bounds = array<i64: 8, 8, 64>}]} {
    %c0_i32 = arith.constant 0 : i32
    %0 = arith.cmpi eq, %arg0, %c0_i32 : i32
    %1 = arith.extui %0 : i1 to i32
    %c0_i32_0 = arith.constant 0 : i32
    %2 = arith.cmpi ne, %1, %c0_i32_0 : i32
    scf.if %2 {
      %cst_141 = arith.constant 0.000000e+00 : f32
      %274 = vector.broadcast %cst_141 : f32 to vector<8x32xf32>
      %c0_142 = arith.constant 0 : index
      %c0_143 = arith.constant 0 : index
      %275 = vector.load %arg5[%c0_142, %c0_143] : memref<8x32xf32, #tpu.memory_space<vmem>>, vector<8x32xf32>
      tpu.vector_store %arg5[%c0_142, %c0_143], %274 {strides = array<i32>} : memref<8x32xf32, #tpu.memory_space<vmem>>, vector<8x32xf32>,
      %cst_144 = arith.constant 0.000000e+00 : f32
      %276 = vector.broadcast %cst_144 : f32 to vector<8x32xf32>
      %c0_145 = arith.constant 0 : index
      %c0_146 = arith.constant 0 : index
      %277 = vector.load %arg6[%c0_145, %c0_146] : memref<8x32xf32, #tpu.memory_space<vmem>>, vector<8x32xf32>
      tpu.vector_store %arg6[%c0_145, %c0_146], %276 {strides = array<i32>} : memref<8x32xf32, #tpu.memory_space<vmem>>, vector<8x32xf32>,
      %cst_147 = arith.constant 0.000000e+00 : f32
      %278 = vector.broadcast %cst_147 : f32 to vector<8x32xf32>
      %c0_148 = arith.constant 0 : index
      %c0_149 = arith.constant 0 : index
      %279 = vector.load %arg7[%c0_148, %c0_149] : memref<8x32xf32, #tpu.memory_space<vmem>>, vector<8x32xf32>
      tpu.vector_store %arg7[%c0_148, %c0_149], %278 {strides = array<i32>} : memref<8x32xf32, #tpu.memory_space<vmem>>, vector<8x32xf32>,
      %cst_150 = arith.constant 0.000000e+00 : f32
      %280 = vector.broadcast %cst_150 : f32 to vector<8x32xf32>
      %c0_151 = arith.constant 0 : index
      %c0_152 = arith.constant 0 : index
      %281 = vector.load %arg8[%c0_151, %c0_152] : memref<8x32xf32, #tpu.memory_space<vmem>>, vector<8x32xf32>
      tpu.vector_store %arg8[%c0_151, %c0_152], %280 {strides = array<i32>} : memref<8x32xf32, #tpu.memory_space<vmem>>, vector<8x32xf32>,
    } else {
    }
    %c4_i32 = arith.constant 4 : i32
    %3 = arith.muli %arg0, %c4_i32 : i32
    %c1_i32 = arith.constant 1 : i32
    %4 = arith.subi %c1_i32, %arg0 : i32
    %c4_i32_1 = arith.constant 4 : i32
    %5 = arith.muli %4, %c4_i32_1 : i32
    %c0_i32_2 = arith.constant 0 : i32
    %6 = arith.index_cast %c0_i32_2 : i32 to index
    %c0 = arith.constant 0 : index
    %c0_3 = arith.constant 0 : index
    %7 = vector.load %arg1[%6, %c0, %c0_3] : memref<4x8x128xbf16, #tpu.memory_space<vmem>>, vector<1x8x128xbf16>
    %8 = vector.shape_cast %7 : vector<1x8x128xbf16> to vector<8x128xbf16>
    %9 = arith.extf %8 : vector<8x128xbf16> to vector<8x128xf32>
    %c0_4 = arith.constant 0 : index
    %c0_5 = arith.constant 0 : index
    %10 = vector.load %arg5[%c0_4, %c0_5] : memref<8x32xf32, #tpu.memory_space<vmem>>, vector<8x32xf32>
    %c0_6 = arith.constant 0 : index
    %c0_7 = arith.constant 0 : index
    %c0_8 = arith.constant 0 : index
    %11 = vector.load %arg3[%c0_6, %c0_7, %c0_8] : memref<2x32x128xf32, #tpu.memory_space<vmem>>, vector<1x32x128xf32>
    %12 = vector.shape_cast %11 : vector<1x32x128xf32> to vector<32x128xf32>
    %cst = arith.constant dense<0.000000e+00> : vector<8x128xf32>
    %13 = tpu.matmul %10, %12, %cst {dimension_numbers = #tpu.dot_dimension_numbers<[1], [0], [0], [1], [0, 0, 1, 1], [], []>} : vector<8x32xf32>, vector<32x128xf32>, vector<8x128xf32> -> vector<8x128xf32>
    %14 = arith.addf %9, %13 : vector<8x128xf32>
    %c0_9 = arith.constant 0 : index
    %c0_10 = arith.constant 0 : index
    %15 = vector.load %arg6[%c0_9, %c0_10] : memref<8x32xf32, #tpu.memory_space<vmem>>, vector<8x32xf32>
    %16 = arith.negf %14 : vector<8x128xf32>
    %17 = math.exp %16 : vector<8x128xf32>
    %cst_11 = arith.constant 1.000000e+00 : f32
    %18 = vector.broadcast %cst_11 : f32 to vector<8x128xf32>
    %19 = arith.addf %18, %17 : vector<8x128xf32>
    %20 = arith.divf %18, %19 : vector<8x128xf32>
    %21 = math.tanh %14 : vector<8x128xf32>
    %22 = vector.extract_strided_slice %20 {offsets = [0, 0], sizes = [8, 32], strides = [1, 1]} : vector<8x128xf32> to vector<8x32xf32>
    %23 = vector.extract_strided_slice %20 {offsets = [0, 32], sizes = [8, 32], strides = [1, 1]} : vector<8x128xf32> to vector<8x32xf32>
    %24 = vector.extract_strided_slice %20 {offsets = [0, 96], sizes = [8, 32], strides = [1, 1]} : vector<8x128xf32> to vector<8x32xf32>
    %25 = vector.extract_strided_slice %21 {offsets = [0, 64], sizes = [8, 32], strides = [1, 1]} : vector<8x128xf32> to vector<8x32xf32>
    %26 = arith.mulf %23, %15 : vector<8x32xf32>
    %27 = arith.mulf %22, %25 : vector<8x32xf32>
    %28 = arith.addf %26, %27 : vector<8x32xf32>
    %29 = math.tanh %28 : vector<8x32xf32>
    %30 = arith.mulf %24, %29 : vector<8x32xf32>
    %c0_12 = arith.constant 0 : index
    %c0_13 = arith.constant 0 : index
    %31 = vector.load %arg5[%c0_12, %c0_13] : memref<8x32xf32, #tpu.memory_space<vmem>>, vector<8x32xf32>
    tpu.vector_store %arg5[%c0_12, %c0_13], %30 {strides = array<i32>} : memref<8x32xf32, #tpu.memory_space<vmem>>, vector<8x32xf32>,
    %c0_14 = arith.constant 0 : index
    %c0_15 = arith.constant 0 : index
    %32 = vector.load %arg6[%c0_14, %c0_15] : memref<8x32xf32, #tpu.memory_space<vmem>>, vector<8x32xf32>
    tpu.vector_store %arg6[%c0_14, %c0_15], %28 {strides = array<i32>} : memref<8x32xf32, #tpu.memory_space<vmem>>, vector<8x32xf32>,
    %33 = arith.truncf %30 : vector<8x32xf32> to vector<8x32xbf16>
    %34 = arith.addi %3, %c0_i32_2 : i32
    %35 = arith.index_cast %34 : i32 to index
    %c0_16 = arith.constant 0 : index
    %c0_17 = arith.constant 0 : index
    %36 = vector.load %arg4[%35, %c0_16, %c0_17] : memref<8x8x64xbf16, #tpu.memory_space<vmem>>, vector<1x8x32xbf16>
    %37 = vector.shape_cast %36 : vector<1x8x32xbf16> to vector<8x32xbf16>
    %38 = vector.shape_cast %33 : vector<8x32xbf16> to vector<1x8x32xbf16>
    tpu.vector_store %arg4[%35, %c0_16, %c0_17], %38 {strides = array<i32>} : memref<8x8x64xbf16, #tpu.memory_space<vmem>>, vector<1x8x32xbf16>,
    %c3_i32 = arith.constant 3 : i32
    %39 = arith.subi %c3_i32, %c0_i32_2 : i32
    %40 = arith.index_cast %39 : i32 to index
    %c0_18 = arith.constant 0 : index
    %c0_19 = arith.constant 0 : index
    %41 = vector.load %arg2[%40, %c0_18, %c0_19] : memref<4x8x128xbf16, #tpu.memory_space<vmem>>, vector<1x8x128xbf16>
    %42 = vector.shape_cast %41 : vector<1x8x128xbf16> to vector<8x128xbf16>
    %43 = arith.extf %42 : vector<8x128xbf16> to vector<8x128xf32>
    %c0_20 = arith.constant 0 : index
    %c0_21 = arith.constant 0 : index
    %44 = vector.load %arg7[%c0_20, %c0_21] : memref<8x32xf32, #tpu.memory_space<vmem>>, vector<8x32xf32>
    %c1 = arith.constant 1 : index
    %c0_22 = arith.constant 0 : index
    %c0_23 = arith.constant 0 : index
    %45 = vector.load %arg3[%c1, %c0_22, %c0_23] : memref<2x32x128xf32, #tpu.memory_space<vmem>>, vector<1x32x128xf32>
    %46 = vector.shape_cast %45 : vector<1x32x128xf32> to vector<32x128xf32>
    %cst_24 = arith.constant dense<0.000000e+00> : vector<8x128xf32>
    %47 = tpu.matmul %44, %46, %cst_24 {dimension_numbers = #tpu.dot_dimension_numbers<[1], [0], [0], [1], [0, 0, 1, 1], [], []>} : vector<8x32xf32>, vector<32x128xf32>, vector<8x128xf32> -> vector<8x128xf32>
    %48 = arith.addf %43, %47 : vector<8x128xf32>
    %c0_25 = arith.constant 0 : index
    %c0_26 = arith.constant 0 : index
    %49 = vector.load %arg8[%c0_25, %c0_26] : memref<8x32xf32, #tpu.memory_space<vmem>>, vector<8x32xf32>
    %50 = arith.negf %48 : vector<8x128xf32>
    %51 = math.exp %50 : vector<8x128xf32>
    %cst_27 = arith.constant 1.000000e+00 : f32
    %52 = vector.broadcast %cst_27 : f32 to vector<8x128xf32>
    %53 = arith.addf %52, %51 : vector<8x128xf32>
    %54 = arith.divf %52, %53 : vector<8x128xf32>
    %55 = math.tanh %48 : vector<8x128xf32>
    %56 = vector.extract_strided_slice %54 {offsets = [0, 0], sizes = [8, 32], strides = [1, 1]} : vector<8x128xf32> to vector<8x32xf32>
    %57 = vector.extract_strided_slice %54 {offsets = [0, 32], sizes = [8, 32], strides = [1, 1]} : vector<8x128xf32> to vector<8x32xf32>
    %58 = vector.extract_strided_slice %54 {offsets = [0, 96], sizes = [8, 32], strides = [1, 1]} : vector<8x128xf32> to vector<8x32xf32>
    %59 = vector.extract_strided_slice %55 {offsets = [0, 64], sizes = [8, 32], strides = [1, 1]} : vector<8x128xf32> to vector<8x32xf32>
    %60 = arith.mulf %57, %49 : vector<8x32xf32>
    %61 = arith.mulf %56, %59 : vector<8x32xf32>
    %62 = arith.addf %60, %61 : vector<8x32xf32>
    %63 = math.tanh %62 : vector<8x32xf32>
    %64 = arith.mulf %58, %63 : vector<8x32xf32>
    %c0_28 = arith.constant 0 : index
    %c0_29 = arith.constant 0 : index
    %65 = vector.load %arg7[%c0_28, %c0_29] : memref<8x32xf32, #tpu.memory_space<vmem>>, vector<8x32xf32>
    tpu.vector_store %arg7[%c0_28, %c0_29], %64 {strides = array<i32>} : memref<8x32xf32, #tpu.memory_space<vmem>>, vector<8x32xf32>,
    %c0_30 = arith.constant 0 : index
    %c0_31 = arith.constant 0 : index
    %66 = vector.load %arg8[%c0_30, %c0_31] : memref<8x32xf32, #tpu.memory_space<vmem>>, vector<8x32xf32>
    tpu.vector_store %arg8[%c0_30, %c0_31], %62 {strides = array<i32>} : memref<8x32xf32, #tpu.memory_space<vmem>>, vector<8x32xf32>,
    %67 = arith.truncf %64 : vector<8x32xf32> to vector<8x32xbf16>
    %68 = arith.addi %5, %39 : i32
    %69 = arith.index_cast %68 : i32 to index
    %c0_32 = arith.constant 0 : index
    %c32 = arith.constant 32 : index
    %70 = vector.load %arg4[%69, %c0_32, %c32] : memref<8x8x64xbf16, #tpu.memory_space<vmem>>, vector<1x8x32xbf16>
    %71 = vector.shape_cast %70 : vector<1x8x32xbf16> to vector<8x32xbf16>
    %72 = vector.shape_cast %67 : vector<8x32xbf16> to vector<1x8x32xbf16>
    tpu.vector_store %arg4[%69, %c0_32, %c32], %72 {strides = array<i32>} : memref<8x8x64xbf16, #tpu.memory_space<vmem>>, vector<1x8x32xbf16>,
    %c1_i32_33 = arith.constant 1 : i32
    %73 = arith.index_cast %c1_i32_33 : i32 to index
    %c0_34 = arith.constant 0 : index
    %c0_35 = arith.constant 0 : index
    %74 = vector.load %arg1[%73, %c0_34, %c0_35] : memref<4x8x128xbf16, #tpu.memory_space<vmem>>, vector<1x8x128xbf16>
    %75 = vector.shape_cast %74 : vector<1x8x128xbf16> to vector<8x128xbf16>
    %76 = arith.extf %75 : vector<8x128xbf16> to vector<8x128xf32>
    %c0_36 = arith.constant 0 : index
    %c0_37 = arith.constant 0 : index
    %77 = vector.load %arg5[%c0_36, %c0_37] : memref<8x32xf32, #tpu.memory_space<vmem>>, vector<8x32xf32>
    %c0_38 = arith.constant 0 : index
    %c0_39 = arith.constant 0 : index
    %c0_40 = arith.constant 0 : index
    %78 = vector.load %arg3[%c0_38, %c0_39, %c0_40] : memref<2x32x128xf32, #tpu.memory_space<vmem>>, vector<1x32x128xf32>
    %79 = vector.shape_cast %78 : vector<1x32x128xf32> to vector<32x128xf32>
    %cst_41 = arith.constant dense<0.000000e+00> : vector<8x128xf32>
    %80 = tpu.matmul %77, %79, %cst_41 {dimension_numbers = #tpu.dot_dimension_numbers<[1], [0], [0], [1], [0, 0, 1, 1], [], []>} : vector<8x32xf32>, vector<32x128xf32>, vector<8x128xf32> -> vector<8x128xf32>
    %81 = arith.addf %76, %80 : vector<8x128xf32>
    %c0_42 = arith.constant 0 : index
    %c0_43 = arith.constant 0 : index
    %82 = vector.load %arg6[%c0_42, %c0_43] : memref<8x32xf32, #tpu.memory_space<vmem>>, vector<8x32xf32>
    %83 = arith.negf %81 : vector<8x128xf32>
    %84 = math.exp %83 : vector<8x128xf32>
    %cst_44 = arith.constant 1.000000e+00 : f32
    %85 = vector.broadcast %cst_44 : f32 to vector<8x128xf32>
    %86 = arith.addf %85, %84 : vector<8x128xf32>
    %87 = arith.divf %85, %86 : vector<8x128xf32>
    %88 = math.tanh %81 : vector<8x128xf32>
    %89 = vector.extract_strided_slice %87 {offsets = [0, 0], sizes = [8, 32], strides = [1, 1]} : vector<8x128xf32> to vector<8x32xf32>
    %90 = vector.extract_strided_slice %87 {offsets = [0, 32], sizes = [8, 32], strides = [1, 1]} : vector<8x128xf32> to vector<8x32xf32>
    %91 = vector.extract_strided_slice %87 {offsets = [0, 96], sizes = [8, 32], strides = [1, 1]} : vector<8x128xf32> to vector<8x32xf32>
    %92 = vector.extract_strided_slice %88 {offsets = [0, 64], sizes = [8, 32], strides = [1, 1]} : vector<8x128xf32> to vector<8x32xf32>
    %93 = arith.mulf %90, %82 : vector<8x32xf32>
    %94 = arith.mulf %89, %92 : vector<8x32xf32>
    %95 = arith.addf %93, %94 : vector<8x32xf32>
    %96 = math.tanh %95 : vector<8x32xf32>
    %97 = arith.mulf %91, %96 : vector<8x32xf32>
    %c0_45 = arith.constant 0 : index
    %c0_46 = arith.constant 0 : index
    %98 = vector.load %arg5[%c0_45, %c0_46] : memref<8x32xf32, #tpu.memory_space<vmem>>, vector<8x32xf32>
    tpu.vector_store %arg5[%c0_45, %c0_46], %97 {strides = array<i32>} : memref<8x32xf32, #tpu.memory_space<vmem>>, vector<8x32xf32>,
    %c0_47 = arith.constant 0 : index
    %c0_48 = arith.constant 0 : index
    %99 = vector.load %arg6[%c0_47, %c0_48] : memref<8x32xf32, #tpu.memory_space<vmem>>, vector<8x32xf32>
    tpu.vector_store %arg6[%c0_47, %c0_48], %95 {strides = array<i32>} : memref<8x32xf32, #tpu.memory_space<vmem>>, vector<8x32xf32>,
    %100 = arith.truncf %97 : vector<8x32xf32> to vector<8x32xbf16>
    %101 = arith.addi %3, %c1_i32_33 : i32
    %102 = arith.index_cast %101 : i32 to index
    %c0_49 = arith.constant 0 : index
    %c0_50 = arith.constant 0 : index
    %103 = vector.load %arg4[%102, %c0_49, %c0_50] : memref<8x8x64xbf16, #tpu.memory_space<vmem>>, vector<1x8x32xbf16>
    %104 = vector.shape_cast %103 : vector<1x8x32xbf16> to vector<8x32xbf16>
    %105 = vector.shape_cast %100 : vector<8x32xbf16> to vector<1x8x32xbf16>
    tpu.vector_store %arg4[%102, %c0_49, %c0_50], %105 {strides = array<i32>} : memref<8x8x64xbf16, #tpu.memory_space<vmem>>, vector<1x8x32xbf16>,
    %c3_i32_51 = arith.constant 3 : i32
    %106 = arith.subi %c3_i32_51, %c1_i32_33 : i32
    %107 = arith.index_cast %106 : i32 to index
    %c0_52 = arith.constant 0 : index
    %c0_53 = arith.constant 0 : index
    %108 = vector.load %arg2[%107, %c0_52, %c0_53] : memref<4x8x128xbf16, #tpu.memory_space<vmem>>, vector<1x8x128xbf16>
    %109 = vector.shape_cast %108 : vector<1x8x128xbf16> to vector<8x128xbf16>
    %110 = arith.extf %109 : vector<8x128xbf16> to vector<8x128xf32>
    %c0_54 = arith.constant 0 : index
    %c0_55 = arith.constant 0 : index
    %111 = vector.load %arg7[%c0_54, %c0_55] : memref<8x32xf32, #tpu.memory_space<vmem>>, vector<8x32xf32>
    %c1_56 = arith.constant 1 : index
    %c0_57 = arith.constant 0 : index
    %c0_58 = arith.constant 0 : index
    %112 = vector.load %arg3[%c1_56, %c0_57, %c0_58] : memref<2x32x128xf32, #tpu.memory_space<vmem>>, vector<1x32x128xf32>
    %113 = vector.shape_cast %112 : vector<1x32x128xf32> to vector<32x128xf32>
    %cst_59 = arith.constant dense<0.000000e+00> : vector<8x128xf32>
    %114 = tpu.matmul %111, %113, %cst_59 {dimension_numbers = #tpu.dot_dimension_numbers<[1], [0], [0], [1], [0, 0, 1, 1], [], []>} : vector<8x32xf32>, vector<32x128xf32>, vector<8x128xf32> -> vector<8x128xf32>
    %115 = arith.addf %110, %114 : vector<8x128xf32>
    %c0_60 = arith.constant 0 : index
    %c0_61 = arith.constant 0 : index
    %116 = vector.load %arg8[%c0_60, %c0_61] : memref<8x32xf32, #tpu.memory_space<vmem>>, vector<8x32xf32>
    %117 = arith.negf %115 : vector<8x128xf32>
    %118 = math.exp %117 : vector<8x128xf32>
    %cst_62 = arith.constant 1.000000e+00 : f32
    %119 = vector.broadcast %cst_62 : f32 to vector<8x128xf32>
    %120 = arith.addf %119, %118 : vector<8x128xf32>
    %121 = arith.divf %119, %120 : vector<8x128xf32>
    %122 = math.tanh %115 : vector<8x128xf32>
    %123 = vector.extract_strided_slice %121 {offsets = [0, 0], sizes = [8, 32], strides = [1, 1]} : vector<8x128xf32> to vector<8x32xf32>
    %124 = vector.extract_strided_slice %121 {offsets = [0, 32], sizes = [8, 32], strides = [1, 1]} : vector<8x128xf32> to vector<8x32xf32>
    %125 = vector.extract_strided_slice %121 {offsets = [0, 96], sizes = [8, 32], strides = [1, 1]} : vector<8x128xf32> to vector<8x32xf32>
    %126 = vector.extract_strided_slice %122 {offsets = [0, 64], sizes = [8, 32], strides = [1, 1]} : vector<8x128xf32> to vector<8x32xf32>
    %127 = arith.mulf %124, %116 : vector<8x32xf32>
    %128 = arith.mulf %123, %126 : vector<8x32xf32>
    %129 = arith.addf %127, %128 : vector<8x32xf32>
    %130 = math.tanh %129 : vector<8x32xf32>
    %131 = arith.mulf %125, %130 : vector<8x32xf32>
    %c0_63 = arith.constant 0 : index
    %c0_64 = arith.constant 0 : index
    %132 = vector.load %arg7[%c0_63, %c0_64] : memref<8x32xf32, #tpu.memory_space<vmem>>, vector<8x32xf32>
    tpu.vector_store %arg7[%c0_63, %c0_64], %131 {strides = array<i32>} : memref<8x32xf32, #tpu.memory_space<vmem>>, vector<8x32xf32>,
    %c0_65 = arith.constant 0 : index
    %c0_66 = arith.constant 0 : index
    %133 = vector.load %arg8[%c0_65, %c0_66] : memref<8x32xf32, #tpu.memory_space<vmem>>, vector<8x32xf32>
    tpu.vector_store %arg8[%c0_65, %c0_66], %129 {strides = array<i32>} : memref<8x32xf32, #tpu.memory_space<vmem>>, vector<8x32xf32>,
    %134 = arith.truncf %131 : vector<8x32xf32> to vector<8x32xbf16>
    %135 = arith.addi %5, %106 : i32
    %136 = arith.index_cast %135 : i32 to index
    %c0_67 = arith.constant 0 : index
    %c32_68 = arith.constant 32 : index
    %137 = vector.load %arg4[%136, %c0_67, %c32_68] : memref<8x8x64xbf16, #tpu.memory_space<vmem>>, vector<1x8x32xbf16>
    %138 = vector.shape_cast %137 : vector<1x8x32xbf16> to vector<8x32xbf16>
    %139 = vector.shape_cast %134 : vector<8x32xbf16> to vector<1x8x32xbf16>
    tpu.vector_store %arg4[%136, %c0_67, %c32_68], %139 {strides = array<i32>} : memref<8x8x64xbf16, #tpu.memory_space<vmem>>, vector<1x8x32xbf16>,
    %c2_i32 = arith.constant 2 : i32
    %140 = arith.index_cast %c2_i32 : i32 to index
    %c0_69 = arith.constant 0 : index
    %c0_70 = arith.constant 0 : index
    %141 = vector.load %arg1[%140, %c0_69, %c0_70] : memref<4x8x128xbf16, #tpu.memory_space<vmem>>, vector<1x8x128xbf16>
    %142 = vector.shape_cast %141 : vector<1x8x128xbf16> to vector<8x128xbf16>
    %143 = arith.extf %142 : vector<8x128xbf16> to vector<8x128xf32>
    %c0_71 = arith.constant 0 : index
    %c0_72 = arith.constant 0 : index
    %144 = vector.load %arg5[%c0_71, %c0_72] : memref<8x32xf32, #tpu.memory_space<vmem>>, vector<8x32xf32>
    %c0_73 = arith.constant 0 : index
    %c0_74 = arith.constant 0 : index
    %c0_75 = arith.constant 0 : index
    %145 = vector.load %arg3[%c0_73, %c0_74, %c0_75] : memref<2x32x128xf32, #tpu.memory_space<vmem>>, vector<1x32x128xf32>
    %146 = vector.shape_cast %145 : vector<1x32x128xf32> to vector<32x128xf32>
    %cst_76 = arith.constant dense<0.000000e+00> : vector<8x128xf32>
    %147 = tpu.matmul %144, %146, %cst_76 {dimension_numbers = #tpu.dot_dimension_numbers<[1], [0], [0], [1], [0, 0, 1, 1], [], []>} : vector<8x32xf32>, vector<32x128xf32>, vector<8x128xf32> -> vector<8x128xf32>
    %148 = arith.addf %143, %147 : vector<8x128xf32>
    %c0_77 = arith.constant 0 : index
    %c0_78 = arith.constant 0 : index
    %149 = vector.load %arg6[%c0_77, %c0_78] : memref<8x32xf32, #tpu.memory_space<vmem>>, vector<8x32xf32>
    %150 = arith.negf %148 : vector<8x128xf32>
    %151 = math.exp %150 : vector<8x128xf32>
    %cst_79 = arith.constant 1.000000e+00 : f32
    %152 = vector.broadcast %cst_79 : f32 to vector<8x128xf32>
    %153 = arith.addf %152, %151 : vector<8x128xf32>
    %154 = arith.divf %152, %153 : vector<8x128xf32>
    %155 = math.tanh %148 : vector<8x128xf32>
    %156 = vector.extract_strided_slice %154 {offsets = [0, 0], sizes = [8, 32], strides = [1, 1]} : vector<8x128xf32> to vector<8x32xf32>
    %157 = vector.extract_strided_slice %154 {offsets = [0, 32], sizes = [8, 32], strides = [1, 1]} : vector<8x128xf32> to vector<8x32xf32>
    %158 = vector.extract_strided_slice %154 {offsets = [0, 96], sizes = [8, 32], strides = [1, 1]} : vector<8x128xf32> to vector<8x32xf32>
    %159 = vector.extract_strided_slice %155 {offsets = [0, 64], sizes = [8, 32], strides = [1, 1]} : vector<8x128xf32> to vector<8x32xf32>
    %160 = arith.mulf %157, %149 : vector<8x32xf32>
    %161 = arith.mulf %156, %159 : vector<8x32xf32>
    %162 = arith.addf %160, %161 : vector<8x32xf32>
    %163 = math.tanh %162 : vector<8x32xf32>
    %164 = arith.mulf %158, %163 : vector<8x32xf32>
    %c0_80 = arith.constant 0 : index
    %c0_81 = arith.constant 0 : index
    %165 = vector.load %arg5[%c0_80, %c0_81] : memref<8x32xf32, #tpu.memory_space<vmem>>, vector<8x32xf32>
    tpu.vector_store %arg5[%c0_80, %c0_81], %164 {strides = array<i32>} : memref<8x32xf32, #tpu.memory_space<vmem>>, vector<8x32xf32>,
    %c0_82 = arith.constant 0 : index
    %c0_83 = arith.constant 0 : index
    %166 = vector.load %arg6[%c0_82, %c0_83] : memref<8x32xf32, #tpu.memory_space<vmem>>, vector<8x32xf32>
    tpu.vector_store %arg6[%c0_82, %c0_83], %162 {strides = array<i32>} : memref<8x32xf32, #tpu.memory_space<vmem>>, vector<8x32xf32>,
    %167 = arith.truncf %164 : vector<8x32xf32> to vector<8x32xbf16>
    %168 = arith.addi %3, %c2_i32 : i32
    %169 = arith.index_cast %168 : i32 to index
    %c0_84 = arith.constant 0 : index
    %c0_85 = arith.constant 0 : index
    %170 = vector.load %arg4[%169, %c0_84, %c0_85] : memref<8x8x64xbf16, #tpu.memory_space<vmem>>, vector<1x8x32xbf16>
    %171 = vector.shape_cast %170 : vector<1x8x32xbf16> to vector<8x32xbf16>
    %172 = vector.shape_cast %167 : vector<8x32xbf16> to vector<1x8x32xbf16>
    tpu.vector_store %arg4[%169, %c0_84, %c0_85], %172 {strides = array<i32>} : memref<8x8x64xbf16, #tpu.memory_space<vmem>>, vector<1x8x32xbf16>,
    %c3_i32_86 = arith.constant 3 : i32
    %173 = arith.subi %c3_i32_86, %c2_i32 : i32
    %174 = arith.index_cast %173 : i32 to index
    %c0_87 = arith.constant 0 : index
    %c0_88 = arith.constant 0 : index
    %175 = vector.load %arg2[%174, %c0_87, %c0_88] : memref<4x8x128xbf16, #tpu.memory_space<vmem>>, vector<1x8x128xbf16>
    %176 = vector.shape_cast %175 : vector<1x8x128xbf16> to vector<8x128xbf16>
    %177 = arith.extf %176 : vector<8x128xbf16> to vector<8x128xf32>
    %c0_89 = arith.constant 0 : index
    %c0_90 = arith.constant 0 : index
    %178 = vector.load %arg7[%c0_89, %c0_90] : memref<8x32xf32, #tpu.memory_space<vmem>>, vector<8x32xf32>
    %c1_91 = arith.constant 1 : index
    %c0_92 = arith.constant 0 : index
    %c0_93 = arith.constant 0 : index
    %179 = vector.load %arg3[%c1_91, %c0_92, %c0_93] : memref<2x32x128xf32, #tpu.memory_space<vmem>>, vector<1x32x128xf32>
    %180 = vector.shape_cast %179 : vector<1x32x128xf32> to vector<32x128xf32>
    %cst_94 = arith.constant dense<0.000000e+00> : vector<8x128xf32>
    %181 = tpu.matmul %178, %180, %cst_94 {dimension_numbers = #tpu.dot_dimension_numbers<[1], [0], [0], [1], [0, 0, 1, 1], [], []>} : vector<8x32xf32>, vector<32x128xf32>, vector<8x128xf32> -> vector<8x128xf32>
    %182 = arith.addf %177, %181 : vector<8x128xf32>
    %c0_95 = arith.constant 0 : index
    %c0_96 = arith.constant 0 : index
    %183 = vector.load %arg8[%c0_95, %c0_96] : memref<8x32xf32, #tpu.memory_space<vmem>>, vector<8x32xf32>
    %184 = arith.negf %182 : vector<8x128xf32>
    %185 = math.exp %184 : vector<8x128xf32>
    %cst_97 = arith.constant 1.000000e+00 : f32
    %186 = vector.broadcast %cst_97 : f32 to vector<8x128xf32>
    %187 = arith.addf %186, %185 : vector<8x128xf32>
    %188 = arith.divf %186, %187 : vector<8x128xf32>
    %189 = math.tanh %182 : vector<8x128xf32>
    %190 = vector.extract_strided_slice %188 {offsets = [0, 0], sizes = [8, 32], strides = [1, 1]} : vector<8x128xf32> to vector<8x32xf32>
    %191 = vector.extract_strided_slice %188 {offsets = [0, 32], sizes = [8, 32], strides = [1, 1]} : vector<8x128xf32> to vector<8x32xf32>
    %192 = vector.extract_strided_slice %188 {offsets = [0, 96], sizes = [8, 32], strides = [1, 1]} : vector<8x128xf32> to vector<8x32xf32>
    %193 = vector.extract_strided_slice %189 {offsets = [0, 64], sizes = [8, 32], strides = [1, 1]} : vector<8x128xf32> to vector<8x32xf32>
    %194 = arith.mulf %191, %183 : vector<8x32xf32>
    %195 = arith.mulf %190, %193 : vector<8x32xf32>
    %196 = arith.addf %194, %195 : vector<8x32xf32>
    %197 = math.tanh %196 : vector<8x32xf32>
    %198 = arith.mulf %192, %197 : vector<8x32xf32>
    %c0_98 = arith.constant 0 : index
    %c0_99 = arith.constant 0 : index
    %199 = vector.load %arg7[%c0_98, %c0_99] : memref<8x32xf32, #tpu.memory_space<vmem>>, vector<8x32xf32>
    tpu.vector_store %arg7[%c0_98, %c0_99], %198 {strides = array<i32>} : memref<8x32xf32, #tpu.memory_space<vmem>>, vector<8x32xf32>,
    %c0_100 = arith.constant 0 : index
    %c0_101 = arith.constant 0 : index
    %200 = vector.load %arg8[%c0_100, %c0_101] : memref<8x32xf32, #tpu.memory_space<vmem>>, vector<8x32xf32>
    tpu.vector_store %arg8[%c0_100, %c0_101], %196 {strides = array<i32>} : memref<8x32xf32, #tpu.memory_space<vmem>>, vector<8x32xf32>,
    %201 = arith.truncf %198 : vector<8x32xf32> to vector<8x32xbf16>
    %202 = arith.addi %5, %173 : i32
    %203 = arith.index_cast %202 : i32 to index
    %c0_102 = arith.constant 0 : index
    %c32_103 = arith.constant 32 : index
    %204 = vector.load %arg4[%203, %c0_102, %c32_103] : memref<8x8x64xbf16, #tpu.memory_space<vmem>>, vector<1x8x32xbf16>
    %205 = vector.shape_cast %204 : vector<1x8x32xbf16> to vector<8x32xbf16>
    %206 = vector.shape_cast %201 : vector<8x32xbf16> to vector<1x8x32xbf16>
    tpu.vector_store %arg4[%203, %c0_102, %c32_103], %206 {strides = array<i32>} : memref<8x8x64xbf16, #tpu.memory_space<vmem>>, vector<1x8x32xbf16>,
    %c3_i32_104 = arith.constant 3 : i32
    %207 = arith.index_cast %c3_i32_104 : i32 to index
    %c0_105 = arith.constant 0 : index
    %c0_106 = arith.constant 0 : index
    %208 = vector.load %arg1[%207, %c0_105, %c0_106] : memref<4x8x128xbf16, #tpu.memory_space<vmem>>, vector<1x8x128xbf16>
    %209 = vector.shape_cast %208 : vector<1x8x128xbf16> to vector<8x128xbf16>
    %210 = arith.extf %209 : vector<8x128xbf16> to vector<8x128xf32>
    %c0_107 = arith.constant 0 : index
    %c0_108 = arith.constant 0 : index
    %211 = vector.load %arg5[%c0_107, %c0_108] : memref<8x32xf32, #tpu.memory_space<vmem>>, vector<8x32xf32>
    %c0_109 = arith.constant 0 : index
    %c0_110 = arith.constant 0 : index
    %c0_111 = arith.constant 0 : index
    %212 = vector.load %arg3[%c0_109, %c0_110, %c0_111] : memref<2x32x128xf32, #tpu.memory_space<vmem>>, vector<1x32x128xf32>
    %213 = vector.shape_cast %212 : vector<1x32x128xf32> to vector<32x128xf32>
    %cst_112 = arith.constant dense<0.000000e+00> : vector<8x128xf32>
    %214 = tpu.matmul %211, %213, %cst_112 {dimension_numbers = #tpu.dot_dimension_numbers<[1], [0], [0], [1], [0, 0, 1, 1], [], []>} : vector<8x32xf32>, vector<32x128xf32>, vector<8x128xf32> -> vector<8x128xf32>
    %215 = arith.addf %210, %214 : vector<8x128xf32>
    %c0_113 = arith.constant 0 : index
    %c0_114 = arith.constant 0 : index
    %216 = vector.load %arg6[%c0_113, %c0_114] : memref<8x32xf32, #tpu.memory_space<vmem>>, vector<8x32xf32>
    %217 = arith.negf %215 : vector<8x128xf32>
    %218 = math.exp %217 : vector<8x128xf32>
    %cst_115 = arith.constant 1.000000e+00 : f32
    %219 = vector.broadcast %cst_115 : f32 to vector<8x128xf32>
    %220 = arith.addf %219, %218 : vector<8x128xf32>
    %221 = arith.divf %219, %220 : vector<8x128xf32>
    %222 = math.tanh %215 : vector<8x128xf32>
    %223 = vector.extract_strided_slice %221 {offsets = [0, 0], sizes = [8, 32], strides = [1, 1]} : vector<8x128xf32> to vector<8x32xf32>
    %224 = vector.extract_strided_slice %221 {offsets = [0, 32], sizes = [8, 32], strides = [1, 1]} : vector<8x128xf32> to vector<8x32xf32>
    %225 = vector.extract_strided_slice %221 {offsets = [0, 96], sizes = [8, 32], strides = [1, 1]} : vector<8x128xf32> to vector<8x32xf32>
    %226 = vector.extract_strided_slice %222 {offsets = [0, 64], sizes = [8, 32], strides = [1, 1]} : vector<8x128xf32> to vector<8x32xf32>
    %227 = arith.mulf %224, %216 : vector<8x32xf32>
    %228 = arith.mulf %223, %226 : vector<8x32xf32>
    %229 = arith.addf %227, %228 : vector<8x32xf32>
    %230 = math.tanh %229 : vector<8x32xf32>
    %231 = arith.mulf %225, %230 : vector<8x32xf32>
    %c0_116 = arith.constant 0 : index
    %c0_117 = arith.constant 0 : index
    %232 = vector.load %arg5[%c0_116, %c0_117] : memref<8x32xf32, #tpu.memory_space<vmem>>, vector<8x32xf32>
    tpu.vector_store %arg5[%c0_116, %c0_117], %231 {strides = array<i32>} : memref<8x32xf32, #tpu.memory_space<vmem>>, vector<8x32xf32>,
    %c0_118 = arith.constant 0 : index
    %c0_119 = arith.constant 0 : index
    %233 = vector.load %arg6[%c0_118, %c0_119] : memref<8x32xf32, #tpu.memory_space<vmem>>, vector<8x32xf32>
    tpu.vector_store %arg6[%c0_118, %c0_119], %229 {strides = array<i32>} : memref<8x32xf32, #tpu.memory_space<vmem>>, vector<8x32xf32>,
    %234 = arith.truncf %231 : vector<8x32xf32> to vector<8x32xbf16>
    %235 = arith.addi %3, %c3_i32_104 : i32
    %236 = arith.index_cast %235 : i32 to index
    %c0_120 = arith.constant 0 : index
    %c0_121 = arith.constant 0 : index
    %237 = vector.load %arg4[%236, %c0_120, %c0_121] : memref<8x8x64xbf16, #tpu.memory_space<vmem>>, vector<1x8x32xbf16>
    %238 = vector.shape_cast %237 : vector<1x8x32xbf16> to vector<8x32xbf16>
    %239 = vector.shape_cast %234 : vector<8x32xbf16> to vector<1x8x32xbf16>
    tpu.vector_store %arg4[%236, %c0_120, %c0_121], %239 {strides = array<i32>} : memref<8x8x64xbf16, #tpu.memory_space<vmem>>, vector<1x8x32xbf16>,
    %c3_i32_122 = arith.constant 3 : i32
    %240 = arith.subi %c3_i32_122, %c3_i32_104 : i32
    %241 = arith.index_cast %240 : i32 to index
    %c0_123 = arith.constant 0 : index
    %c0_124 = arith.constant 0 : index
    %242 = vector.load %arg2[%241, %c0_123, %c0_124] : memref<4x8x128xbf16, #tpu.memory_space<vmem>>, vector<1x8x128xbf16>
    %243 = vector.shape_cast %242 : vector<1x8x128xbf16> to vector<8x128xbf16>
    %244 = arith.extf %243 : vector<8x128xbf16> to vector<8x128xf32>
    %c0_125 = arith.constant 0 : index
    %c0_126 = arith.constant 0 : index
    %245 = vector.load %arg7[%c0_125, %c0_126] : memref<8x32xf32, #tpu.memory_space<vmem>>, vector<8x32xf32>
    %c1_127 = arith.constant 1 : index
    %c0_128 = arith.constant 0 : index
    %c0_129 = arith.constant 0 : index
    %246 = vector.load %arg3[%c1_127, %c0_128, %c0_129] : memref<2x32x128xf32, #tpu.memory_space<vmem>>, vector<1x32x128xf32>
    %247 = vector.shape_cast %246 : vector<1x32x128xf32> to vector<32x128xf32>
    %cst_130 = arith.constant dense<0.000000e+00> : vector<8x128xf32>
    %248 = tpu.matmul %245, %247, %cst_130 {dimension_numbers = #tpu.dot_dimension_numbers<[1], [0], [0], [1], [0, 0, 1, 1], [], []>} : vector<8x32xf32>, vector<32x128xf32>, vector<8x128xf32> -> vector<8x128xf32>
    %249 = arith.addf %244, %248 : vector<8x128xf32>
    %c0_131 = arith.constant 0 : index
    %c0_132 = arith.constant 0 : index
    %250 = vector.load %arg8[%c0_131, %c0_132] : memref<8x32xf32, #tpu.memory_space<vmem>>, vector<8x32xf32>
    %251 = arith.negf %249 : vector<8x128xf32>
    %252 = math.exp %251 : vector<8x128xf32>
    %cst_133 = arith.constant 1.000000e+00 : f32
    %253 = vector.broadcast %cst_133 : f32 to vector<8x128xf32>
    %254 = arith.addf %253, %252 : vector<8x128xf32>
    %255 = arith.divf %253, %254 : vector<8x128xf32>
    %256 = math.tanh %249 : vector<8x128xf32>
    %257 = vector.extract_strided_slice %255 {offsets = [0, 0], sizes = [8, 32], strides = [1, 1]} : vector<8x128xf32> to vector<8x32xf32>
    %258 = vector.extract_strided_slice %255 {offsets = [0, 32], sizes = [8, 32], strides = [1, 1]} : vector<8x128xf32> to vector<8x32xf32>
    %259 = vector.extract_strided_slice %255 {offsets = [0, 96], sizes = [8, 32], strides = [1, 1]} : vector<8x128xf32> to vector<8x32xf32>
    %260 = vector.extract_strided_slice %256 {offsets = [0, 64], sizes = [8, 32], strides = [1, 1]} : vector<8x128xf32> to vector<8x32xf32>
    %261 = arith.mulf %258, %250 : vector<8x32xf32>
    %262 = arith.mulf %257, %260 : vector<8x32xf32>
    %263 = arith.addf %261, %262 : vector<8x32xf32>
    %264 = math.tanh %263 : vector<8x32xf32>
    %265 = arith.mulf %259, %264 : vector<8x32xf32>
    %c0_134 = arith.constant 0 : index
    %c0_135 = arith.constant 0 : index
    %266 = vector.load %arg7[%c0_134, %c0_135] : memref<8x32xf32, #tpu.memory_space<vmem>>, vector<8x32xf32>
    tpu.vector_store %arg7[%c0_134, %c0_135], %265 {strides = array<i32>} : memref<8x32xf32, #tpu.memory_space<vmem>>, vector<8x32xf32>,
    %c0_136 = arith.constant 0 : index
    %c0_137 = arith.constant 0 : index
    %267 = vector.load %arg8[%c0_136, %c0_137] : memref<8x32xf32, #tpu.memory_space<vmem>>, vector<8x32xf32>
    tpu.vector_store %arg8[%c0_136, %c0_137], %263 {strides = array<i32>} : memref<8x32xf32, #tpu.memory_space<vmem>>, vector<8x32xf32>,
    %268 = arith.truncf %265 : vector<8x32xf32> to vector<8x32xbf16>
    %269 = arith.addi %5, %240 : i32
    %270 = arith.index_cast %269 : i32 to index
    %c0_138 = arith.constant 0 : index
    %c32_139 = arith.constant 32 : index
    %271 = vector.load %arg4[%270, %c0_138, %c32_139] : memref<8x8x64xbf16, #tpu.memory_space<vmem>>, vector<1x8x32xbf16>
    %272 = vector.shape_cast %271 : vector<1x8x32xbf16> to vector<8x32xbf16>
    %273 = vector.shape_cast %268 : vector<8x32xbf16> to vector<1x8x32xbf16>
    tpu.vector_store %arg4[%270, %c0_138, %c32_139], %273 {strides = array<i32>} : memref<8x8x64xbf16, #tpu.memory_space<vmem>>, vector<1x8x32xbf16>,
    %c4_i32_140 = arith.constant 4 : i32
    return
  }
  func.func @transform_0(%arg0: i32) -> (i32, i32, i32) {
    %c0_i32 = arith.constant 0 : i32
    %c0_i32_0 = arith.constant 0 : i32
    %c0_i32_1 = arith.constant 0 : i32
    return %arg0, %c0_i32, %c0_i32_0 : i32, i32, i32
  }
  func.func @transform_1(%arg0: i32) -> (i32, i32, i32) {
    %c1_i32 = arith.constant 1 : i32
    %0 = arith.subi %c1_i32, %arg0 : i32
    %c0_i32 = arith.constant 0 : i32
    %c1_i32_0 = arith.constant 1 : i32
    %c0_i32_1 = arith.constant 0 : i32
    return %0, %c0_i32, %c1_i32_0 : i32, i32, i32
  }
  func.func @transform_2(%arg0: i32) -> (i32, i32, i32) {
    %c0_i32 = arith.constant 0 : i32
    %c0_i32_0 = arith.constant 0 : i32
    %c0_i32_1 = arith.constant 0 : i32
    %c0_i32_2 = arith.constant 0 : i32
    return %c0_i32, %c0_i32_0, %c0_i32_1 : i32, i32, i32
  }
  func.func @transform_3(%arg0: i32) -> (i32, i32, i32) {
    %c0_i32 = arith.constant 0 : i32
    %c0_i32_0 = arith.constant 0 : i32
    %c0_i32_1 = arith.constant 0 : i32
    %c0_i32_2 = arith.constant 0 : i32
    return %c0_i32, %c0_i32_0, %c0_i32_1 : i32, i32, i32
  }
}

module attributes {stable_mosaic.version = 11 : i64} {
  func.func @_proj_kernel(%arg0: i32, %arg1: memref<16x64xbf16, #tpu.memory_space<vmem>>, %arg2: memref<64x256xbf16, #tpu.memory_space<vmem>>, %arg3: memref<1x256xf32, #tpu.memory_space<vmem>>, %arg4: memref<16x256xbf16, #tpu.memory_space<vmem>>) attributes {dimension_semantics = [#tpu.dimension_semantics<parallel>], iteration_bounds = array<i64: 4>, scalar_prefetch = 0 : i64, scratch_operands = 0 : i64, tpu.core_type = #tpu.core_type<tc>, window_params = [{transform_indices = @transform_0, window_bounds = array<i64: 16, 64>}, {pipeline_mode = #tpu.pipeline_mode<synchronous>, transform_indices = @transform_1, window_bounds = array<i64: 64, 256>}, {pipeline_mode = #tpu.pipeline_mode<synchronous>, transform_indices = @transform_2, window_bounds = array<i64: 1, 256>}, {transform_indices = @transform_3, window_bounds = array<i64: 16, 256>}]} {
    %c0 = arith.constant 0 : index
    %c0_0 = arith.constant 0 : index
    %0 = vector.load %arg1[%c0, %c0_0] : memref<16x64xbf16, #tpu.memory_space<vmem>>, vector<16x64xbf16>
    %c0_1 = arith.constant 0 : index
    %c0_2 = arith.constant 0 : index
    %1 = vector.load %arg2[%c0_1, %c0_2] : memref<64x256xbf16, #tpu.memory_space<vmem>>, vector<64x256xbf16>
    %cst = arith.constant dense<0.000000e+00> : vector<16x256xf32>
    %2 = tpu.matmul %0, %1, %cst {dimension_numbers = #tpu.dot_dimension_numbers<[1], [0], [0], [1], [0, 0, 1, 1], [], []>} : vector<16x64xbf16>, vector<64x256xbf16>, vector<16x256xf32> -> vector<16x256xf32>
    %c0_3 = arith.constant 0 : index
    %c0_4 = arith.constant 0 : index
    %3 = vector.load %arg3[%c0_3, %c0_4] : memref<1x256xf32, #tpu.memory_space<vmem>>, vector<1x256xf32>
    %4 = vector.broadcast %3 : vector<1x256xf32> to vector<16x256xf32>
    %5 = arith.addf %2, %4 : vector<16x256xf32>
    %6 = arith.truncf %5 : vector<16x256xf32> to vector<16x256xbf16>
    %c0_5 = arith.constant 0 : index
    %c0_6 = arith.constant 0 : index
    %7 = vector.load %arg4[%c0_5, %c0_6] : memref<16x256xbf16, #tpu.memory_space<vmem>>, vector<16x256xbf16>
    tpu.vector_store %arg4[%c0_5, %c0_6], %6 {strides = array<i32>} : memref<16x256xbf16, #tpu.memory_space<vmem>>, vector<16x256xbf16>,
    return
  }
  func.func @transform_0(%arg0: i32) -> (i32, i32) {
    %c0_i32 = arith.constant 0 : i32
    %c0_i32_0 = arith.constant 0 : i32
    return %arg0, %c0_i32 : i32, i32
  }
  func.func @transform_1(%arg0: i32) -> (i32, i32) {
    %c0_i32 = arith.constant 0 : i32
    %c0_i32_0 = arith.constant 0 : i32
    %c0_i32_1 = arith.constant 0 : i32
    return %c0_i32, %c0_i32_0 : i32, i32
  }
  func.func @transform_2(%arg0: i32) -> (i32, i32) {
    %c0_i32 = arith.constant 0 : i32
    %c0_i32_0 = arith.constant 0 : i32
    %c0_i32_1 = arith.constant 0 : i32
    return %c0_i32, %c0_i32_0 : i32, i32
  }
  func.func @transform_3(%arg0: i32) -> (i32, i32) {
    %c0_i32 = arith.constant 0 : i32
    %c0_i32_0 = arith.constant 0 : i32
    return %arg0, %c0_i32 : i32, i32
  }
}

module attributes {stable_mosaic.version = 11 : i64} {
  func.func @_bidir_lstm_kernel(%arg0: i32, %arg1: memref<4x8x128xbf16, #tpu.memory_space<vmem>>, %arg2: memref<4x8x128xbf16, #tpu.memory_space<vmem>>, %arg3: memref<2x32x128xf32, #tpu.memory_space<vmem>>, %arg4: memref<8x8x64xf32, #tpu.memory_space<vmem>>, %arg5: memref<8x32xf32, #tpu.memory_space<vmem>>, %arg6: memref<8x32xf32, #tpu.memory_space<vmem>>, %arg7: memref<8x32xf32, #tpu.memory_space<vmem>>, %arg8: memref<8x32xf32, #tpu.memory_space<vmem>>) attributes {dimension_semantics = [#tpu.dimension_semantics<arbitrary>], iteration_bounds = array<i64: 2>, scalar_prefetch = 0 : i64, scratch_operands = 4 : i64, tpu.core_type = #tpu.core_type<tc>, window_params = [{transform_indices = @transform_0, window_bounds = array<i64: 4, 8, 128>}, {transform_indices = @transform_1, window_bounds = array<i64: 4, 8, 128>}, {pipeline_mode = #tpu.pipeline_mode<synchronous>, transform_indices = @transform_2, window_bounds = array<i64: 2, 32, 128>}, {pipeline_mode = #tpu.pipeline_mode<synchronous>, transform_indices = @transform_3, window_bounds = array<i64: 8, 8, 64>}]} {
    %c0_i32 = arith.constant 0 : i32
    %0 = arith.cmpi eq, %arg0, %c0_i32 : i32
    %1 = arith.extui %0 : i1 to i32
    %c0_i32_0 = arith.constant 0 : i32
    %2 = arith.cmpi ne, %1, %c0_i32_0 : i32
    scf.if %2 {
      %cst_141 = arith.constant 0.000000e+00 : f32
      %266 = vector.broadcast %cst_141 : f32 to vector<8x32xf32>
      %c0_142 = arith.constant 0 : index
      %c0_143 = arith.constant 0 : index
      %267 = vector.load %arg5[%c0_142, %c0_143] : memref<8x32xf32, #tpu.memory_space<vmem>>, vector<8x32xf32>
      tpu.vector_store %arg5[%c0_142, %c0_143], %266 {strides = array<i32>} : memref<8x32xf32, #tpu.memory_space<vmem>>, vector<8x32xf32>,
      %cst_144 = arith.constant 0.000000e+00 : f32
      %268 = vector.broadcast %cst_144 : f32 to vector<8x32xf32>
      %c0_145 = arith.constant 0 : index
      %c0_146 = arith.constant 0 : index
      %269 = vector.load %arg6[%c0_145, %c0_146] : memref<8x32xf32, #tpu.memory_space<vmem>>, vector<8x32xf32>
      tpu.vector_store %arg6[%c0_145, %c0_146], %268 {strides = array<i32>} : memref<8x32xf32, #tpu.memory_space<vmem>>, vector<8x32xf32>,
      %cst_147 = arith.constant 0.000000e+00 : f32
      %270 = vector.broadcast %cst_147 : f32 to vector<8x32xf32>
      %c0_148 = arith.constant 0 : index
      %c0_149 = arith.constant 0 : index
      %271 = vector.load %arg7[%c0_148, %c0_149] : memref<8x32xf32, #tpu.memory_space<vmem>>, vector<8x32xf32>
      tpu.vector_store %arg7[%c0_148, %c0_149], %270 {strides = array<i32>} : memref<8x32xf32, #tpu.memory_space<vmem>>, vector<8x32xf32>,
      %cst_150 = arith.constant 0.000000e+00 : f32
      %272 = vector.broadcast %cst_150 : f32 to vector<8x32xf32>
      %c0_151 = arith.constant 0 : index
      %c0_152 = arith.constant 0 : index
      %273 = vector.load %arg8[%c0_151, %c0_152] : memref<8x32xf32, #tpu.memory_space<vmem>>, vector<8x32xf32>
      tpu.vector_store %arg8[%c0_151, %c0_152], %272 {strides = array<i32>} : memref<8x32xf32, #tpu.memory_space<vmem>>, vector<8x32xf32>,
    } else {
    }
    %c4_i32 = arith.constant 4 : i32
    %3 = arith.muli %arg0, %c4_i32 : i32
    %c1_i32 = arith.constant 1 : i32
    %4 = arith.subi %c1_i32, %arg0 : i32
    %c4_i32_1 = arith.constant 4 : i32
    %5 = arith.muli %4, %c4_i32_1 : i32
    %c0_i32_2 = arith.constant 0 : i32
    %6 = arith.index_cast %c0_i32_2 : i32 to index
    %c0 = arith.constant 0 : index
    %c0_3 = arith.constant 0 : index
    %7 = vector.load %arg1[%6, %c0, %c0_3] : memref<4x8x128xbf16, #tpu.memory_space<vmem>>, vector<1x8x128xbf16>
    %8 = vector.shape_cast %7 : vector<1x8x128xbf16> to vector<8x128xbf16>
    %9 = arith.extf %8 : vector<8x128xbf16> to vector<8x128xf32>
    %c0_4 = arith.constant 0 : index
    %c0_5 = arith.constant 0 : index
    %10 = vector.load %arg5[%c0_4, %c0_5] : memref<8x32xf32, #tpu.memory_space<vmem>>, vector<8x32xf32>
    %c0_6 = arith.constant 0 : index
    %c0_7 = arith.constant 0 : index
    %c0_8 = arith.constant 0 : index
    %11 = vector.load %arg3[%c0_6, %c0_7, %c0_8] : memref<2x32x128xf32, #tpu.memory_space<vmem>>, vector<1x32x128xf32>
    %12 = vector.shape_cast %11 : vector<1x32x128xf32> to vector<32x128xf32>
    %cst = arith.constant dense<0.000000e+00> : vector<8x128xf32>
    %13 = tpu.matmul %10, %12, %cst {dimension_numbers = #tpu.dot_dimension_numbers<[1], [0], [0], [1], [0, 0, 1, 1], [], []>} : vector<8x32xf32>, vector<32x128xf32>, vector<8x128xf32> -> vector<8x128xf32>
    %14 = arith.addf %9, %13 : vector<8x128xf32>
    %c0_9 = arith.constant 0 : index
    %c0_10 = arith.constant 0 : index
    %15 = vector.load %arg6[%c0_9, %c0_10] : memref<8x32xf32, #tpu.memory_space<vmem>>, vector<8x32xf32>
    %16 = arith.negf %14 : vector<8x128xf32>
    %17 = math.exp %16 : vector<8x128xf32>
    %cst_11 = arith.constant 1.000000e+00 : f32
    %18 = vector.broadcast %cst_11 : f32 to vector<8x128xf32>
    %19 = arith.addf %18, %17 : vector<8x128xf32>
    %20 = arith.divf %18, %19 : vector<8x128xf32>
    %21 = math.tanh %14 : vector<8x128xf32>
    %22 = vector.extract_strided_slice %20 {offsets = [0, 0], sizes = [8, 32], strides = [1, 1]} : vector<8x128xf32> to vector<8x32xf32>
    %23 = vector.extract_strided_slice %20 {offsets = [0, 32], sizes = [8, 32], strides = [1, 1]} : vector<8x128xf32> to vector<8x32xf32>
    %24 = vector.extract_strided_slice %20 {offsets = [0, 96], sizes = [8, 32], strides = [1, 1]} : vector<8x128xf32> to vector<8x32xf32>
    %25 = vector.extract_strided_slice %21 {offsets = [0, 64], sizes = [8, 32], strides = [1, 1]} : vector<8x128xf32> to vector<8x32xf32>
    %26 = arith.mulf %23, %15 : vector<8x32xf32>
    %27 = arith.mulf %22, %25 : vector<8x32xf32>
    %28 = arith.addf %26, %27 : vector<8x32xf32>
    %29 = math.tanh %28 : vector<8x32xf32>
    %30 = arith.mulf %24, %29 : vector<8x32xf32>
    %c0_12 = arith.constant 0 : index
    %c0_13 = arith.constant 0 : index
    %31 = vector.load %arg5[%c0_12, %c0_13] : memref<8x32xf32, #tpu.memory_space<vmem>>, vector<8x32xf32>
    tpu.vector_store %arg5[%c0_12, %c0_13], %30 {strides = array<i32>} : memref<8x32xf32, #tpu.memory_space<vmem>>, vector<8x32xf32>,
    %c0_14 = arith.constant 0 : index
    %c0_15 = arith.constant 0 : index
    %32 = vector.load %arg6[%c0_14, %c0_15] : memref<8x32xf32, #tpu.memory_space<vmem>>, vector<8x32xf32>
    tpu.vector_store %arg6[%c0_14, %c0_15], %28 {strides = array<i32>} : memref<8x32xf32, #tpu.memory_space<vmem>>, vector<8x32xf32>,
    %33 = arith.addi %3, %c0_i32_2 : i32
    %34 = arith.index_cast %33 : i32 to index
    %c0_16 = arith.constant 0 : index
    %c0_17 = arith.constant 0 : index
    %35 = vector.load %arg4[%34, %c0_16, %c0_17] : memref<8x8x64xf32, #tpu.memory_space<vmem>>, vector<1x8x32xf32>
    %36 = vector.shape_cast %35 : vector<1x8x32xf32> to vector<8x32xf32>
    %37 = vector.shape_cast %30 : vector<8x32xf32> to vector<1x8x32xf32>
    tpu.vector_store %arg4[%34, %c0_16, %c0_17], %37 {strides = array<i32>} : memref<8x8x64xf32, #tpu.memory_space<vmem>>, vector<1x8x32xf32>,
    %c3_i32 = arith.constant 3 : i32
    %38 = arith.subi %c3_i32, %c0_i32_2 : i32
    %39 = arith.index_cast %38 : i32 to index
    %c0_18 = arith.constant 0 : index
    %c0_19 = arith.constant 0 : index
    %40 = vector.load %arg2[%39, %c0_18, %c0_19] : memref<4x8x128xbf16, #tpu.memory_space<vmem>>, vector<1x8x128xbf16>
    %41 = vector.shape_cast %40 : vector<1x8x128xbf16> to vector<8x128xbf16>
    %42 = arith.extf %41 : vector<8x128xbf16> to vector<8x128xf32>
    %c0_20 = arith.constant 0 : index
    %c0_21 = arith.constant 0 : index
    %43 = vector.load %arg7[%c0_20, %c0_21] : memref<8x32xf32, #tpu.memory_space<vmem>>, vector<8x32xf32>
    %c1 = arith.constant 1 : index
    %c0_22 = arith.constant 0 : index
    %c0_23 = arith.constant 0 : index
    %44 = vector.load %arg3[%c1, %c0_22, %c0_23] : memref<2x32x128xf32, #tpu.memory_space<vmem>>, vector<1x32x128xf32>
    %45 = vector.shape_cast %44 : vector<1x32x128xf32> to vector<32x128xf32>
    %cst_24 = arith.constant dense<0.000000e+00> : vector<8x128xf32>
    %46 = tpu.matmul %43, %45, %cst_24 {dimension_numbers = #tpu.dot_dimension_numbers<[1], [0], [0], [1], [0, 0, 1, 1], [], []>} : vector<8x32xf32>, vector<32x128xf32>, vector<8x128xf32> -> vector<8x128xf32>
    %47 = arith.addf %42, %46 : vector<8x128xf32>
    %c0_25 = arith.constant 0 : index
    %c0_26 = arith.constant 0 : index
    %48 = vector.load %arg8[%c0_25, %c0_26] : memref<8x32xf32, #tpu.memory_space<vmem>>, vector<8x32xf32>
    %49 = arith.negf %47 : vector<8x128xf32>
    %50 = math.exp %49 : vector<8x128xf32>
    %cst_27 = arith.constant 1.000000e+00 : f32
    %51 = vector.broadcast %cst_27 : f32 to vector<8x128xf32>
    %52 = arith.addf %51, %50 : vector<8x128xf32>
    %53 = arith.divf %51, %52 : vector<8x128xf32>
    %54 = math.tanh %47 : vector<8x128xf32>
    %55 = vector.extract_strided_slice %53 {offsets = [0, 0], sizes = [8, 32], strides = [1, 1]} : vector<8x128xf32> to vector<8x32xf32>
    %56 = vector.extract_strided_slice %53 {offsets = [0, 32], sizes = [8, 32], strides = [1, 1]} : vector<8x128xf32> to vector<8x32xf32>
    %57 = vector.extract_strided_slice %53 {offsets = [0, 96], sizes = [8, 32], strides = [1, 1]} : vector<8x128xf32> to vector<8x32xf32>
    %58 = vector.extract_strided_slice %54 {offsets = [0, 64], sizes = [8, 32], strides = [1, 1]} : vector<8x128xf32> to vector<8x32xf32>
    %59 = arith.mulf %56, %48 : vector<8x32xf32>
    %60 = arith.mulf %55, %58 : vector<8x32xf32>
    %61 = arith.addf %59, %60 : vector<8x32xf32>
    %62 = math.tanh %61 : vector<8x32xf32>
    %63 = arith.mulf %57, %62 : vector<8x32xf32>
    %c0_28 = arith.constant 0 : index
    %c0_29 = arith.constant 0 : index
    %64 = vector.load %arg7[%c0_28, %c0_29] : memref<8x32xf32, #tpu.memory_space<vmem>>, vector<8x32xf32>
    tpu.vector_store %arg7[%c0_28, %c0_29], %63 {strides = array<i32>} : memref<8x32xf32, #tpu.memory_space<vmem>>, vector<8x32xf32>,
    %c0_30 = arith.constant 0 : index
    %c0_31 = arith.constant 0 : index
    %65 = vector.load %arg8[%c0_30, %c0_31] : memref<8x32xf32, #tpu.memory_space<vmem>>, vector<8x32xf32>
    tpu.vector_store %arg8[%c0_30, %c0_31], %61 {strides = array<i32>} : memref<8x32xf32, #tpu.memory_space<vmem>>, vector<8x32xf32>,
    %66 = arith.addi %5, %38 : i32
    %67 = arith.index_cast %66 : i32 to index
    %c0_32 = arith.constant 0 : index
    %c32 = arith.constant 32 : index
    %68 = vector.load %arg4[%67, %c0_32, %c32] : memref<8x8x64xf32, #tpu.memory_space<vmem>>, vector<1x8x32xf32>
    %69 = vector.shape_cast %68 : vector<1x8x32xf32> to vector<8x32xf32>
    %70 = vector.shape_cast %63 : vector<8x32xf32> to vector<1x8x32xf32>
    tpu.vector_store %arg4[%67, %c0_32, %c32], %70 {strides = array<i32>} : memref<8x8x64xf32, #tpu.memory_space<vmem>>, vector<1x8x32xf32>,
    %c1_i32_33 = arith.constant 1 : i32
    %71 = arith.index_cast %c1_i32_33 : i32 to index
    %c0_34 = arith.constant 0 : index
    %c0_35 = arith.constant 0 : index
    %72 = vector.load %arg1[%71, %c0_34, %c0_35] : memref<4x8x128xbf16, #tpu.memory_space<vmem>>, vector<1x8x128xbf16>
    %73 = vector.shape_cast %72 : vector<1x8x128xbf16> to vector<8x128xbf16>
    %74 = arith.extf %73 : vector<8x128xbf16> to vector<8x128xf32>
    %c0_36 = arith.constant 0 : index
    %c0_37 = arith.constant 0 : index
    %75 = vector.load %arg5[%c0_36, %c0_37] : memref<8x32xf32, #tpu.memory_space<vmem>>, vector<8x32xf32>
    %c0_38 = arith.constant 0 : index
    %c0_39 = arith.constant 0 : index
    %c0_40 = arith.constant 0 : index
    %76 = vector.load %arg3[%c0_38, %c0_39, %c0_40] : memref<2x32x128xf32, #tpu.memory_space<vmem>>, vector<1x32x128xf32>
    %77 = vector.shape_cast %76 : vector<1x32x128xf32> to vector<32x128xf32>
    %cst_41 = arith.constant dense<0.000000e+00> : vector<8x128xf32>
    %78 = tpu.matmul %75, %77, %cst_41 {dimension_numbers = #tpu.dot_dimension_numbers<[1], [0], [0], [1], [0, 0, 1, 1], [], []>} : vector<8x32xf32>, vector<32x128xf32>, vector<8x128xf32> -> vector<8x128xf32>
    %79 = arith.addf %74, %78 : vector<8x128xf32>
    %c0_42 = arith.constant 0 : index
    %c0_43 = arith.constant 0 : index
    %80 = vector.load %arg6[%c0_42, %c0_43] : memref<8x32xf32, #tpu.memory_space<vmem>>, vector<8x32xf32>
    %81 = arith.negf %79 : vector<8x128xf32>
    %82 = math.exp %81 : vector<8x128xf32>
    %cst_44 = arith.constant 1.000000e+00 : f32
    %83 = vector.broadcast %cst_44 : f32 to vector<8x128xf32>
    %84 = arith.addf %83, %82 : vector<8x128xf32>
    %85 = arith.divf %83, %84 : vector<8x128xf32>
    %86 = math.tanh %79 : vector<8x128xf32>
    %87 = vector.extract_strided_slice %85 {offsets = [0, 0], sizes = [8, 32], strides = [1, 1]} : vector<8x128xf32> to vector<8x32xf32>
    %88 = vector.extract_strided_slice %85 {offsets = [0, 32], sizes = [8, 32], strides = [1, 1]} : vector<8x128xf32> to vector<8x32xf32>
    %89 = vector.extract_strided_slice %85 {offsets = [0, 96], sizes = [8, 32], strides = [1, 1]} : vector<8x128xf32> to vector<8x32xf32>
    %90 = vector.extract_strided_slice %86 {offsets = [0, 64], sizes = [8, 32], strides = [1, 1]} : vector<8x128xf32> to vector<8x32xf32>
    %91 = arith.mulf %88, %80 : vector<8x32xf32>
    %92 = arith.mulf %87, %90 : vector<8x32xf32>
    %93 = arith.addf %91, %92 : vector<8x32xf32>
    %94 = math.tanh %93 : vector<8x32xf32>
    %95 = arith.mulf %89, %94 : vector<8x32xf32>
    %c0_45 = arith.constant 0 : index
    %c0_46 = arith.constant 0 : index
    %96 = vector.load %arg5[%c0_45, %c0_46] : memref<8x32xf32, #tpu.memory_space<vmem>>, vector<8x32xf32>
    tpu.vector_store %arg5[%c0_45, %c0_46], %95 {strides = array<i32>} : memref<8x32xf32, #tpu.memory_space<vmem>>, vector<8x32xf32>,
    %c0_47 = arith.constant 0 : index
    %c0_48 = arith.constant 0 : index
    %97 = vector.load %arg6[%c0_47, %c0_48] : memref<8x32xf32, #tpu.memory_space<vmem>>, vector<8x32xf32>
    tpu.vector_store %arg6[%c0_47, %c0_48], %93 {strides = array<i32>} : memref<8x32xf32, #tpu.memory_space<vmem>>, vector<8x32xf32>,
    %98 = arith.addi %3, %c1_i32_33 : i32
    %99 = arith.index_cast %98 : i32 to index
    %c0_49 = arith.constant 0 : index
    %c0_50 = arith.constant 0 : index
    %100 = vector.load %arg4[%99, %c0_49, %c0_50] : memref<8x8x64xf32, #tpu.memory_space<vmem>>, vector<1x8x32xf32>
    %101 = vector.shape_cast %100 : vector<1x8x32xf32> to vector<8x32xf32>
    %102 = vector.shape_cast %95 : vector<8x32xf32> to vector<1x8x32xf32>
    tpu.vector_store %arg4[%99, %c0_49, %c0_50], %102 {strides = array<i32>} : memref<8x8x64xf32, #tpu.memory_space<vmem>>, vector<1x8x32xf32>,
    %c3_i32_51 = arith.constant 3 : i32
    %103 = arith.subi %c3_i32_51, %c1_i32_33 : i32
    %104 = arith.index_cast %103 : i32 to index
    %c0_52 = arith.constant 0 : index
    %c0_53 = arith.constant 0 : index
    %105 = vector.load %arg2[%104, %c0_52, %c0_53] : memref<4x8x128xbf16, #tpu.memory_space<vmem>>, vector<1x8x128xbf16>
    %106 = vector.shape_cast %105 : vector<1x8x128xbf16> to vector<8x128xbf16>
    %107 = arith.extf %106 : vector<8x128xbf16> to vector<8x128xf32>
    %c0_54 = arith.constant 0 : index
    %c0_55 = arith.constant 0 : index
    %108 = vector.load %arg7[%c0_54, %c0_55] : memref<8x32xf32, #tpu.memory_space<vmem>>, vector<8x32xf32>
    %c1_56 = arith.constant 1 : index
    %c0_57 = arith.constant 0 : index
    %c0_58 = arith.constant 0 : index
    %109 = vector.load %arg3[%c1_56, %c0_57, %c0_58] : memref<2x32x128xf32, #tpu.memory_space<vmem>>, vector<1x32x128xf32>
    %110 = vector.shape_cast %109 : vector<1x32x128xf32> to vector<32x128xf32>
    %cst_59 = arith.constant dense<0.000000e+00> : vector<8x128xf32>
    %111 = tpu.matmul %108, %110, %cst_59 {dimension_numbers = #tpu.dot_dimension_numbers<[1], [0], [0], [1], [0, 0, 1, 1], [], []>} : vector<8x32xf32>, vector<32x128xf32>, vector<8x128xf32> -> vector<8x128xf32>
    %112 = arith.addf %107, %111 : vector<8x128xf32>
    %c0_60 = arith.constant 0 : index
    %c0_61 = arith.constant 0 : index
    %113 = vector.load %arg8[%c0_60, %c0_61] : memref<8x32xf32, #tpu.memory_space<vmem>>, vector<8x32xf32>
    %114 = arith.negf %112 : vector<8x128xf32>
    %115 = math.exp %114 : vector<8x128xf32>
    %cst_62 = arith.constant 1.000000e+00 : f32
    %116 = vector.broadcast %cst_62 : f32 to vector<8x128xf32>
    %117 = arith.addf %116, %115 : vector<8x128xf32>
    %118 = arith.divf %116, %117 : vector<8x128xf32>
    %119 = math.tanh %112 : vector<8x128xf32>
    %120 = vector.extract_strided_slice %118 {offsets = [0, 0], sizes = [8, 32], strides = [1, 1]} : vector<8x128xf32> to vector<8x32xf32>
    %121 = vector.extract_strided_slice %118 {offsets = [0, 32], sizes = [8, 32], strides = [1, 1]} : vector<8x128xf32> to vector<8x32xf32>
    %122 = vector.extract_strided_slice %118 {offsets = [0, 96], sizes = [8, 32], strides = [1, 1]} : vector<8x128xf32> to vector<8x32xf32>
    %123 = vector.extract_strided_slice %119 {offsets = [0, 64], sizes = [8, 32], strides = [1, 1]} : vector<8x128xf32> to vector<8x32xf32>
    %124 = arith.mulf %121, %113 : vector<8x32xf32>
    %125 = arith.mulf %120, %123 : vector<8x32xf32>
    %126 = arith.addf %124, %125 : vector<8x32xf32>
    %127 = math.tanh %126 : vector<8x32xf32>
    %128 = arith.mulf %122, %127 : vector<8x32xf32>
    %c0_63 = arith.constant 0 : index
    %c0_64 = arith.constant 0 : index
    %129 = vector.load %arg7[%c0_63, %c0_64] : memref<8x32xf32, #tpu.memory_space<vmem>>, vector<8x32xf32>
    tpu.vector_store %arg7[%c0_63, %c0_64], %128 {strides = array<i32>} : memref<8x32xf32, #tpu.memory_space<vmem>>, vector<8x32xf32>,
    %c0_65 = arith.constant 0 : index
    %c0_66 = arith.constant 0 : index
    %130 = vector.load %arg8[%c0_65, %c0_66] : memref<8x32xf32, #tpu.memory_space<vmem>>, vector<8x32xf32>
    tpu.vector_store %arg8[%c0_65, %c0_66], %126 {strides = array<i32>} : memref<8x32xf32, #tpu.memory_space<vmem>>, vector<8x32xf32>,
    %131 = arith.addi %5, %103 : i32
    %132 = arith.index_cast %131 : i32 to index
    %c0_67 = arith.constant 0 : index
    %c32_68 = arith.constant 32 : index
    %133 = vector.load %arg4[%132, %c0_67, %c32_68] : memref<8x8x64xf32, #tpu.memory_space<vmem>>, vector<1x8x32xf32>
    %134 = vector.shape_cast %133 : vector<1x8x32xf32> to vector<8x32xf32>
    %135 = vector.shape_cast %128 : vector<8x32xf32> to vector<1x8x32xf32>
    tpu.vector_store %arg4[%132, %c0_67, %c32_68], %135 {strides = array<i32>} : memref<8x8x64xf32, #tpu.memory_space<vmem>>, vector<1x8x32xf32>,
    %c2_i32 = arith.constant 2 : i32
    %136 = arith.index_cast %c2_i32 : i32 to index
    %c0_69 = arith.constant 0 : index
    %c0_70 = arith.constant 0 : index
    %137 = vector.load %arg1[%136, %c0_69, %c0_70] : memref<4x8x128xbf16, #tpu.memory_space<vmem>>, vector<1x8x128xbf16>
    %138 = vector.shape_cast %137 : vector<1x8x128xbf16> to vector<8x128xbf16>
    %139 = arith.extf %138 : vector<8x128xbf16> to vector<8x128xf32>
    %c0_71 = arith.constant 0 : index
    %c0_72 = arith.constant 0 : index
    %140 = vector.load %arg5[%c0_71, %c0_72] : memref<8x32xf32, #tpu.memory_space<vmem>>, vector<8x32xf32>
    %c0_73 = arith.constant 0 : index
    %c0_74 = arith.constant 0 : index
    %c0_75 = arith.constant 0 : index
    %141 = vector.load %arg3[%c0_73, %c0_74, %c0_75] : memref<2x32x128xf32, #tpu.memory_space<vmem>>, vector<1x32x128xf32>
    %142 = vector.shape_cast %141 : vector<1x32x128xf32> to vector<32x128xf32>
    %cst_76 = arith.constant dense<0.000000e+00> : vector<8x128xf32>
    %143 = tpu.matmul %140, %142, %cst_76 {dimension_numbers = #tpu.dot_dimension_numbers<[1], [0], [0], [1], [0, 0, 1, 1], [], []>} : vector<8x32xf32>, vector<32x128xf32>, vector<8x128xf32> -> vector<8x128xf32>
    %144 = arith.addf %139, %143 : vector<8x128xf32>
    %c0_77 = arith.constant 0 : index
    %c0_78 = arith.constant 0 : index
    %145 = vector.load %arg6[%c0_77, %c0_78] : memref<8x32xf32, #tpu.memory_space<vmem>>, vector<8x32xf32>
    %146 = arith.negf %144 : vector<8x128xf32>
    %147 = math.exp %146 : vector<8x128xf32>
    %cst_79 = arith.constant 1.000000e+00 : f32
    %148 = vector.broadcast %cst_79 : f32 to vector<8x128xf32>
    %149 = arith.addf %148, %147 : vector<8x128xf32>
    %150 = arith.divf %148, %149 : vector<8x128xf32>
    %151 = math.tanh %144 : vector<8x128xf32>
    %152 = vector.extract_strided_slice %150 {offsets = [0, 0], sizes = [8, 32], strides = [1, 1]} : vector<8x128xf32> to vector<8x32xf32>
    %153 = vector.extract_strided_slice %150 {offsets = [0, 32], sizes = [8, 32], strides = [1, 1]} : vector<8x128xf32> to vector<8x32xf32>
    %154 = vector.extract_strided_slice %150 {offsets = [0, 96], sizes = [8, 32], strides = [1, 1]} : vector<8x128xf32> to vector<8x32xf32>
    %155 = vector.extract_strided_slice %151 {offsets = [0, 64], sizes = [8, 32], strides = [1, 1]} : vector<8x128xf32> to vector<8x32xf32>
    %156 = arith.mulf %153, %145 : vector<8x32xf32>
    %157 = arith.mulf %152, %155 : vector<8x32xf32>
    %158 = arith.addf %156, %157 : vector<8x32xf32>
    %159 = math.tanh %158 : vector<8x32xf32>
    %160 = arith.mulf %154, %159 : vector<8x32xf32>
    %c0_80 = arith.constant 0 : index
    %c0_81 = arith.constant 0 : index
    %161 = vector.load %arg5[%c0_80, %c0_81] : memref<8x32xf32, #tpu.memory_space<vmem>>, vector<8x32xf32>
    tpu.vector_store %arg5[%c0_80, %c0_81], %160 {strides = array<i32>} : memref<8x32xf32, #tpu.memory_space<vmem>>, vector<8x32xf32>,
    %c0_82 = arith.constant 0 : index
    %c0_83 = arith.constant 0 : index
    %162 = vector.load %arg6[%c0_82, %c0_83] : memref<8x32xf32, #tpu.memory_space<vmem>>, vector<8x32xf32>
    tpu.vector_store %arg6[%c0_82, %c0_83], %158 {strides = array<i32>} : memref<8x32xf32, #tpu.memory_space<vmem>>, vector<8x32xf32>,
    %163 = arith.addi %3, %c2_i32 : i32
    %164 = arith.index_cast %163 : i32 to index
    %c0_84 = arith.constant 0 : index
    %c0_85 = arith.constant 0 : index
    %165 = vector.load %arg4[%164, %c0_84, %c0_85] : memref<8x8x64xf32, #tpu.memory_space<vmem>>, vector<1x8x32xf32>
    %166 = vector.shape_cast %165 : vector<1x8x32xf32> to vector<8x32xf32>
    %167 = vector.shape_cast %160 : vector<8x32xf32> to vector<1x8x32xf32>
    tpu.vector_store %arg4[%164, %c0_84, %c0_85], %167 {strides = array<i32>} : memref<8x8x64xf32, #tpu.memory_space<vmem>>, vector<1x8x32xf32>,
    %c3_i32_86 = arith.constant 3 : i32
    %168 = arith.subi %c3_i32_86, %c2_i32 : i32
    %169 = arith.index_cast %168 : i32 to index
    %c0_87 = arith.constant 0 : index
    %c0_88 = arith.constant 0 : index
    %170 = vector.load %arg2[%169, %c0_87, %c0_88] : memref<4x8x128xbf16, #tpu.memory_space<vmem>>, vector<1x8x128xbf16>
    %171 = vector.shape_cast %170 : vector<1x8x128xbf16> to vector<8x128xbf16>
    %172 = arith.extf %171 : vector<8x128xbf16> to vector<8x128xf32>
    %c0_89 = arith.constant 0 : index
    %c0_90 = arith.constant 0 : index
    %173 = vector.load %arg7[%c0_89, %c0_90] : memref<8x32xf32, #tpu.memory_space<vmem>>, vector<8x32xf32>
    %c1_91 = arith.constant 1 : index
    %c0_92 = arith.constant 0 : index
    %c0_93 = arith.constant 0 : index
    %174 = vector.load %arg3[%c1_91, %c0_92, %c0_93] : memref<2x32x128xf32, #tpu.memory_space<vmem>>, vector<1x32x128xf32>
    %175 = vector.shape_cast %174 : vector<1x32x128xf32> to vector<32x128xf32>
    %cst_94 = arith.constant dense<0.000000e+00> : vector<8x128xf32>
    %176 = tpu.matmul %173, %175, %cst_94 {dimension_numbers = #tpu.dot_dimension_numbers<[1], [0], [0], [1], [0, 0, 1, 1], [], []>} : vector<8x32xf32>, vector<32x128xf32>, vector<8x128xf32> -> vector<8x128xf32>
    %177 = arith.addf %172, %176 : vector<8x128xf32>
    %c0_95 = arith.constant 0 : index
    %c0_96 = arith.constant 0 : index
    %178 = vector.load %arg8[%c0_95, %c0_96] : memref<8x32xf32, #tpu.memory_space<vmem>>, vector<8x32xf32>
    %179 = arith.negf %177 : vector<8x128xf32>
    %180 = math.exp %179 : vector<8x128xf32>
    %cst_97 = arith.constant 1.000000e+00 : f32
    %181 = vector.broadcast %cst_97 : f32 to vector<8x128xf32>
    %182 = arith.addf %181, %180 : vector<8x128xf32>
    %183 = arith.divf %181, %182 : vector<8x128xf32>
    %184 = math.tanh %177 : vector<8x128xf32>
    %185 = vector.extract_strided_slice %183 {offsets = [0, 0], sizes = [8, 32], strides = [1, 1]} : vector<8x128xf32> to vector<8x32xf32>
    %186 = vector.extract_strided_slice %183 {offsets = [0, 32], sizes = [8, 32], strides = [1, 1]} : vector<8x128xf32> to vector<8x32xf32>
    %187 = vector.extract_strided_slice %183 {offsets = [0, 96], sizes = [8, 32], strides = [1, 1]} : vector<8x128xf32> to vector<8x32xf32>
    %188 = vector.extract_strided_slice %184 {offsets = [0, 64], sizes = [8, 32], strides = [1, 1]} : vector<8x128xf32> to vector<8x32xf32>
    %189 = arith.mulf %186, %178 : vector<8x32xf32>
    %190 = arith.mulf %185, %188 : vector<8x32xf32>
    %191 = arith.addf %189, %190 : vector<8x32xf32>
    %192 = math.tanh %191 : vector<8x32xf32>
    %193 = arith.mulf %187, %192 : vector<8x32xf32>
    %c0_98 = arith.constant 0 : index
    %c0_99 = arith.constant 0 : index
    %194 = vector.load %arg7[%c0_98, %c0_99] : memref<8x32xf32, #tpu.memory_space<vmem>>, vector<8x32xf32>
    tpu.vector_store %arg7[%c0_98, %c0_99], %193 {strides = array<i32>} : memref<8x32xf32, #tpu.memory_space<vmem>>, vector<8x32xf32>,
    %c0_100 = arith.constant 0 : index
    %c0_101 = arith.constant 0 : index
    %195 = vector.load %arg8[%c0_100, %c0_101] : memref<8x32xf32, #tpu.memory_space<vmem>>, vector<8x32xf32>
    tpu.vector_store %arg8[%c0_100, %c0_101], %191 {strides = array<i32>} : memref<8x32xf32, #tpu.memory_space<vmem>>, vector<8x32xf32>,
    %196 = arith.addi %5, %168 : i32
    %197 = arith.index_cast %196 : i32 to index
    %c0_102 = arith.constant 0 : index
    %c32_103 = arith.constant 32 : index
    %198 = vector.load %arg4[%197, %c0_102, %c32_103] : memref<8x8x64xf32, #tpu.memory_space<vmem>>, vector<1x8x32xf32>
    %199 = vector.shape_cast %198 : vector<1x8x32xf32> to vector<8x32xf32>
    %200 = vector.shape_cast %193 : vector<8x32xf32> to vector<1x8x32xf32>
    tpu.vector_store %arg4[%197, %c0_102, %c32_103], %200 {strides = array<i32>} : memref<8x8x64xf32, #tpu.memory_space<vmem>>, vector<1x8x32xf32>,
    %c3_i32_104 = arith.constant 3 : i32
    %201 = arith.index_cast %c3_i32_104 : i32 to index
    %c0_105 = arith.constant 0 : index
    %c0_106 = arith.constant 0 : index
    %202 = vector.load %arg1[%201, %c0_105, %c0_106] : memref<4x8x128xbf16, #tpu.memory_space<vmem>>, vector<1x8x128xbf16>
    %203 = vector.shape_cast %202 : vector<1x8x128xbf16> to vector<8x128xbf16>
    %204 = arith.extf %203 : vector<8x128xbf16> to vector<8x128xf32>
    %c0_107 = arith.constant 0 : index
    %c0_108 = arith.constant 0 : index
    %205 = vector.load %arg5[%c0_107, %c0_108] : memref<8x32xf32, #tpu.memory_space<vmem>>, vector<8x32xf32>
    %c0_109 = arith.constant 0 : index
    %c0_110 = arith.constant 0 : index
    %c0_111 = arith.constant 0 : index
    %206 = vector.load %arg3[%c0_109, %c0_110, %c0_111] : memref<2x32x128xf32, #tpu.memory_space<vmem>>, vector<1x32x128xf32>
    %207 = vector.shape_cast %206 : vector<1x32x128xf32> to vector<32x128xf32>
    %cst_112 = arith.constant dense<0.000000e+00> : vector<8x128xf32>
    %208 = tpu.matmul %205, %207, %cst_112 {dimension_numbers = #tpu.dot_dimension_numbers<[1], [0], [0], [1], [0, 0, 1, 1], [], []>} : vector<8x32xf32>, vector<32x128xf32>, vector<8x128xf32> -> vector<8x128xf32>
    %209 = arith.addf %204, %208 : vector<8x128xf32>
    %c0_113 = arith.constant 0 : index
    %c0_114 = arith.constant 0 : index
    %210 = vector.load %arg6[%c0_113, %c0_114] : memref<8x32xf32, #tpu.memory_space<vmem>>, vector<8x32xf32>
    %211 = arith.negf %209 : vector<8x128xf32>
    %212 = math.exp %211 : vector<8x128xf32>
    %cst_115 = arith.constant 1.000000e+00 : f32
    %213 = vector.broadcast %cst_115 : f32 to vector<8x128xf32>
    %214 = arith.addf %213, %212 : vector<8x128xf32>
    %215 = arith.divf %213, %214 : vector<8x128xf32>
    %216 = math.tanh %209 : vector<8x128xf32>
    %217 = vector.extract_strided_slice %215 {offsets = [0, 0], sizes = [8, 32], strides = [1, 1]} : vector<8x128xf32> to vector<8x32xf32>
    %218 = vector.extract_strided_slice %215 {offsets = [0, 32], sizes = [8, 32], strides = [1, 1]} : vector<8x128xf32> to vector<8x32xf32>
    %219 = vector.extract_strided_slice %215 {offsets = [0, 96], sizes = [8, 32], strides = [1, 1]} : vector<8x128xf32> to vector<8x32xf32>
    %220 = vector.extract_strided_slice %216 {offsets = [0, 64], sizes = [8, 32], strides = [1, 1]} : vector<8x128xf32> to vector<8x32xf32>
    %221 = arith.mulf %218, %210 : vector<8x32xf32>
    %222 = arith.mulf %217, %220 : vector<8x32xf32>
    %223 = arith.addf %221, %222 : vector<8x32xf32>
    %224 = math.tanh %223 : vector<8x32xf32>
    %225 = arith.mulf %219, %224 : vector<8x32xf32>
    %c0_116 = arith.constant 0 : index
    %c0_117 = arith.constant 0 : index
    %226 = vector.load %arg5[%c0_116, %c0_117] : memref<8x32xf32, #tpu.memory_space<vmem>>, vector<8x32xf32>
    tpu.vector_store %arg5[%c0_116, %c0_117], %225 {strides = array<i32>} : memref<8x32xf32, #tpu.memory_space<vmem>>, vector<8x32xf32>,
    %c0_118 = arith.constant 0 : index
    %c0_119 = arith.constant 0 : index
    %227 = vector.load %arg6[%c0_118, %c0_119] : memref<8x32xf32, #tpu.memory_space<vmem>>, vector<8x32xf32>
    tpu.vector_store %arg6[%c0_118, %c0_119], %223 {strides = array<i32>} : memref<8x32xf32, #tpu.memory_space<vmem>>, vector<8x32xf32>,
    %228 = arith.addi %3, %c3_i32_104 : i32
    %229 = arith.index_cast %228 : i32 to index
    %c0_120 = arith.constant 0 : index
    %c0_121 = arith.constant 0 : index
    %230 = vector.load %arg4[%229, %c0_120, %c0_121] : memref<8x8x64xf32, #tpu.memory_space<vmem>>, vector<1x8x32xf32>
    %231 = vector.shape_cast %230 : vector<1x8x32xf32> to vector<8x32xf32>
    %232 = vector.shape_cast %225 : vector<8x32xf32> to vector<1x8x32xf32>
    tpu.vector_store %arg4[%229, %c0_120, %c0_121], %232 {strides = array<i32>} : memref<8x8x64xf32, #tpu.memory_space<vmem>>, vector<1x8x32xf32>,
    %c3_i32_122 = arith.constant 3 : i32
    %233 = arith.subi %c3_i32_122, %c3_i32_104 : i32
    %234 = arith.index_cast %233 : i32 to index
    %c0_123 = arith.constant 0 : index
    %c0_124 = arith.constant 0 : index
    %235 = vector.load %arg2[%234, %c0_123, %c0_124] : memref<4x8x128xbf16, #tpu.memory_space<vmem>>, vector<1x8x128xbf16>
    %236 = vector.shape_cast %235 : vector<1x8x128xbf16> to vector<8x128xbf16>
    %237 = arith.extf %236 : vector<8x128xbf16> to vector<8x128xf32>
    %c0_125 = arith.constant 0 : index
    %c0_126 = arith.constant 0 : index
    %238 = vector.load %arg7[%c0_125, %c0_126] : memref<8x32xf32, #tpu.memory_space<vmem>>, vector<8x32xf32>
    %c1_127 = arith.constant 1 : index
    %c0_128 = arith.constant 0 : index
    %c0_129 = arith.constant 0 : index
    %239 = vector.load %arg3[%c1_127, %c0_128, %c0_129] : memref<2x32x128xf32, #tpu.memory_space<vmem>>, vector<1x32x128xf32>
    %240 = vector.shape_cast %239 : vector<1x32x128xf32> to vector<32x128xf32>
    %cst_130 = arith.constant dense<0.000000e+00> : vector<8x128xf32>
    %241 = tpu.matmul %238, %240, %cst_130 {dimension_numbers = #tpu.dot_dimension_numbers<[1], [0], [0], [1], [0, 0, 1, 1], [], []>} : vector<8x32xf32>, vector<32x128xf32>, vector<8x128xf32> -> vector<8x128xf32>
    %242 = arith.addf %237, %241 : vector<8x128xf32>
    %c0_131 = arith.constant 0 : index
    %c0_132 = arith.constant 0 : index
    %243 = vector.load %arg8[%c0_131, %c0_132] : memref<8x32xf32, #tpu.memory_space<vmem>>, vector<8x32xf32>
    %244 = arith.negf %242 : vector<8x128xf32>
    %245 = math.exp %244 : vector<8x128xf32>
    %cst_133 = arith.constant 1.000000e+00 : f32
    %246 = vector.broadcast %cst_133 : f32 to vector<8x128xf32>
    %247 = arith.addf %246, %245 : vector<8x128xf32>
    %248 = arith.divf %246, %247 : vector<8x128xf32>
    %249 = math.tanh %242 : vector<8x128xf32>
    %250 = vector.extract_strided_slice %248 {offsets = [0, 0], sizes = [8, 32], strides = [1, 1]} : vector<8x128xf32> to vector<8x32xf32>
    %251 = vector.extract_strided_slice %248 {offsets = [0, 32], sizes = [8, 32], strides = [1, 1]} : vector<8x128xf32> to vector<8x32xf32>
    %252 = vector.extract_strided_slice %248 {offsets = [0, 96], sizes = [8, 32], strides = [1, 1]} : vector<8x128xf32> to vector<8x32xf32>
    %253 = vector.extract_strided_slice %249 {offsets = [0, 64], sizes = [8, 32], strides = [1, 1]} : vector<8x128xf32> to vector<8x32xf32>
    %254 = arith.mulf %251, %243 : vector<8x32xf32>
    %255 = arith.mulf %250, %253 : vector<8x32xf32>
    %256 = arith.addf %254, %255 : vector<8x32xf32>
    %257 = math.tanh %256 : vector<8x32xf32>
    %258 = arith.mulf %252, %257 : vector<8x32xf32>
    %c0_134 = arith.constant 0 : index
    %c0_135 = arith.constant 0 : index
    %259 = vector.load %arg7[%c0_134, %c0_135] : memref<8x32xf32, #tpu.memory_space<vmem>>, vector<8x32xf32>
    tpu.vector_store %arg7[%c0_134, %c0_135], %258 {strides = array<i32>} : memref<8x32xf32, #tpu.memory_space<vmem>>, vector<8x32xf32>,
    %c0_136 = arith.constant 0 : index
    %c0_137 = arith.constant 0 : index
    %260 = vector.load %arg8[%c0_136, %c0_137] : memref<8x32xf32, #tpu.memory_space<vmem>>, vector<8x32xf32>
    tpu.vector_store %arg8[%c0_136, %c0_137], %256 {strides = array<i32>} : memref<8x32xf32, #tpu.memory_space<vmem>>, vector<8x32xf32>,
    %261 = arith.addi %5, %233 : i32
    %262 = arith.index_cast %261 : i32 to index
    %c0_138 = arith.constant 0 : index
    %c32_139 = arith.constant 32 : index
    %263 = vector.load %arg4[%262, %c0_138, %c32_139] : memref<8x8x64xf32, #tpu.memory_space<vmem>>, vector<1x8x32xf32>
    %264 = vector.shape_cast %263 : vector<1x8x32xf32> to vector<8x32xf32>
    %265 = vector.shape_cast %258 : vector<8x32xf32> to vector<1x8x32xf32>
    tpu.vector_store %arg4[%262, %c0_138, %c32_139], %265 {strides = array<i32>} : memref<8x8x64xf32, #tpu.memory_space<vmem>>, vector<1x8x32xf32>,
    %c4_i32_140 = arith.constant 4 : i32
    return
  }
  func.func @transform_0(%arg0: i32) -> (i32, i32, i32) {
    %c0_i32 = arith.constant 0 : i32
    %c0_i32_0 = arith.constant 0 : i32
    %c0_i32_1 = arith.constant 0 : i32
    return %arg0, %c0_i32, %c0_i32_0 : i32, i32, i32
  }
  func.func @transform_1(%arg0: i32) -> (i32, i32, i32) {
    %c1_i32 = arith.constant 1 : i32
    %0 = arith.subi %c1_i32, %arg0 : i32
    %c0_i32 = arith.constant 0 : i32
    %c1_i32_0 = arith.constant 1 : i32
    %c0_i32_1 = arith.constant 0 : i32
    return %0, %c0_i32, %c1_i32_0 : i32, i32, i32
  }
  func.func @transform_2(%arg0: i32) -> (i32, i32, i32) {
    %c0_i32 = arith.constant 0 : i32
    %c0_i32_0 = arith.constant 0 : i32
    %c0_i32_1 = arith.constant 0 : i32
    %c0_i32_2 = arith.constant 0 : i32
    return %c0_i32, %c0_i32_0, %c0_i32_1 : i32, i32, i32
  }
  func.func @transform_3(%arg0: i32) -> (i32, i32, i32) {
    %c0_i32 = arith.constant 0 : i32
    %c0_i32_0 = arith.constant 0 : i32
    %c0_i32_1 = arith.constant 0 : i32
    %c0_i32_2 = arith.constant 0 : i32
    return %c0_i32, %c0_i32_0, %c0_i32_1 : i32, i32, i32
  }
}

</mosaic_0001>

<bundles_post_ra>
// kernel: modeling_layer_forward.4
= control target key start
LH: loop header
LB: loop body
LE: loop exit
PB: predicated region body
PF: predicated region fallthrough
CT: control target
= control target key end

     0   :  { %s650_s12 = smov 0   ;;  %s777_s0 = inlined_call_operand.vmem [shape: bf16[64,256], index: 0, kind: input, shape index: {}]   ;;  %s778_s1 = inlined_call_operand.vmem [shape: bf16[256,256], index: 1, kind: input, shape index: {}]   ;;  %s779_s2 = inlined_call_operand.vmem [shape: f32[1,256], index: 2, kind: input, shape index: {}]   ;;  %s780_s3 = inlined_call_operand.vmem [shape: bf16[64,256], index: 3, kind: output, shape index: {}]  }
   0x1 LB: > { %s510_s13 = sadd.s32 4294967295, %s628_s12   ;;  %p514_p0 = scmp.ge.s32.totalorder %s628_s12, 1  ;;  %s628_s12 = sphi %s650_s12, %s13_s12  }
   0x2   : > { %p139_p1 = scmp.lt.s32.totalorder %s628_s12, 5 }
   0x4   : > { %p140_p2 = pnand %p514_p0, %p139_p1 }
   0x5   : > { %v571_v0 = vld [vmem:[%s778_s1 + $0x4] ss:$8 sps:$4 sm:$0xff] (!%p140_p2)   ;;  %v573_v1 = vld [vmem:[%s778_s1] ss:$8 sps:$4 sm:$0xff] (!%p140_p2)   ;;  %v574_v2 = vld [vmem:[%s778_s1 + $0x14] ss:$8 sps:$4 sm:$0xff] (!%p140_p2)   ;;  %v215_v34 = vlaneseq (!%p140_p2) }
   0x6   : > { %143 = sbr.rel (%p140_p2) target bundleno = 290 (0x122), region = 32  ;;  %395 = vmatprep.subr.bf16.mxu0 (!%p140_p2), %v571_v0  ;;  %v576_v3 = vld [vmem:[%s778_s1 + $0x10] ss:$8 sps:$4 sm:$0xff] (!%p140_p2)   ;;  %v577_v4 = vld [vmem:[%s778_s1 + $0x24] ss:$8 sps:$4 sm:$0xff] (!%p140_p2)   ;;  %s515_s24 = sshll.u32 (!%p140_p2), %s510_s13, 1 }
   0x7   : > { %396 = vmatpush1.bf16.msra.mxu0 (!%p140_p2), %v573_v1  ;;  %v579_v5 = vld [vmem:[%s778_s1 + $0x20] ss:$8 sps:$4 sm:$0xff] (!%p140_p2)   ;;  %v580_v6 = vld [vmem:[%s778_s1 + $0x34] ss:$8 sps:$4 sm:$0xff] (!%p140_p2)   ;;  %p166_p3 = scmp.lt.s32.totalorder (!%p140_p2), %s515_s24, 7  ;;  %v216_v35 = vshrl.u32 (!%p140_p2), %v215_v34, 7 }
   0x8   : > { %397 = vmatprep.subr.bf16.mxu0 (!%p140_p2), %v574_v2  ;;  %v582_v7 = vld [vmem:[%s778_s1 + $0x30] ss:$8 sps:$4 sm:$0xff] (!%p140_p2)   ;;  %v583_v8 = vld [vmem:[%s778_s1 + $0x44] ss:$8 sps:$4 sm:$0xff] (!%p140_p2)   ;;  %v585_v9 = vld [vmem:[%s778_s1 + $0x40] ss:$8 sps:$4 sm:$0xff] (!%p140_p2)  }
   0x9   : > { %v586_v10 = vld [vmem:[%s778_s1 + $0x54] ss:$8 sps:$4 sm:$0xff] (!%p140_p2)   ;;  %v588_v11 = vld [vmem:[%s778_s1 + $0x50] ss:$8 sps:$4 sm:$0xff] (!%p140_p2)   ;;  %v589_v12 = vld [vmem:[%s778_s1 + $0x64] ss:$8 sps:$4 sm:$0xff] (!%p140_p2)  }
   0xa   : > { %v591_v14 = vld [vmem:[%s778_s1 + $0x60] ss:$8 sps:$4 sm:$0xff] (!%p140_p2)   ;;  %v592_v15 = vld [vmem:[%s778_s1 + $0x74] ss:$8 sps:$4 sm:$0xff] (!%p140_p2)   ;;  %v594_v16 = vld [vmem:[%s778_s1 + $0x70] ss:$8 sps:$4 sm:$0xff] (!%p140_p2)  }
   0xb   : > { %398 = vmatpush1.bf16.msra.mxu0 (!%p140_p2), %v576_v3  ;;  %v595_v17 = vld [vmem:[%s778_s1 + $0x84] ss:$8 sps:$4 sm:$0xff] (!%p140_p2)   ;;  %v597_v18 = vld [vmem:[%s778_s1 + $0x80] ss:$8 sps:$4 sm:$0xff] (!%p140_p2)   ;;  %v598_v19 = vld [vmem:[%s778_s1 + $0x94] ss:$8 sps:$4 sm:$0xff] (!%p140_p2)  }
   0xc   : > { %399 = vmatprep.subr.bf16.mxu0 (!%p140_p2), %v577_v4  ;;  %v600_v20 = vld [vmem:[%s778_s1 + $0x90] ss:$8 sps:$4 sm:$0xff] (!%p140_p2)   ;;  %v601_v21 = vld [vmem:[%s778_s1 + $0xa4] ss:$8 sps:$4 sm:$0xff] (!%p140_p2)   ;;  %v603_v22 = vld [vmem:[%s778_s1 + $0xa0] ss:$8 sps:$4 sm:$0xff] (!%p140_p2)  }
   0xd   : > { %s782_s24 = smov (!%p166_p3, %s515_s24), 7  ;;  %v604_v23 = vld [vmem:[%s778_s1 + $0xb4] ss:$8 sps:$4 sm:$0xff]   ;;  %v606_v24 = vld [vmem:[%s778_s1 + $0xb0] ss:$8 sps:$4 sm:$0xff]   ;;  %v217_v36 = vsub.s32 0, %v216_v35 }
   0xe   : > { %s559_s10 = sshll.u32 %s782_s24, 3  ;;  %v607_v25 = vld [vmem:[%s778_s1 + $0xc4] ss:$8 sps:$4 sm:$0xff]   ;;  %v609_v26 = vld [vmem:[%s778_s1 + $0xc0] ss:$8 sps:$4 sm:$0xff]   ;;  %v221_v38 = vsub.s32 1, %v216_v35 }
   0xf   : > { %400 = vmatpush1.bf16.msra.mxu0 %v579_v5  ;;  %s702_s16 = scalar_lea.vmem %s777_s0, %s559_s10  ;;  %v610_v27 = vld [vmem:[%s778_s1 + $0xd4] ss:$8 sps:$4 sm:$0xff]   ;;  %v612_v28 = vld [vmem:[%s778_s1 + $0xd0] ss:$8 sps:$4 sm:$0xff]   ;;  %v613_v29 = vld [vmem:[%s778_s1 + $0xe4] ss:$8 sps:$4 sm:$0xff]   ;;  %s177_s13 = scalar_lea.vmem %s780_s3, %s559_s10 }
  0x10   : > { %401 = vmatprep.subr.bf16.mxu0 %v580_v6  ;;  %v621_v13 = vld [vmem:[%s702_s16 + $0x4] ss:$8 sps:$4 sm:$0xff]   ;;  %v615_v30 = vld [vmem:[%s778_s1 + $0xe0] ss:$8 sps:$4 sm:$0xff]   ;;  %v616_v31 = vld [vmem:[%s778_s1 + $0xf4] ss:$8 sps:$4 sm:$0xff]  }
  0x11   : > { %427 = vmatprep.mubr.bf16.mxu0 %v621_v13  ;;  %v618_v32 = vld [vmem:[%s778_s1 + $0xf0] ss:$8 sps:$4 sm:$0xff]   ;;  %v619_v33 = vld [vmem:[%s702_s16] ss:$8 sps:$4 sm:$0xff]  }
  0x12   : > { %v213_v37 = vld [vmem:[%s779_s2] sm:$0x3] }
  0x13   : > { %402 = vmatpush1.bf16.msra.mxu0 %v582_v7  ;;  %v218_v39 = vrot.slane %v213_v37, %v217_v36  ;;  %v222_v40 = vrot.slane %v213_v37, %v221_v38 }
  0x14   : > { %403 = vmatprep.subr.bf16.mxu0 %v583_v8 }
  0x17   : > { %404 = vmatpush1.bf16.msra.mxu0 %v585_v9 }
  0x18   : > { %405 = vmatprep.subr.bf16.mxu0 %v586_v10 }
  0x1b   : > { %406 = vmatpush1.bf16.msra.mxu0 %v588_v11 }
  0x1c   : > { %407 = vmatprep.subr.bf16.mxu0 %v589_v12 }
  0x1f   : > { %408 = vmatpush1.bf16.msra.mxu0 %v591_v14 }
  0x20   : > { %409 = vmatprep.subr.bf16.mxu0 %v592_v15 }
  0x23   : > { %410 = vmatpush1.bf16.msra.mxu0 %v594_v16 }
  0x24   : > { %411 = vmatprep.subr.bf16.mxu0 %v595_v17 }
  0x27   : > { %412 = vmatpush1.bf16.msra.mxu0 %v597_v18 }
  0x28   : > { %413 = vmatprep.subr.bf16.mxu0 %v598_v19 }
  0x2b   : > { %414 = vmatpush1.bf16.msra.mxu0 %v600_v20 }
  0x2c   : > { %415 = vmatprep.subr.bf16.mxu0 %v601_v21 }
  0x2f   : > { %416 = vmatpush1.bf16.msra.mxu0 %v603_v22 }
  0x30   : > { %417 = vmatprep.subr.bf16.mxu0 %v604_v23 }
  0x33   : > { %418 = vmatpush1.bf16.msra.mxu0 %v606_v24 }
  0x34   : > { %419 = vmatprep.subr.bf16.mxu0 %v607_v25 }
  0x37   : > { %420 = vmatpush1.bf16.msra.mxu0 %v609_v26 }
  0x38   : > { %421 = vmatprep.subr.bf16.mxu0 %v610_v27 }
  0x3b   : > { %422 = vmatpush1.bf16.msra.mxu0 %v612_v28 }
  0x3c   : > { %423 = vmatprep.subr.bf16.mxu0 %v613_v29 }
  0x3f   : > { %424 = vmatpush1.bf16.msra.mxu0 %v615_v30 }
  0x40   : > { %425 = vmatprep.subr.bf16.mxu0 %v616_v31 }
  0x43   : > { %426 = vmatpush1.bf16.msra.mxu0 %v618_v32 }
  0x46   : > { %428 = vmatmul.mubr.bf16.vlgmr.msra.gmra.mrb[0].mxu0 %v619_v33 }
 0x119   : > { %v429_v41 = vpop.f32.mrb[0].mxu0 }
 0x11a   : > { %v430_v42 = vadd.f32 %v429_v41, %v218_v39  ;;  %v431_v43 = vpop.f32.mrb[1].mxu0 }
 0x11b   : > { %v432_v44 = vadd.f32 %v431_v43, %v222_v40  ;;  %v433_v45 = vpop.f32.mrb[2].mxu0 }
 0x11c   : > { %v434_v46 = vadd.f32 %v433_v45, %v218_v39  ;;  %v435_v47 = vpop.f32.mrb[3].mxu0 }
 0x11d   : > { %v561_v48 = vpack.c.bf16 %v432_v44, %v430_v42  ;;  %v436_v49 = vadd.f32 %v435_v47, %v222_v40 }
 0x11f   : > { %450 = vst [vmem:[%s177_s13] sm:$0xff] %v561_v48  ;;  %v562_v50 = vpack.c.bf16 %v436_v49, %v434_v46 }
 0x121   : > { %451 = vst [vmem:[%s177_s13 + $0x8] sm:$0xff] %v562_v50 }
 0x122 PF: > { %s13_s12 = sadd.s32 1, %s628_s12  }
 0x123   : > { %p10_p4 = scmp.ge.s32.totalorder %s13_s12, 6  }
 0x125   :  { %12 = sbr.rel (!%p10_p4) target bundleno = 1 (0x1), region = 62 }

// kernel: modeling_layer_forward.6
= control target key start
LH: loop header
LB: loop body
LE: loop exit
PB: predicated region body
PF: predicated region fallthrough
CT: control target
= control target key end

     0   :  { %s441_s12 = smov 0   ;;  %s489_s0 = inlined_call_operand.vmem [shape: bf16[64,64], index: 0, kind: input, shape index: {}]   ;;  %s490_s1 = inlined_call_operand.vmem [shape: bf16[64,256], index: 1, kind: input, shape index: {}]   ;;  %s491_s2 = inlined_call_operand.vmem [shape: f32[1,256], index: 2, kind: input, shape index: {}]   ;;  %s492_s3 = inlined_call_operand.vmem [shape: bf16[64,256], index: 3, kind: output, shape index: {}]  }
   0x1 LB: > { %s363_s13 = sadd.s32 4294967295, %s418_s12   ;;  %p367_p0 = scmp.ge.s32.totalorder %s418_s12, 1  ;;  %s418_s12 = sphi %s441_s12, %s13_s12  }
   0x2   : > { %p138_p1 = scmp.lt.s32.totalorder %s418_s12, 5 }
   0x4   : > { %p139_p2 = pnand %p367_p0, %p138_p1 }
   0x5   : > { %v399_v0 = vld [vmem:[%s490_s1 + $0x4] ss:$8 sps:$4 sm:$0xff] (!%p139_p2)   ;;  %s368_s16 = sshll.u32 (!%p139_p2), %s363_s13, 1  ;;  %v401_v1 = vld [vmem:[%s490_s1] ss:$8 sps:$4 sm:$0xff] (!%p139_p2)   ;;  %v420_v2 = vmov (!%p139_p2), 0   ;;  %v189_v10 = vlaneseq (!%p139_p2) }
   0x6   : > { %142 = sbr.rel (%p139_p2) target bundleno = 242 (0xf2), region = 32  ;;  %280 = vmatprep.mubr.bf16.mxu0 (!%p139_p2), %v420_v2  ;;  %p164_p3 = scmp.lt.s32.totalorder (!%p139_p2), %s368_s16, 7  ;;  %248 = vmatprep.subr.bf16.mxu0 (!%p139_p2), %v399_v0  ;;  %v402_v3 = vld [vmem:[%s490_s1 + $0x14] ss:$8 sps:$4 sm:$0xff] (!%p139_p2)   ;;  %v404_v4 = vld [vmem:[%s490_s1 + $0x10] ss:$8 sps:$4 sm:$0xff] (!%p139_p2)  }
   0x7   : > { %249 = vmatpush1.bf16.msra.mxu0 (!%p139_p2), %v401_v1  ;;  %v405_v5 = vld [vmem:[%s490_s1 + $0x24] ss:$8 sps:$4 sm:$0xff] (!%p139_p2)   ;;  %v407_v6 = vld [vmem:[%s490_s1 + $0x20] ss:$8 sps:$4 sm:$0xff] (!%p139_p2)   ;;  %v408_v7 = vld [vmem:[%s490_s1 + $0x34] ss:$8 sps:$4 sm:$0xff] (!%p139_p2)  }
   0x8   : > { %250 = vmatprep.subr.bf16.mxu0 (!%p139_p2), %v402_v3  ;;  %v410_v8 = vld [vmem:[%s490_s1 + $0x30] ss:$8 sps:$4 sm:$0xff] (!%p139_p2)   ;;  %vm244_vm0 = vcmask (!%p139_p2), 523264   ;;  %v190_v11 = vshrl.u32 (!%p139_p2), %v189_v10, 7  ;;  %v187_v13 = vld [vmem:[%s491_s2] sm:$0x3] (!%p139_p2) }
   0xa   : > { %v191_v12 = vsub.s32 (!%p139_p2), 0, %v190_v11  ;;  %v195_v14 = vsub.s32 (!%p139_p2), 1, %v190_v11 }
   0xb   : > { %251 = vmatpush1.bf16.msra.mxu0 (!%p139_p2), %v404_v4 }
   0xc   : > { %252 = vmatprep.subr.bf16.mxu0 (!%p139_p2), %v405_v5  ;;  %v192_v15 = vrot.slane (!%p139_p2), %v187_v13, %v191_v12  ;;  %v196_v16 = vrot.slane (!%p139_p2), %v187_v13, %v195_v14 }
   0xd   : > { %s494_s16 = smov (!%p164_p3, %s368_s16), 7 }
   0xe   : > { %s369_s25 = sshll.u32 %s494_s16, 2  ;;  %s387_s10 = sshll.u32 %s494_s16, 3 }
   0xf   : > { %s167_s28 = scalar_lea.vmem %s489_s0, %s369_s25  ;;  %253 = vmatpush1.bf16.msra.mxu0 %v407_v6  ;;  %s174_s14 = scalar_lea.vmem %s492_s3, %s387_s10 }
  0x10   : > { %254 = vmatprep.subr.bf16.mxu0 %v408_v7  ;;  %v411_v9 = vld [vmem:[%s167_s28] sm:$0xff]  }
  0x13   : > { %255 = vmatpush1.bf16.msra.mxu0 %v410_v8 }
  0x16   : > { %382 = vmatmul.mubr.msk.bf16.vlgmr.msra.gmra.mrb[0].mxu0 %vm244_vm0, %v411_v9 }
  0xe9   : > { %v282_v17 = vpop.f32.mrb[0].mxu0 }
  0xea   : > { %v283_v18 = vadd.f32 %v282_v17, %v192_v15  ;;  %v284_v19 = vpop.f32.mrb[1].mxu0 }
  0xeb   : > { %v285_v20 = vadd.f32 %v284_v19, %v196_v16  ;;  %v286_v21 = vpop.f32.mrb[2].mxu0 }
  0xec   : > { %v287_v22 = vadd.f32 %v286_v21, %v192_v15  ;;  %v288_v23 = vpop.f32.mrb[3].mxu0 }
  0xed   : > { %v388_v24 = vpack.c.bf16 %v285_v20, %v283_v18  ;;  %v289_v25 = vadd.f32 %v288_v23, %v196_v16 }
  0xef   : > { %303 = vst [vmem:[%s174_s14] sm:$0xff] %v388_v24  ;;  %v389_v26 = vpack.c.bf16 %v289_v25, %v287_v22 }
  0xf1   : > { %304 = vst [vmem:[%s174_s14 + $0x8] sm:$0xff] %v389_v26 }
  0xf2 PF: > { %s13_s12 = sadd.s32 1, %s418_s12  }
  0xf3   : > { %p10_p4 = scmp.ge.s32.totalorder %s13_s12, 6  }
  0xf5   :  { %12 = sbr.rel (!%p10_p4) target bundleno = 1 (0x1), region = 62 }

// kernel: modeling_layer_forward.5
= control target key start
LH: loop header
LB: loop body
LE: loop exit
PB: predicated region body
PF: predicated region fallthrough
CT: control target
= control target key end

     0   :  { %s1904_s12 = smov 0   ;;  %s1906_s13 = smov 0   ;;  %s2231_s0 = inlined_call_operand.vmem [shape: bf16[8,8,256], index: 0, kind: input, shape index: {}, may-alias: {0,1}]   ;;  %s2232_s1 = inlined_call_operand.vmem [shape: bf16[8,8,256], index: 1, kind: input, shape index: {}, may-alias: {0,1}]   ;;  %s2233_s2 = inlined_call_operand.vmem [shape: f32[2,32,128], index: 2, kind: input, shape index: {}]   ;;  %s2234_s3 = inlined_call_operand.vmem [shape: bf16[8,8,64], index: 3, kind: output, shape index: {}]  }
   0x1   :  { %s1908_s14 = smov 0   ;;  %s1910_s15 = smov 0  }
   0x2   :  { %s1912_s16 = smov 0  }
   0x3 LB: > { %s1930_s17 = sadd.s32 4294967295, %s1875_s16   ;;  %s1933_s18 = sadd.s32 1, %s1875_s16   ;;  %s1875_s16 = sphi %s1912_s16, %s2240_s16   ;;  %s1871_s15 = sphi %s1910_s15, %s2239_s15   ;;  %s1867_s14 = sphi %s1908_s14, %s2238_s14   ;;  %s1863_s13 = sphi %s1906_s13, %s2237_s13   ;;  %s1859_s12 = sphi %s1904_s12, %s2236_s12  }
   0x4   : > { %s17_s19 = ssub.s32 %s1875_s16, %s1933_s18  ;;  %s20_s20 = sadd.s32 1, %s1871_s15 }
   0x5   : > { %p18_p0 = scmp.eq.s32.totalorder %s17_s19, 0  ;;  %p27_p1 = scmp.ne.s32.totalorder %s1871_s15, %s1867_s14 }
   0x6   : > { %p28_p2 = scmp.eq.s32.totalorder %s1875_s16, 0  ;;  %s43_s21 = ssub.s32 1, %s1875_s16 }
   0x7   : > { %s1943_s22 = scalar_select %p18_p0, %s1871_s15, %s20_s20  }
   0x8   : > { %p29_p3 = por %p28_p2, %p27_p1  ;;  %s44_s23 = ssub.s32 1, %s1933_s18 }
   0x9   : > { %s45_s24 = ssub.s32 %s43_s21, %s44_s23  ;;  %s48_s25 = sadd.s32 1, %s1863_s13 }
   0xa   : > { %p46_p4 = scmp.eq.s32.totalorder %s45_s24, 0  ;;  %p55_p5 = scmp.ne.s32.totalorder %s1863_s13, %s1859_s12 }
   0xb   : > { %p1445_p7 = scmp.ge.s32.totalorder %s1875_s16, 2 }
   0xc   : > { %s1950_s26 = scalar_select %p46_p4, %s1863_s13, %s48_s25  }
   0xd   : > { %p1952_p6 = por %p55_p5, %p28_p2  ;;  %126 = sbr.rel (%p1445_p7) target bundleno = 34 (0x22), region = 20 }
  0x14   : > { %129 = sbr.rel (!%p29_p3) target bundleno = 27 (0x1b), region = 24  ;;  %s131_s28 = sand.u32 (%p29_p3), 1, %s1871_s15  }
  0x15   : > { %s1532_s29 = sshll.u32 (%p29_p3), %s1875_s16, 5  ;;  %s1446_s30 = sshll.u32 (%p29_p3), %s131_s28, 4 }
  0x16   : > { %s137_s6 = scalar_lea.vmem (%p29_p3), %s2231_s0, %s1532_s29  ;;  %s133_s7 = scalar_lea.vmem (%p29_p3), [#allocation6], %s1446_s30 }
  0x17   : > { %v153_v0 = vld [vmem:[%s137_s6] sm:$0xf] (%p29_p3)  ;;  %v155_v1 = vld [vmem:[%s137_s6 + $0x8] sm:$0xf] (%p29_p3)  ;;  %v157_v2 = vld [vmem:[%s137_s6 + $0x10] sm:$0xf] (%p29_p3) }
  0x18   : > { %154 = vst [vmem:[%s133_s7] sm:$0xf] (%p29_p3), %v153_v0  ;;  %156 = vst [vmem:[%s133_s7 + $0x4] sm:$0xf] (%p29_p3), %v155_v1  ;;  %v159_v3 = vld [vmem:[%s137_s6 + $0x18] sm:$0xf] (%p29_p3) }
  0x19   : > { %158 = vst [vmem:[%s133_s7 + $0x8] sm:$0xf] (%p29_p3), %v157_v2  ;;  %160 = vst [vmem:[%s133_s7 + $0xc] sm:$0xf] (%p29_p3), %v159_v3 }
  0x1b PF: > { %191 = sbr.rel (!%p1952_p6) target bundleno = 34 (0x22), region = 65  ;;  %s193_s8 = sand.u32 (%p1952_p6), 1, %s1863_s13  }
  0x1c   : > { %s1533_s9 = sshll.u32 (%p1952_p6), %s43_s21, 5  ;;  %s1450_s10 = sshll.u32 (%p1952_p6), %s193_s8, 4 }
  0x1d   : > { %s1380_s20 = scalar_lea.vmem (%p1952_p6), %s2232_s1, %s1533_s9  ;;  %s195_s23 = scalar_lea.vmem (%p1952_p6), [#allocation7], %s1450_s10 }
  0x1e   : > { %v1453_v4 = vld [vmem:[%s1380_s20 + $0x4] sm:$0xf] (%p1952_p6)  ;;  %v1454_v5 = vld [vmem:[%s1380_s20 + $0xc] sm:$0xf] (%p1952_p6)  ;;  %v1455_v6 = vld [vmem:[%s1380_s20 + $0x14] sm:$0xf] (%p1952_p6) }
  0x1f   : > { %218 = vst [vmem:[%s195_s23] sm:$0xf] (%p1952_p6), %v1453_v4  ;;  %220 = vst [vmem:[%s195_s23 + $0x4] sm:$0xf] (%p1952_p6), %v1454_v5  ;;  %v1456_v7 = vld [vmem:[%s1380_s20 + $0x1c] sm:$0xf] (%p1952_p6) }
  0x20   : > { %222 = vst [vmem:[%s195_s23 + $0x8] sm:$0xf] (%p1952_p6), %v1455_v6  ;;  %224 = vst [vmem:[%s195_s23 + $0xc] sm:$0xf] (%p1952_p6), %v1456_v7 }
  0x22 PF: > { %p1457_p8 = scmp.ge.s32.totalorder %s1875_s16, 1  ;;  %p254_p9 = scmp.lt.s32.totalorder %s1875_s16, 3 }
  0x24   : > { %p255_p10 = pnand %p1457_p8, %p254_p9 }
  0x25   : > { %s261_s21 = sand.u32 (!%p255_p10), 1, %s1867_s14   ;;  %s268_s24 = sand.u32 (!%p255_p10), 1, %s1859_s12  }
  0x26   : > { %258 = sbr.rel (%p255_p10) target bundleno = 2903 (0xb57), region = 106  ;;  %s1972_s25 = sshll.u32 (!%p255_p10), %s261_s21, 4 }
  0x27   : > { %s1974_s27 = sshll.u32 (!%p255_p10), %s268_s24, 4  ;;  %s263_s28 = scalar_lea.vmem (!%p255_p10), [#allocation6], %s1972_s25 }
  0x28   : > { %s270_s29 = scalar_lea.vmem (!%p255_p10), [#allocation7], %s1974_s27  ;;  %p1460_p11 = scmp.ne.s32.totalorder (!%p255_p10), %s1930_s17, 0 }
  0x2d   : > { %296 = sbr.rel (%p1460_p11) target bundleno = 52 (0x34), region = 118  ;;  %vm297_vm0 = vcmask (!%p1460_p11), 261120   ;;  %v1877_v8 = vmov (!%p1460_p11), 0.0  }
  0x2e   : > { %298 = vst.msk [vmem:[#allocation2] sm:$0xff] (!%p1460_p11), %vm297_vm0, %v1877_v8  ;;  %299 = vst.msk [vmem:[#allocation3] sm:$0xff] (!%p1460_p11), %vm297_vm0, %v1877_v8 }
  0x2f   : > { %300 = vst.msk [vmem:[#allocation4] sm:$0xff] (!%p1460_p11), %vm297_vm0, %v1877_v8  ;;  %301 = vst.msk [vmem:[#allocation5] sm:$0xff] (!%p1460_p11), %vm297_vm0, %v1877_v8 }
  0x34 PF: > { %v308_v9 = vld [vmem:[%s2233_s2] sm:$0xff]  ;;  %v309_v10 = vld [vmem:[%s2233_s2 + $0x8] sm:$0xff]  ;;  %v1878_v12 = vmov 0.0|0.0   ;;  %v310_v15 = vld [vmem:[%s2233_s2 + $0x10] sm:$0xff]  ;;  %vm1879_vm1 = vmmov 0   ;;  %v1880_v18 = vmov 0.0  }
  0x35   : > { %v1468_v11 = vld [vmem:[%s2233_s2 + $0x20] sm:$0xff]  ;;  %1678 = vmatprep.subr.bf16.mxu0 %v1878_v12  ;;  %v1989_v13 = vpack.c.bf16 %v309_v10, %v308_v9  ;;  %1684 = vmatprep.subr.bf16.mxu1 %v1878_v12  ;;  %v1469_v14 = vld [vmem:[%s2233_s2 + $0x28] sm:$0xff]  ;;  %v311_v16 = vld [vmem:[%s2233_s2 + $0x18] sm:$0xff]  ;;  %s1881_s24 = smov 32   ;;  %vm312_vm2 = vcmask 261120   ;;  %s1882_s14 = smov 64  }
  0x36   : > { %v2001_v17 = vpack.c.bf16 %v1469_v14, %v1468_v11  ;;  %1598 = vmatprep.mubr.msk.f32.mxu0 %vm1879_vm1, %v1880_v18  ;;  %v1470_v19 = vld [vmem:[%s2233_s2 + $0x30] sm:$0xff]  ;;  %v1471_v20 = vld [vmem:[%s2233_s2 + $0x38] sm:$0xff]  ;;  %1609 = vmatprep.mubr.msk.f32.mxu1 %vm1879_vm1, %v1880_v18  ;;  %v2014_v21 = vpack.c.bf16 %v311_v16, %v310_v15  ;;  %v387_v22 = vld [vmem:[#allocation3] sm:$0xff]  ;;  %s1883_s12 = smov 96   ;;  %s1535_s25 = sshll.u32 %s1930_s17, 4  ;;  %vm435_vm3 = vcmask 257024  }
  0x37   : > { %1680 = vmatpush3.bf16.msra.mxu0 %v1989_v13  ;;  %v2018_v23 = vpack.c.bf16 %v1471_v20, %v1470_v19  ;;  %396 = vrot.lane.b32.xlu1 %v387_v22, %s1881_s24  ;;  %v520_v24 = vld [vmem:[#allocation5] sm:$0xff]  ;;  %v307_v25 = vld [vmem:[#allocation2] sm:$0xff]  ;;  %v440_v26 = vld [vmem:[#allocation4] sm:$0xff]  ;;  %s303_s27 = ssub.s32 1, %s1930_s17  ;;  %s2189_s16 = scalar_lea.vmem %s2234_s3, %s1535_s25  ;;  %vm569_vm4 = vcmask 519424  }
  0x38   : > { %1681 = vmatprep.subr.bf16.mxu0 %v1878_v12  ;;  %1686 = vmatpush3.bf16.msra.mxu1 %v2001_v17  ;;  %v2043_v27 = vld [vmem:[%s263_s28] sm:$0xff]   ;;  %v2047_v28 = vld [vmem:[%s270_s29 + $0x8] sm:$0xff]   ;;  %s1537_s30 = sshll.u32 %s303_s27, 4 }
  0x39   : > { %1687 = vmatprep.subr.bf16.mxu1 %v1878_v12  ;;  %v306_v29 = vunpack.c.l.bf16 %v2043_v27  ;;  %v439_v30 = vunpack.c.h.bf16 %v2047_v28  ;;  %v573_v7 = vunpack.c.h.bf16 %v2043_v27  ;;  %v705_v11 = vunpack.c.l.bf16 %v2047_v28  ;;  %s1394_s5 = scalar_lea.vmem %s2234_s3, %s1537_s30 }
  0x3b   : > { %1683 = vmatpush3.bf16.msra.mxu0 %v2014_v21  ;;  %529 = vrot.lane.b32.xlu1 %v520_v24, %s1881_s24 }
  0x3c   : > { %1689 = vmatpush3.bf16.msra.mxu1 %v2018_v23  ;;  %1690 = vmatprep.subr.bf16.mxu0 %v1878_v12 }
  0x3d   : > { %1696 = vmatprep.subr.bf16.mxu1 %v1878_v12 }
  0x3e   : > { %1599 = vmatmul.mubr.msk.f32.vlgmr.msra.gmra.mrb[0].mxu0 %vm312_vm2, %v307_v25 }
  0x3f   : > { %1610 = vmatmul.mubr.msk.f32.vlgmr.msra.gmra.mrb[0].mxu1 %vm312_vm2, %v440_v26  ;;  %1692 = vmatpush3.bf16.msra.mxu0 %v1989_v13 }
  0x40   : > { %1693 = vmatprep.subr.bf16.mxu0 %v1878_v12  ;;  %1698 = vmatpush3.bf16.msra.mxu1 %v2001_v17 }
  0x41   : > { %1620 = vmatprep.mubr.msk.f32.mxu0 %vm1879_vm1, %v1880_v18  ;;  %1699 = vmatprep.subr.bf16.mxu1 %v1878_v12 }
  0x42   : > { %1631 = vmatprep.mubr.msk.f32.mxu1 %vm1879_vm1, %v1880_v18 }
  0x43   : > { %1695 = vmatpush3.bf16.msra.mxu0 %v2014_v21 }
  0x44   : > { %1701 = vmatpush3.bf16.msra.mxu1 %v2018_v23  ;;  %1702 = vmatprep.subr.bf16.mxu0 %v1878_v12 }
  0x45   : > { %1708 = vmatprep.subr.bf16.mxu1 %v1878_v12 }
  0xa9   : > { %v397_v51 = vpop.permute.xlu1 %396 }
  0xad   : > { %v530_v53 = vpop.permute.xlu1 %529 }
 0x111   : > { %v382_v31 = vpop.f32.mrb[0].mxu0 }
 0x112   : > { %v386_v32 = vadd.f32 %v382_v31, %v306_v29  ;;  %v1600_v33 = vpop.f32.mrb[1].mxu0  ;;  %v515_v34 = vpop.f32.mrb[0].mxu1 }
 0x113   : > { %v519_v35 = vadd.f32 %v515_v34, %v439_v30  ;;  %v1611_v36 = vpop.f32.mrb[1].mxu1 }
 0x114   : > { %1773 = vtanh.f32 %v386_v32  ;;  %v1464_v39 = vmul.f32 -1.442695, %v386_v32 }
 0x115   : > { %1775 = vtanh.f32 %v519_v35  ;;  %v1473_v40 = vmul.f32 -1.442695, %v519_v35 }
 0x116   : > { %1777 = vpow2.f32 %v1464_v39 }
 0x117   : > { %1779 = vpow2.f32 %v1473_v40 }
 0x11e   : > { %v1774_v37 = vpop.eup %1773 }
 0x11f   : > { %401 = vrot.lane.b32.xlu0 %v1774_v37, %s1882_s14  ;;  %v1776_v38 = vpop.eup %1775 }
 0x120   : > { %v1778_v41 = vpop.eup %1777 }
 0x121   : > { %v391_v42 = vadd.f32 1.0, %v1778_v41  ;;  %v1780_v43 = vpop.eup %1779 }
 0x122   : > { %v524_v44 = vadd.f32 1.0, %v1780_v43 }
 0x123   : > { %534 = vrot.lane.b32.xlu0 %v1776_v38, %s1882_s14  ;;  %1781 = vrcp.f32 %v391_v42 }
 0x124   : > { %1783 = vrcp.f32 %v524_v44 }
 0x12d   : > { %v1782_v45 = vpop.eup %1781 }
 0x12e   : > { %v1784_v48 = vpop.eup %1783  ;;  %v399_v52 = vmul.f32 %v1782_v45, %v397_v51 }
 0x12f   : > { %v532_v56 = vmul.f32 %v1784_v48, %v530_v53 }
 0x191   : > { %v402_v46 = vpop.permute.xlu0 %401 }
 0x192   : > { %v404_v47 = vmul.f32 %v1782_v45, %v402_v46 }
 0x194   : > { %406 = vrot.lane.b32.xlu0 %v404_v47, %s1881_s24 }
 0x195   : > { %v535_v49 = vpop.permute.xlu0 %534 }
 0x196   : > { %v537_v50 = vmul.f32 %v1784_v48, %v535_v49 }
 0x198   : > { %539 = vrot.lane.b32.xlu1 %v537_v50, %s1881_s24 }
 0x206   : > { %v407_v54 = vpop.permute.xlu0 %406 }
 0x207   : > { %v409_v55 = vadd.f32 %v407_v54, %v399_v52 }
 0x209   : > { %1785 = vtanh.f32 %v409_v55 }
 0x20a   : > { %v540_v57 = vpop.permute.xlu1 %539 }
 0x20b   : > { %v542_v58 = vadd.f32 %v540_v57, %v532_v56 }
 0x20d   : > { %1787 = vtanh.f32 %v542_v58 }
 0x213   : > { %v1786_v59 = vpop.eup %1785 }
 0x214   : > { %412 = vrot.lane.b32.xlu0 %v1786_v59, %s1882_s14 }
 0x217   : > { %v1788_v60 = vpop.eup %1787 }
 0x218   : > { %545 = vrot.lane.b32.xlu1 %v1788_v60, %s1882_s14 }
 0x286   : > { %v413_v61 = vpop.permute.xlu0 %412 }
 0x287   : > { %v2057_v62 = vmul.f32 %v1782_v45, %v413_v61 }
 0x289   : > { %417 = vrot.lane.b32.xlu0 %v2057_v62, %s1881_s24 }
 0x28a   : > { %v546_v63 = vpop.permute.xlu1 %545 }
 0x28b   : > { %v2061_v0 = vmul.f32 %v1784_v48, %v546_v63 }
 0x28d   : > { %550 = vrot.lane.b32.xlu1 %v2061_v0, %s1881_s24  ;;  %422 = vrot.lane.b32.xlu0 %v409_v55, %s1883_s12 }
 0x291   : > { %555 = vrot.lane.b32.xlu1 %v542_v58, %s1883_s12  ;;  %v2128_v58 = vld [vmem:[%s270_s29] sm:$0xff]  }
 0x2fb   : > { %v418_v1 = vpop.permute.xlu0 %417 }
 0x2fc   : > { %420 = vst.msk [vmem:[#allocation2] sm:$0xff] %vm312_vm2, %v418_v1 }
 0x2ff   : > { %v551_v2 = vpop.permute.xlu1 %550  ;;  %v423_v3 = vpop.permute.xlu0 %422 }
 0x300   : > { %553 = vst.msk [vmem:[#allocation4] sm:$0xff] %vm312_vm2, %v551_v2  ;;  %425 = vst.msk [vmem:[#allocation3] sm:$0xff] %vm312_vm2, %v423_v3 }
 0x303   : > { %v556_v4 = vpop.permute.xlu1 %555  ;;  %v574_v5 = vld [vmem:[#allocation2] sm:$0xff] }
 0x304   : > { %558 = vst.msk [vmem:[#allocation5] sm:$0xff] %vm312_vm2, %v556_v4  ;;  %1621 = vmatmul.mubr.msk.f32.vlgmr.msra.gmra.mrb[2].mxu0 %vm312_vm2, %v574_v5 }
 0x305   : > { %1704 = vmatpush3.bf16.msra.mxu0 %v1989_v13  ;;  %1642 = vmatprep.mubr.msk.f32.mxu0 %vm1879_vm1, %v1880_v18 }
 0x306   : > { %1705 = vmatprep.subr.bf16.mxu0 %v1878_v12 }
 0x307   : > { %v706_v6 = vld [vmem:[#allocation4] sm:$0xff]  ;;  %v653_v22 = vld [vmem:[#allocation3] sm:$0xff] }
 0x308   : > { %1632 = vmatmul.mubr.msk.f32.vlgmr.msra.gmra.mrb[2].mxu1 %vm312_vm2, %v706_v6 }
 0x309   : > { %1707 = vmatpush3.bf16.msra.mxu0 %v2014_v21  ;;  %1710 = vmatpush3.bf16.msra.mxu1 %v2001_v17 }
 0x30a   : > { %1711 = vmatprep.subr.bf16.mxu1 %v1878_v12  ;;  %1653 = vmatprep.mubr.msk.f32.mxu1 %vm1879_vm1, %v1880_v18 }
 0x30b   : > { %1714 = vmatprep.subr.bf16.mxu0 %v1878_v12  ;;  %v785_v24 = vld [vmem:[#allocation5] sm:$0xff] }
 0x30d   : > { %1713 = vmatpush3.bf16.msra.mxu1 %v2018_v23 }
 0x30e   : > { %1720 = vmatprep.subr.bf16.mxu1 %v1878_v12 }
 0x3d7   : > { %v648_v8 = vpop.f32.mrb[2].mxu0 }
 0x3d8   : > { %v652_v9 = vadd.f32 %v648_v8, %v573_v7  ;;  %v1622_v10 = vpop.f32.mrb[3].mxu0 }
 0x3da   : > { %1789 = vtanh.f32 %v652_v9  ;;  %v1480_v25 = vmul.f32 -1.442695, %v652_v9 }
 0x3db   : > { %v780_v14 = vpop.f32.mrb[2].mxu1 }
 0x3dc   : > { %v784_v15 = vadd.f32 %v780_v14, %v705_v11  ;;  %v1633_v16 = vpop.f32.mrb[3].mxu1 }
 0x3de   : > { %1791 = vtanh.f32 %v784_v15  ;;  %v1491_v26 = vmul.f32 -1.442695, %v784_v15 }
 0x3df   : > { %1793 = vpow2.f32 %v1480_v25 }
 0x3e0   : > { %1795 = vpow2.f32 %v1491_v26 }
 0x3e4   : > { %v1790_v19 = vpop.eup %1789 }
 0x3e5   : > { %667 = vrot.lane.b32.xlu0 %v1790_v19, %s1882_s14 }
 0x3e8   : > { %v1792_v20 = vpop.eup %1791 }
 0x3e9   : > { %799 = vrot.lane.b32.xlu1 %v1792_v20, %s1882_s14  ;;  %662 = vrot.lane.b32.xlu0 %v653_v22, %s1881_s24  ;;  %v1794_v27 = vpop.eup %1793 }
 0x3ea   : > { %v657_v28 = vadd.f32 1.0, %v1794_v27  ;;  %v1796_v29 = vpop.eup %1795 }
 0x3eb   : > { %v789_v30 = vadd.f32 1.0, %v1796_v29 }
 0x3ec   : > { %1797 = vrcp.f32 %v657_v28 }
 0x3ed   : > { %794 = vrot.lane.b32.xlu1 %v785_v24, %s1881_s24  ;;  %1799 = vrcp.f32 %v789_v30 }
 0x3f6   : > { %v1798_v31 = vpop.eup %1797 }
 0x3f7   : > { %v1800_v34 = vpop.eup %1799 }
 0x457   : > { %v668_v32 = vpop.permute.xlu0 %667 }
 0x458   : > { %v670_v33 = vmul.f32 %v1798_v31, %v668_v32 }
 0x45a   : > { %672 = vrot.lane.b32.xlu0 %v670_v33, %s1881_s24 }
 0x45b   : > { %v800_v35 = vpop.permute.xlu1 %799  ;;  %v663_v37 = vpop.permute.xlu0 %662 }
 0x45c   : > { %v802_v36 = vmul.f32 %v1800_v34, %v800_v35  ;;  %v665_v38 = vmul.f32 %v1798_v31, %v663_v37 }
 0x45e   : > { %804 = vrot.lane.b32.xlu1 %v802_v36, %s1881_s24 }
 0x45f   : > { %v795_v39 = vpop.permute.xlu1 %794 }
 0x460   : > { %v797_v42 = vmul.f32 %v1800_v34, %v795_v39 }
 0x4cc   : > { %v673_v40 = vpop.permute.xlu0 %672 }
 0x4cd   : > { %v675_v41 = vadd.f32 %v673_v40, %v665_v38 }
 0x4cf   : > { %1801 = vtanh.f32 %v675_v41 }
 0x4d0   : > { %v805_v43 = vpop.permute.xlu1 %804 }
 0x4d1   : > { %v807_v44 = vadd.f32 %v805_v43, %v797_v42 }
 0x4d3   : > { %1803 = vtanh.f32 %v807_v44 }
 0x4d9   : > { %v1802_v45 = vpop.eup %1801 }
 0x4da   : > { %678 = vrot.lane.b32.xlu0 %v1802_v45, %s1882_s14  ;;  %v1232_v45 = vunpack.c.l.bf16 %v2128_v58 }
 0x4dd   : > { %v1804_v46 = vpop.eup %1803 }
 0x4de   : > { %810 = vrot.lane.b32.xlu1 %v1804_v46, %s1882_s14 }
 0x54c   : > { %v679_v47 = vpop.permute.xlu0 %678 }
 0x54d   : > { %v2095_v48 = vmul.f32 %v1798_v31, %v679_v47 }
 0x54f   : > { %683 = vrot.lane.b32.xlu0 %v2095_v48, %s1881_s24 }
 0x550   : > { %v811_v49 = vpop.permute.xlu1 %810 }
 0x551   : > { %v2099_v50 = vmul.f32 %v1800_v34, %v811_v49 }
 0x553   : > { %815 = vrot.lane.b32.xlu1 %v2099_v50, %s1881_s24  ;;  %688 = vrot.lane.b32.xlu0 %v675_v41, %s1883_s12 }
 0x557   : > { %820 = vrot.lane.b32.xlu1 %v807_v44, %s1883_s12 }
 0x5c1   : > { %v684_v51 = vpop.permute.xlu0 %683 }
 0x5c2   : > { %686 = vst.msk [vmem:[#allocation2] sm:$0xff] %vm312_vm2, %v684_v51 }
 0x5c5   : > { %v816_v52 = vpop.permute.xlu1 %815  ;;  %v689_v53 = vpop.permute.xlu0 %688 }
 0x5c6   : > { %818 = vst.msk [vmem:[#allocation4] sm:$0xff] %vm312_vm2, %v816_v52  ;;  %691 = vst.msk [vmem:[#allocation3] sm:$0xff] %vm312_vm2, %v689_v53 }
 0x5c9   : > { %v821_v54 = vpop.permute.xlu1 %820  ;;  %v838_v55 = vld [vmem:[#allocation2] sm:$0xff] }
 0x5ca   : > { %823 = vst.msk [vmem:[#allocation5] sm:$0xff] %vm312_vm2, %v821_v54  ;;  %1643 = vmatmul.mubr.msk.f32.vlgmr.msra.gmra.mrb[4].mxu0 %vm312_vm2, %v838_v55 }
 0x5cb   : > { %1716 = vmatpush3.bf16.msra.mxu0 %v1989_v13  ;;  %1664 = vmatprep.mubr.msk.f32.mxu0 %vm1879_vm1, %v1880_v18  ;;  %v2123_v13 = vld [vmem:[%s263_s28 + $0x8] sm:$0xff]  }
 0x5cc   : > { %1717 = vmatprep.subr.bf16.mxu0 %v1878_v12  ;;  %v837_v57 = vunpack.c.l.bf16 %v2123_v13  ;;  %v1101_v41 = vunpack.c.h.bf16 %v2123_v13 }
 0x5cd   : > { %v970_v56 = vld [vmem:[#allocation4] sm:$0xff]  ;;  %v917_v1 = vld [vmem:[#allocation3] sm:$0xff] }
 0x5ce   : > { %1654 = vmatmul.mubr.msk.f32.vlgmr.msra.gmra.mrb[4].mxu1 %vm312_vm2, %v970_v56 }
 0x5cf   : > { %1719 = vmatpush3.bf16.msra.mxu0 %v2014_v21  ;;  %1722 = vmatpush3.bf16.msra.mxu1 %v2001_v17  ;;  %v969_v17 = vunpack.c.h.bf16 %v2128_v58 }
 0x5d0   : > { %1723 = vmatprep.subr.bf16.mxu1 %v1878_v12  ;;  %1675 = vmatprep.mubr.msk.f32.mxu1 %vm1879_vm1, %v1880_v18 }
 0x5d1   : > { %v1049_v2 = vld [vmem:[#allocation5] sm:$0xff] }
 0x5d3   : > { %1725 = vmatpush3.bf16.msra.mxu1 %v2018_v23 }
 0x69d   : > { %v912_v59 = vpop.f32.mrb[4].mxu0 }
 0x69e   : > { %v916_v60 = vadd.f32 %v912_v59, %v837_v57  ;;  %v1644_v21 = vpop.f32.mrb[5].mxu0 }
 0x6a0   : > { %1805 = vtanh.f32 %v916_v60  ;;  %v1498_v3 = vmul.f32 -1.442695, %v916_v60 }
 0x6a1   : > { %v1044_v12 = vpop.f32.mrb[4].mxu1 }
 0x6a2   : > { %v1048_v61 = vadd.f32 %v1044_v12, %v969_v17  ;;  %v1655_v63 = vpop.f32.mrb[5].mxu1 }
 0x6a4   : > { %1807 = vtanh.f32 %v1048_v61  ;;  %v1509_v4 = vmul.f32 -1.442695, %v1048_v61 }
 0x6a5   : > { %1809 = vpow2.f32 %v1498_v3 }
 0x6a6   : > { %1811 = vpow2.f32 %v1509_v4 }
 0x6aa   : > { %v1806_v18 = vpop.eup %1805 }
 0x6ab   : > { %931 = vrot.lane.b32.xlu0 %v1806_v18, %s1882_s14 }
 0x6ae   : > { %v1808_v23 = vpop.eup %1807 }
 0x6af   : > { %1063 = vrot.lane.b32.xlu1 %v1808_v23, %s1882_s14  ;;  %926 = vrot.lane.b32.xlu0 %v917_v1, %s1881_s24  ;;  %v1810_v5 = vpop.eup %1809 }
 0x6b0   : > { %v921_v6 = vadd.f32 1.0, %v1810_v5  ;;  %v1812_v7 = vpop.eup %1811 }
 0x6b1   : > { %v1053_v8 = vadd.f32 1.0, %v1812_v7 }
 0x6b2   : > { %1813 = vrcp.f32 %v921_v6 }
 0x6b3   : > { %1058 = vrot.lane.b32.xlu1 %v1049_v2, %s1881_s24  ;;  %1815 = vrcp.f32 %v1053_v8  ;;  %v1534_v8 = vpack.c.bf16 %v2057_v62, %v2057_v62 }
 0x6bc   : > { %v1814_v9 = vpop.eup %1813 }
 0x6bd   : > { %v1816_v14 = vpop.eup %1815 }
 0x71d   : > { %v932_v10 = vpop.permute.xlu0 %931 }
 0x71e   : > { %v934_v11 = vmul.f32 %v1814_v9, %v932_v10  ;;  %v1536_v10 = vpack.c.bf16 %v2061_v0, %v2061_v0 }
 0x720   : > { %936 = vrot.lane.b32.xlu0 %v934_v11, %s1881_s24  ;;  %v1538_v11 = vpack.c.bf16 %v2095_v48, %v2095_v48 }
 0x721   : > { %v1064_v15 = vpop.permute.xlu1 %1063  ;;  %v927_v19 = vpop.permute.xlu0 %926 }
 0x722   : > { %v1066_v16 = vmul.f32 %v1816_v14, %v1064_v15  ;;  %v929_v20 = vmul.f32 %v1814_v9, %v927_v19 }
 0x724   : > { %1068 = vrot.lane.b32.xlu1 %v1066_v16, %s1881_s24 }
 0x725   : > { %v1059_v22 = vpop.permute.xlu1 %1058 }
 0x726   : > { %v1061_v26 = vmul.f32 %v1816_v14, %v1059_v22 }
 0x792   : > { %v937_v24 = vpop.permute.xlu0 %936 }
 0x793   : > { %v939_v25 = vadd.f32 %v937_v24, %v929_v20 }
 0x795   : > { %1817 = vtanh.f32 %v939_v25 }
 0x796   : > { %v1069_v27 = vpop.permute.xlu1 %1068 }
 0x797   : > { %v1071_v28 = vadd.f32 %v1069_v27, %v1061_v26 }
 0x799   : > { %1819 = vtanh.f32 %v1071_v28 }
 0x79f   : > { %v1818_v29 = vpop.eup %1817 }
 0x7a0   : > { %942 = vrot.lane.b32.xlu0 %v1818_v29, %s1882_s14 }
 0x7a3   : > { %v1820_v30 = vpop.eup %1819 }
 0x7a4   : > { %1074 = vrot.lane.b32.xlu1 %v1820_v30, %s1882_s14 }
 0x812   : > { %v943_v31 = vpop.permute.xlu0 %942 }
 0x813   : > { %v2139_v32 = vmul.f32 %v1814_v9, %v943_v31 }
 0x815   : > { %947 = vrot.lane.b32.xlu0 %v2139_v32, %s1881_s24  ;;  %v1542_v62 = vpack.c.bf16 %v2139_v32, %v2139_v32 }
 0x816   : > { %v1075_v33 = vpop.permute.xlu1 %1074 }
 0x817   : > { %v2143_v34 = vmul.f32 %v1816_v14, %v1075_v33  ;;  %v1540_v14 = vpack.c.bf16 %v2099_v50, %v2099_v50 }
 0x819   : > { %1079 = vrot.lane.b32.xlu1 %v2143_v34, %s1881_s24  ;;  %952 = vrot.lane.b32.xlu0 %v939_v25, %s1883_s12  ;;  %v1544_v0 = vpack.c.bf16 %v2143_v34, %v2143_v34 }
 0x81d   : > { %1084 = vrot.lane.b32.xlu1 %v1071_v28, %s1883_s12 }
 0x887   : > { %v948_v35 = vpop.permute.xlu0 %947 }
 0x888   : > { %950 = vst.msk [vmem:[#allocation2] sm:$0xff] %vm312_vm2, %v948_v35 }
 0x88b   : > { %v1080_v36 = vpop.permute.xlu1 %1079  ;;  %v953_v37 = vpop.permute.xlu0 %952 }
 0x88c   : > { %1082 = vst.msk [vmem:[#allocation4] sm:$0xff] %vm312_vm2, %v1080_v36  ;;  %955 = vst.msk [vmem:[#allocation3] sm:$0xff] %vm312_vm2, %v953_v37 }
 0x88f   : > { %v1085_v38 = vpop.permute.xlu1 %1084  ;;  %v1102_v39 = vld [vmem:[#allocation2] sm:$0xff] }
 0x890   : > { %1087 = vst.msk [vmem:[#allocation5] sm:$0xff] %vm312_vm2, %v1085_v38  ;;  %1665 = vmatmul.mubr.msk.f32.vlgmr.msra.gmra.mrb[6].mxu0 %vm312_vm2, %v1102_v39 }
 0x893   : > { %v1233_v40 = vld [vmem:[#allocation4] sm:$0xff]  ;;  %v1181_v53 = vld [vmem:[#allocation3] sm:$0xff] }
 0x894   : > { %1676 = vmatmul.mubr.msk.f32.vlgmr.msra.gmra.mrb[6].mxu1 %vm312_vm2, %v1233_v40 }
 0x897   : > { %v1312_v54 = vld [vmem:[#allocation5] sm:$0xff] }
 0x963   : > { %v1176_v42 = vpop.f32.mrb[6].mxu0 }
 0x964   : > { %v1180_v43 = vadd.f32 %v1176_v42, %v1101_v41  ;;  %v1666_v44 = vpop.f32.mrb[7].mxu0 }
 0x966   : > { %1821 = vtanh.f32 %v1180_v43  ;;  %v1516_v55 = vmul.f32 -1.442695, %v1180_v43 }
 0x967   : > { %v1307_v46 = vpop.f32.mrb[6].mxu1 }
 0x968   : > { %v1311_v47 = vadd.f32 %v1307_v46, %v1232_v45  ;;  %v1677_v49 = vpop.f32.mrb[7].mxu1 }
 0x96a   : > { %1823 = vtanh.f32 %v1311_v47  ;;  %v1526_v56 = vmul.f32 -1.442695, %v1311_v47 }
 0x96b   : > { %1825 = vpow2.f32 %v1516_v55 }
 0x96c   : > { %1827 = vpow2.f32 %v1526_v56 }
 0x970   : > { %v1822_v51 = vpop.eup %1821 }
 0x971   : > { %1195 = vrot.lane.b32.xlu0 %v1822_v51, %s1882_s14 }
 0x974   : > { %v1824_v52 = vpop.eup %1823 }
 0x975   : > { %1326 = vrot.lane.b32.xlu1 %v1824_v52, %s1882_s14  ;;  %1190 = vrot.lane.b32.xlu0 %v1181_v53, %s1881_s24  ;;  %v1826_v13 = vpop.eup %1825 }
 0x976   : > { %v1185_v57 = vadd.f32 1.0, %v1826_v13  ;;  %v1828_v58 = vpop.eup %1827 }
 0x977   : > { %v1316_v59 = vadd.f32 1.0, %v1828_v58 }
 0x978   : > { %1829 = vrcp.f32 %v1185_v57 }
 0x979   : > { %1321 = vrot.lane.b32.xlu1 %v1312_v54, %s1881_s24  ;;  %1831 = vrcp.f32 %v1316_v59 }
 0x982   : > { %v1830_v60 = vpop.eup %1829 }
 0x983   : > { %v1832_v12 = vpop.eup %1831 }
 0x9e3   : > { %v1196_v21 = vpop.permute.xlu0 %1195 }
 0x9e4   : > { %v1198_v17 = vmul.f32 %v1830_v60, %v1196_v21 }
 0x9e6   : > { %1200 = vrot.lane.b32.xlu0 %v1198_v17, %s1881_s24 }
 0x9e7   : > { %v1327_v61 = vpop.permute.xlu1 %1326  ;;  %v1191_v18 = vpop.permute.xlu0 %1190 }
 0x9e8   : > { %v1329_v63 = vmul.f32 %v1832_v12, %v1327_v61  ;;  %v1193_v23 = vmul.f32 %v1830_v60, %v1191_v18 }
 0x9ea   : > { %1331 = vrot.lane.b32.xlu1 %v1329_v63, %s1881_s24 }
 0x9eb   : > { %v1322_v1 = vpop.permute.xlu1 %1321 }
 0x9ec   : > { %v1324_v4 = vmul.f32 %v1832_v12, %v1322_v1 }
 0xa58   : > { %v1201_v2 = vpop.permute.xlu0 %1200 }
 0xa59   : > { %v1203_v3 = vadd.f32 %v1201_v2, %v1193_v23 }
 0xa5b   : > { %1833 = vtanh.f32 %v1203_v3 }
 0xa5c   : > { %v1332_v5 = vpop.permute.xlu1 %1331 }
 0xa5d   : > { %v1334_v6 = vadd.f32 %v1332_v5, %v1324_v4 }
 0xa5f   : > { %1835 = vtanh.f32 %v1334_v6 }
 0xa65   : > { %v1834_v7 = vpop.eup %1833 }
 0xa66   : > { %1206 = vrot.lane.b32.xlu0 %v1834_v7, %s1882_s14 }
 0xa69   : > { %v1836_v9 = vpop.eup %1835 }
 0xa6a   : > { %1337 = vrot.lane.b32.xlu1 %v1836_v9, %s1882_s14  ;;  %430 = vrot.lane.b32.xlu0 %v1534_v8, %s1881_s24 }
 0xa6e   : > { %564 = vrot.lane.b32.xlu1 %v1536_v10, %s1882_s14  ;;  %697 = vrot.lane.b32.xlu0 %v1538_v11, %s1881_s24 }
 0xa72   : > { %829 = vrot.lane.b32.xlu1 %v1540_v14, %s1882_s14  ;;  %961 = vrot.lane.b32.xlu0 %v1542_v62, %s1881_s24 }
 0xa76   : > { %1093 = vrot.lane.b32.xlu1 %v1544_v0, %s1882_s14  ;;  %1216 = vrot.lane.b32.xlu0 %v1203_v3, %s1883_s12 }
 0xad8   : > { %v1207_v48 = vpop.permute.xlu0 %1206 }
 0xad9   : > { %v1209_v15 = vmul.f32 %v1830_v60, %v1207_v48 }
 0xadb   : > { %v1546_v50 = vpack.c.bf16 %v1209_v15, %v1209_v15  ;;  %1211 = vrot.lane.b32.xlu1 %v1209_v15, %s1881_s24 }
 0xadc   : > { %v1338_v16 = vpop.permute.xlu1 %1337  ;;  %v431_v19 = vpop.permute.xlu0 %430 }
 0xadd   : > { %v1340_v20 = vmul.f32 %v1832_v12, %v1338_v16  ;;  %436 = vst.msk [vmem:[%s2189_s16] sm:$0xf] %vm435_vm3, %v431_v19  ;;  %1225 = vrot.lane.b32.xlu0 %v1546_v50, %s1881_s24 }
 0xadf   : > { %1342 = vrot.lane.b32.xlu1 %v1340_v20, %s1881_s24  ;;  %v1548_v25 = vpack.c.bf16 %v1340_v20, %v1340_v20 }
 0xae0   : > { %v565_v22 = vpop.permute.xlu1 %564  ;;  %v698_v24 = vpop.permute.xlu0 %697 }
 0xae1   : > { %1477 = vst.msk [vmem:[%s1394_s5 + $0xc] sm:$0xf] %vm569_vm4, %v565_v22  ;;  %1347 = vrot.lane.b32.xlu0 %v1334_v6, %s1883_s12 }
 0xae2   : > { %1484 = vst.msk [vmem:[%s2189_s16 + $0x4] sm:$0xf] %vm435_vm3, %v698_v24 }
 0xae3   : > { %1355 = vrot.lane.b32.xlu1 %v1548_v25, %s1882_s14 }
 0xae4   : > { %v830_v26 = vpop.permute.xlu1 %829  ;;  %v962_v27 = vpop.permute.xlu0 %961 }
 0xae5   : > { %1495 = vst.msk [vmem:[%s1394_s5 + $0x8] sm:$0xf] %vm569_vm4, %v830_v26 }
 0xae6   : > { %1502 = vst.msk [vmem:[%s2189_s16 + $0x8] sm:$0xf] %vm435_vm3, %v962_v27 }
 0xae8   : > { %v1094_v28 = vpop.permute.xlu1 %1093  ;;  %v1217_v29 = vpop.permute.xlu0 %1216 }
 0xae9   : > { %1513 = vst.msk [vmem:[%s1394_s5 + $0x4] sm:$0xf] %vm569_vm4, %v1094_v28 }
 0xaea   : > { %1219 = vst.msk [vmem:[#allocation3] sm:$0xff] %vm312_vm2, %v1217_v29 }
 0xb4d   : > { %v1212_v30 = vpop.permute.xlu1 %1211 }
 0xb4e   : > { %1214 = vst.msk [vmem:[#allocation2] sm:$0xff] %vm312_vm2, %v1212_v30 }
 0xb4f   : > { %v1226_v31 = vpop.permute.xlu0 %1225 }
 0xb50   : > { %1520 = vst.msk [vmem:[%s2189_s16 + $0xc] sm:$0xf] %vm435_vm3, %v1226_v31 }
 0xb51   : > { %v1343_v32 = vpop.permute.xlu1 %1342 }
 0xb52   : > { %1345 = vst.msk [vmem:[#allocation4] sm:$0xff] %vm312_vm2, %v1343_v32 }
 0xb53   : > { %v1348_v33 = vpop.permute.xlu0 %1347 }
 0xb54   : > { %1350 = vst.msk [vmem:[#allocation5] sm:$0xff] %vm312_vm2, %v1348_v33 }
 0xb55   : > { %v1356_v34 = vpop.permute.xlu1 %1355 }
 0xb56   : > { %1360 = vst.msk [vmem:[%s1394_s5] sm:$0xf] %vm569_vm4, %v1356_v34 }
 0xb57 PF: > { %p10_p12 = scmp.ge.s32.totalorder %s1933_s18, 4   ;;  %s2236_s12 = smov %s1863_s13 }
 0xb58   : > { %s2237_s13 = smov %s1950_s26  ;;  %s2238_s14 = smov %s1871_s15 }
 0xb59   : > { %s2239_s15 = smov %s1943_s22  ;;  %s2240_s16 = smov %s1933_s18 }
 0xb5a   :  { %12 = sbr.rel (!%p10_p12) target bundleno = 3 (0x3), region = 172 }

// kernel: modeling_layer_forward.7
= control target key start
LH: loop header
LB: loop body
LE: loop exit
PB: predicated region body
PF: predicated region fallthrough
CT: control target
= control target key end

     0   :  { %s1843_s12 = smov 0   ;;  %s1845_s13 = smov 0   ;;  %s2156_s0 = inlined_call_operand.vmem [shape: bf16[8,8,256], index: 0, kind: input, shape index: {}, may-alias: {0,1}]   ;;  %s2157_s1 = inlined_call_operand.vmem [shape: bf16[8,8,256], index: 1, kind: input, shape index: {}, may-alias: {0,1}]   ;;  %s2158_s2 = inlined_call_operand.vmem [shape: f32[2,32,128], index: 2, kind: input, shape index: {}]   ;;  %s2159_s3 = inlined_call_operand.vmem [shape: f32[8,8,64], index: 3, kind: output, shape index: {}]  }
   0x1   :  { %s1847_s14 = smov 0   ;;  %s1849_s15 = smov 0  }
   0x2   :  { %s1851_s16 = smov 0  }
   0x3 LB: > { %s1869_s17 = sadd.s32 4294967295, %s1814_s16   ;;  %s1872_s18 = sadd.s32 1, %s1814_s16   ;;  %s1814_s16 = sphi %s1851_s16, %s2165_s16   ;;  %s1810_s15 = sphi %s1849_s15, %s2164_s15   ;;  %s1806_s14 = sphi %s1847_s14, %s2163_s14   ;;  %s1802_s13 = sphi %s1845_s13, %s2162_s13   ;;  %s1798_s12 = sphi %s1843_s12, %s2161_s12  }
   0x4   : > { %s17_s19 = ssub.s32 %s1814_s16, %s1872_s18  ;;  %s20_s20 = sadd.s32 1, %s1810_s15 }
   0x5   : > { %p18_p0 = scmp.eq.s32.totalorder %s17_s19, 0  ;;  %p27_p1 = scmp.ne.s32.totalorder %s1810_s15, %s1806_s14 }
   0x6   : > { %p28_p2 = scmp.eq.s32.totalorder %s1814_s16, 0  ;;  %s43_s21 = ssub.s32 1, %s1814_s16 }
   0x7   : > { %s1882_s22 = scalar_select %p18_p0, %s1810_s15, %s20_s20  }
   0x8   : > { %p29_p3 = por %p28_p2, %p27_p1  ;;  %s44_s23 = ssub.s32 1, %s1872_s18 }
   0x9   : > { %s45_s24 = ssub.s32 %s43_s21, %s44_s23  ;;  %s48_s25 = sadd.s32 1, %s1802_s13 }
   0xa   : > { %p46_p4 = scmp.eq.s32.totalorder %s45_s24, 0  ;;  %p55_p5 = scmp.ne.s32.totalorder %s1802_s13, %s1798_s12 }
   0xb   : > { %p1400_p7 = scmp.ge.s32.totalorder %s1814_s16, 2 }
   0xc   : > { %s1889_s26 = scalar_select %p46_p4, %s1802_s13, %s48_s25  }
   0xd   : > { %p1891_p6 = por %p55_p5, %p28_p2  ;;  %126 = sbr.rel (%p1400_p7) target bundleno = 34 (0x22), region = 20 }
  0x14   : > { %129 = sbr.rel (!%p29_p3) target bundleno = 27 (0x1b), region = 24  ;;  %s131_s28 = sand.u32 (%p29_p3), 1, %s1810_s15  }
  0x15   : > { %s1479_s29 = sshll.u32 (%p29_p3), %s1814_s16, 5  ;;  %s1401_s30 = sshll.u32 (%p29_p3), %s131_s28, 4 }
  0x16   : > { %s137_s6 = scalar_lea.vmem (%p29_p3), %s2156_s0, %s1479_s29  ;;  %s133_s7 = scalar_lea.vmem (%p29_p3), [#allocation6], %s1401_s30 }
  0x17   : > { %v153_v0 = vld [vmem:[%s137_s6] sm:$0xf] (%p29_p3)  ;;  %v155_v1 = vld [vmem:[%s137_s6 + $0x8] sm:$0xf] (%p29_p3)  ;;  %v157_v2 = vld [vmem:[%s137_s6 + $0x10] sm:$0xf] (%p29_p3) }
  0x18   : > { %154 = vst [vmem:[%s133_s7] sm:$0xf] (%p29_p3), %v153_v0  ;;  %156 = vst [vmem:[%s133_s7 + $0x4] sm:$0xf] (%p29_p3), %v155_v1  ;;  %v159_v3 = vld [vmem:[%s137_s6 + $0x18] sm:$0xf] (%p29_p3) }
  0x19   : > { %158 = vst [vmem:[%s133_s7 + $0x8] sm:$0xf] (%p29_p3), %v157_v2  ;;  %160 = vst [vmem:[%s133_s7 + $0xc] sm:$0xf] (%p29_p3), %v159_v3 }
  0x1b PF: > { %191 = sbr.rel (!%p1891_p6) target bundleno = 34 (0x22), region = 65  ;;  %s193_s8 = sand.u32 (%p1891_p6), 1, %s1802_s13  }
  0x1c   : > { %s1480_s9 = sshll.u32 (%p1891_p6), %s43_s21, 5  ;;  %s1405_s10 = sshll.u32 (%p1891_p6), %s193_s8, 4 }
  0x1d   : > { %s1335_s20 = scalar_lea.vmem (%p1891_p6), %s2157_s1, %s1480_s9  ;;  %s195_s23 = scalar_lea.vmem (%p1891_p6), [#allocation7], %s1405_s10 }
  0x1e   : > { %v1408_v4 = vld [vmem:[%s1335_s20 + $0x4] sm:$0xf] (%p1891_p6)  ;;  %v1409_v5 = vld [vmem:[%s1335_s20 + $0xc] sm:$0xf] (%p1891_p6)  ;;  %v1410_v6 = vld [vmem:[%s1335_s20 + $0x14] sm:$0xf] (%p1891_p6) }
  0x1f   : > { %218 = vst [vmem:[%s195_s23] sm:$0xf] (%p1891_p6), %v1408_v4  ;;  %220 = vst [vmem:[%s195_s23 + $0x4] sm:$0xf] (%p1891_p6), %v1409_v5  ;;  %v1411_v7 = vld [vmem:[%s1335_s20 + $0x1c] sm:$0xf] (%p1891_p6) }
  0x20   : > { %222 = vst [vmem:[%s195_s23 + $0x8] sm:$0xf] (%p1891_p6), %v1410_v6  ;;  %224 = vst [vmem:[%s195_s23 + $0xc] sm:$0xf] (%p1891_p6), %v1411_v7 }
  0x22 PF: > { %p1412_p8 = scmp.ge.s32.totalorder %s1814_s16, 1  ;;  %p254_p9 = scmp.lt.s32.totalorder %s1814_s16, 3 }
  0x24   : > { %p255_p10 = pnand %p1412_p8, %p254_p9 }
  0x25   : > { %s261_s21 = sand.u32 (!%p255_p10), 1, %s1806_s14   ;;  %s268_s24 = sand.u32 (!%p255_p10), 1, %s1798_s12  }
  0x26   : > { %258 = sbr.rel (%p255_p10) target bundleno = 2903 (0xb57), region = 106  ;;  %s1911_s25 = sshll.u32 (!%p255_p10), %s261_s21, 4 }
  0x27   : > { %s1913_s27 = sshll.u32 (!%p255_p10), %s268_s24, 4  ;;  %s263_s28 = scalar_lea.vmem (!%p255_p10), [#allocation6], %s1911_s25 }
  0x28   : > { %s270_s29 = scalar_lea.vmem (!%p255_p10), [#allocation7], %s1913_s27  ;;  %p1415_p11 = scmp.ne.s32.totalorder (!%p255_p10), %s1869_s17, 0 }
  0x2d   : > { %296 = sbr.rel (%p1415_p11) target bundleno = 52 (0x34), region = 118  ;;  %vm297_vm0 = vcmask (!%p1415_p11), 261120   ;;  %v1816_v8 = vmov (!%p1415_p11), 0.0  }
  0x2e   : > { %298 = vst.msk [vmem:[#allocation2] sm:$0xff] (!%p1415_p11), %vm297_vm0, %v1816_v8  ;;  %299 = vst.msk [vmem:[#allocation3] sm:$0xff] (!%p1415_p11), %vm297_vm0, %v1816_v8 }
  0x2f   : > { %300 = vst.msk [vmem:[#allocation4] sm:$0xff] (!%p1415_p11), %vm297_vm0, %v1816_v8  ;;  %301 = vst.msk [vmem:[#allocation5] sm:$0xff] (!%p1415_p11), %vm297_vm0, %v1816_v8 }
  0x34 PF: > { %v308_v9 = vld [vmem:[%s2158_s2] sm:$0xff]  ;;  %v309_v10 = vld [vmem:[%s2158_s2 + $0x8] sm:$0xff]  ;;  %v1817_v12 = vmov 0.0|0.0   ;;  %v310_v15 = vld [vmem:[%s2158_s2 + $0x10] sm:$0xff]  ;;  %vm1818_vm1 = vmmov 0   ;;  %v1819_v18 = vmov 0.0  }
  0x35   : > { %v1422_v11 = vld [vmem:[%s2158_s2 + $0x20] sm:$0xff]  ;;  %1617 = vmatprep.subr.bf16.mxu0 %v1817_v12  ;;  %v1928_v13 = vpack.c.bf16 %v309_v10, %v308_v9  ;;  %1623 = vmatprep.subr.bf16.mxu1 %v1817_v12  ;;  %v1423_v14 = vld [vmem:[%s2158_s2 + $0x28] sm:$0xff]  ;;  %v311_v16 = vld [vmem:[%s2158_s2 + $0x18] sm:$0xff]  ;;  %s1820_s24 = smov 32   ;;  %vm312_vm2 = vcmask 261120   ;;  %s1821_s14 = smov 64  }
  0x36   : > { %v1940_v17 = vpack.c.bf16 %v1423_v14, %v1422_v11  ;;  %1537 = vmatprep.mubr.msk.f32.mxu0 %vm1818_vm1, %v1819_v18  ;;  %v1424_v19 = vld [vmem:[%s2158_s2 + $0x30] sm:$0xff]  ;;  %v1425_v20 = vld [vmem:[%s2158_s2 + $0x38] sm:$0xff]  ;;  %1548 = vmatprep.mubr.msk.f32.mxu1 %vm1818_vm1, %v1819_v18  ;;  %v1953_v21 = vpack.c.bf16 %v311_v16, %v310_v15  ;;  %v387_v22 = vld [vmem:[#allocation3] sm:$0xff]  ;;  %s1822_s12 = smov 96   ;;  %s1481_s16 = sshll.u32 %s1869_s17, 5  ;;  %vm557_vm3 = vcmask 523520  }
  0x37   : > { %1619 = vmatpush3.bf16.msra.mxu0 %v1928_v13  ;;  %v1957_v23 = vpack.c.bf16 %v1425_v20, %v1424_v19  ;;  %396 = vrot.lane.b32.xlu1 %v387_v22, %s1820_s24  ;;  %v512_v24 = vld [vmem:[#allocation5] sm:$0xff]  ;;  %v307_v25 = vld [vmem:[#allocation2] sm:$0xff]  ;;  %v432_v26 = vld [vmem:[#allocation4] sm:$0xff]  ;;  %s2007_s5 = scalar_lea.vmem %s2159_s3, %s1481_s16  ;;  %s303_s25 = ssub.s32 1, %s1869_s17 }
  0x38   : > { %1620 = vmatprep.subr.bf16.mxu0 %v1817_v12  ;;  %1625 = vmatpush3.bf16.msra.mxu1 %v1940_v17  ;;  %v1982_v27 = vld [vmem:[%s263_s28] sm:$0xff]   ;;  %v1986_v28 = vld [vmem:[%s270_s29 + $0x8] sm:$0xff]   ;;  %s1482_s27 = sshll.u32 %s303_s25, 5 }
  0x39   : > { %1626 = vmatprep.subr.bf16.mxu1 %v1817_v12  ;;  %v306_v29 = vunpack.c.l.bf16 %v1982_v27  ;;  %v431_v30 = vunpack.c.h.bf16 %v1986_v28  ;;  %v561_v7 = vunpack.c.h.bf16 %v1982_v27  ;;  %v686_v11 = vunpack.c.l.bf16 %v1986_v28  ;;  %s1349_s6 = scalar_lea.vmem %s2159_s3, %s1482_s27 }
  0x3b   : > { %1622 = vmatpush3.bf16.msra.mxu0 %v1953_v21  ;;  %521 = vrot.lane.b32.xlu1 %v512_v24, %s1820_s24 }
  0x3c   : > { %1628 = vmatpush3.bf16.msra.mxu1 %v1957_v23  ;;  %1629 = vmatprep.subr.bf16.mxu0 %v1817_v12 }
  0x3d   : > { %1635 = vmatprep.subr.bf16.mxu1 %v1817_v12 }
  0x3e   : > { %1538 = vmatmul.mubr.msk.f32.vlgmr.msra.gmra.mrb[0].mxu0 %vm312_vm2, %v307_v25 }
  0x3f   : > { %1549 = vmatmul.mubr.msk.f32.vlgmr.msra.gmra.mrb[0].mxu1 %vm312_vm2, %v432_v26  ;;  %1631 = vmatpush3.bf16.msra.mxu0 %v1928_v13 }
  0x40   : > { %1632 = vmatprep.subr.bf16.mxu0 %v1817_v12  ;;  %1637 = vmatpush3.bf16.msra.mxu1 %v1940_v17 }
  0x41   : > { %1559 = vmatprep.mubr.msk.f32.mxu0 %vm1818_vm1, %v1819_v18  ;;  %1638 = vmatprep.subr.bf16.mxu1 %v1817_v12 }
  0x42   : > { %1570 = vmatprep.mubr.msk.f32.mxu1 %vm1818_vm1, %v1819_v18 }
  0x43   : > { %1634 = vmatpush3.bf16.msra.mxu0 %v1953_v21 }
  0x44   : > { %1640 = vmatpush3.bf16.msra.mxu1 %v1957_v23  ;;  %1641 = vmatprep.subr.bf16.mxu0 %v1817_v12 }
  0x45   : > { %1647 = vmatprep.subr.bf16.mxu1 %v1817_v12 }
  0xa9   : > { %v397_v51 = vpop.permute.xlu1 %396 }
  0xad   : > { %v522_v53 = vpop.permute.xlu1 %521 }
 0x111   : > { %v382_v31 = vpop.f32.mrb[0].mxu0 }
 0x112   : > { %v386_v32 = vadd.f32 %v382_v31, %v306_v29  ;;  %v1539_v33 = vpop.f32.mrb[1].mxu0  ;;  %v507_v34 = vpop.f32.mrb[0].mxu1 }
 0x113   : > { %v511_v35 = vadd.f32 %v507_v34, %v431_v30  ;;  %v1550_v36 = vpop.f32.mrb[1].mxu1 }
 0x114   : > { %1712 = vtanh.f32 %v386_v32  ;;  %v1419_v39 = vmul.f32 -1.442695, %v386_v32 }
 0x115   : > { %1714 = vtanh.f32 %v511_v35  ;;  %v1427_v40 = vmul.f32 -1.442695, %v511_v35 }
 0x116   : > { %1716 = vpow2.f32 %v1419_v39 }
 0x117   : > { %1718 = vpow2.f32 %v1427_v40 }
 0x11e   : > { %v1713_v37 = vpop.eup %1712 }
 0x11f   : > { %401 = vrot.lane.b32.xlu0 %v1713_v37, %s1821_s14  ;;  %v1715_v38 = vpop.eup %1714 }
 0x120   : > { %v1717_v41 = vpop.eup %1716 }
 0x121   : > { %v391_v42 = vadd.f32 1.0, %v1717_v41  ;;  %v1719_v43 = vpop.eup %1718 }
 0x122   : > { %v516_v44 = vadd.f32 1.0, %v1719_v43 }
 0x123   : > { %526 = vrot.lane.b32.xlu0 %v1715_v38, %s1821_s14  ;;  %1720 = vrcp.f32 %v391_v42 }
 0x124   : > { %1722 = vrcp.f32 %v516_v44 }
 0x12d   : > { %v1721_v45 = vpop.eup %1720 }
 0x12e   : > { %v1723_v48 = vpop.eup %1722  ;;  %v399_v52 = vmul.f32 %v1721_v45, %v397_v51 }
 0x12f   : > { %v524_v56 = vmul.f32 %v1723_v48, %v522_v53 }
 0x191   : > { %v402_v46 = vpop.permute.xlu0 %401 }
 0x192   : > { %v404_v47 = vmul.f32 %v1721_v45, %v402_v46 }
 0x194   : > { %406 = vrot.lane.b32.xlu0 %v404_v47, %s1820_s24 }
 0x195   : > { %v527_v49 = vpop.permute.xlu0 %526 }
 0x196   : > { %v529_v50 = vmul.f32 %v1723_v48, %v527_v49 }
 0x198   : > { %531 = vrot.lane.b32.xlu1 %v529_v50, %s1820_s24 }
 0x206   : > { %v407_v54 = vpop.permute.xlu0 %406 }
 0x207   : > { %v409_v55 = vadd.f32 %v407_v54, %v399_v52 }
 0x209   : > { %1724 = vtanh.f32 %v409_v55 }
 0x20a   : > { %v532_v57 = vpop.permute.xlu1 %531 }
 0x20b   : > { %v534_v58 = vadd.f32 %v532_v57, %v524_v56 }
 0x20d   : > { %1726 = vtanh.f32 %v534_v58 }
 0x213   : > { %v1725_v59 = vpop.eup %1724 }
 0x214   : > { %412 = vrot.lane.b32.xlu0 %v1725_v59, %s1821_s14 }
 0x217   : > { %v1727_v60 = vpop.eup %1726 }
 0x218   : > { %537 = vrot.lane.b32.xlu1 %v1727_v60, %s1821_s14 }
 0x286   : > { %v413_v61 = vpop.permute.xlu0 %412 }
 0x287   : > { %v415_v62 = vmul.f32 %v1721_v45, %v413_v61 }
 0x289   : > { %417 = vrot.lane.b32.xlu0 %v415_v62, %s1820_s24 }
 0x28a   : > { %v538_v63 = vpop.permute.xlu1 %537 }
 0x28b   : > { %v1997_v0 = vmul.f32 %v1723_v48, %v538_v63 }
 0x28d   : > { %542 = vrot.lane.b32.xlu1 %v1997_v0, %s1820_s24  ;;  %422 = vrot.lane.b32.xlu0 %v409_v55, %s1822_s12 }
 0x291   : > { %547 = vrot.lane.b32.xlu1 %v534_v58, %s1822_s12  ;;  %v2072_v58 = vld [vmem:[%s270_s29] sm:$0xff]  }
 0x2fb   : > { %v418_v1 = vpop.permute.xlu0 %417 }
 0x2fc   : > { %420 = vst.msk [vmem:[#allocation2] sm:$0xff] %vm312_vm2, %v418_v1  ;;  %428 = vst.msk [vmem:[%s2007_s5] sm:$0xff] %vm312_vm2, %v418_v1 }
 0x2ff   : > { %v543_v2 = vpop.permute.xlu1 %542  ;;  %v423_v3 = vpop.permute.xlu0 %422 }
 0x300   : > { %545 = vst.msk [vmem:[#allocation4] sm:$0xff] %vm312_vm2, %v543_v2  ;;  %425 = vst.msk [vmem:[#allocation3] sm:$0xff] %vm312_vm2, %v423_v3 }
 0x303   : > { %v548_v4 = vpop.permute.xlu1 %547  ;;  %v562_v5 = vld [vmem:[#allocation2] sm:$0xff] }
 0x304   : > { %550 = vst.msk [vmem:[#allocation5] sm:$0xff] %vm312_vm2, %v548_v4  ;;  %1560 = vmatmul.mubr.msk.f32.vlgmr.msra.gmra.mrb[2].mxu0 %vm312_vm2, %v562_v5 }
 0x305   : > { %1643 = vmatpush3.bf16.msra.mxu0 %v1928_v13  ;;  %1581 = vmatprep.mubr.msk.f32.mxu0 %vm1818_vm1, %v1819_v18 }
 0x306   : > { %1644 = vmatprep.subr.bf16.mxu0 %v1817_v12 }
 0x307   : > { %v687_v6 = vld [vmem:[#allocation4] sm:$0xff]  ;;  %v641_v22 = vld [vmem:[#allocation3] sm:$0xff] }
 0x308   : > { %1571 = vmatmul.mubr.msk.f32.vlgmr.msra.gmra.mrb[2].mxu1 %vm312_vm2, %v687_v6 }
 0x309   : > { %1646 = vmatpush3.bf16.msra.mxu0 %v1953_v21  ;;  %1649 = vmatpush3.bf16.msra.mxu1 %v1940_v17 }
 0x30a   : > { %1650 = vmatprep.subr.bf16.mxu1 %v1817_v12  ;;  %1592 = vmatprep.mubr.msk.f32.mxu1 %vm1818_vm1, %v1819_v18 }
 0x30b   : > { %1653 = vmatprep.subr.bf16.mxu0 %v1817_v12  ;;  %v766_v24 = vld [vmem:[#allocation5] sm:$0xff] }
 0x30d   : > { %1652 = vmatpush3.bf16.msra.mxu1 %v1957_v23 }
 0x30e   : > { %1659 = vmatprep.subr.bf16.mxu1 %v1817_v12 }
 0x3d7   : > { %v636_v8 = vpop.f32.mrb[2].mxu0 }
 0x3d8   : > { %v640_v9 = vadd.f32 %v636_v8, %v561_v7  ;;  %v1561_v10 = vpop.f32.mrb[3].mxu0 }
 0x3da   : > { %1728 = vtanh.f32 %v640_v9  ;;  %v1433_v25 = vmul.f32 -1.442695, %v640_v9 }
 0x3db   : > { %v761_v14 = vpop.f32.mrb[2].mxu1 }
 0x3dc   : > { %v765_v15 = vadd.f32 %v761_v14, %v686_v11  ;;  %v1572_v16 = vpop.f32.mrb[3].mxu1 }
 0x3de   : > { %1730 = vtanh.f32 %v765_v15  ;;  %v1443_v26 = vmul.f32 -1.442695, %v765_v15 }
 0x3df   : > { %1732 = vpow2.f32 %v1433_v25 }
 0x3e0   : > { %1734 = vpow2.f32 %v1443_v26 }
 0x3e4   : > { %v1729_v19 = vpop.eup %1728 }
 0x3e5   : > { %655 = vrot.lane.b32.xlu0 %v1729_v19, %s1821_s14 }
 0x3e8   : > { %v1731_v20 = vpop.eup %1730 }
 0x3e9   : > { %780 = vrot.lane.b32.xlu1 %v1731_v20, %s1821_s14  ;;  %650 = vrot.lane.b32.xlu0 %v641_v22, %s1820_s24  ;;  %v1733_v27 = vpop.eup %1732 }
 0x3ea   : > { %v645_v28 = vadd.f32 1.0, %v1733_v27  ;;  %v1735_v29 = vpop.eup %1734 }
 0x3eb   : > { %v770_v30 = vadd.f32 1.0, %v1735_v29 }
 0x3ec   : > { %1736 = vrcp.f32 %v645_v28 }
 0x3ed   : > { %775 = vrot.lane.b32.xlu1 %v766_v24, %s1820_s24  ;;  %1738 = vrcp.f32 %v770_v30 }
 0x3f6   : > { %v1737_v31 = vpop.eup %1736 }
 0x3f7   : > { %v1739_v34 = vpop.eup %1738 }
 0x457   : > { %v656_v32 = vpop.permute.xlu0 %655 }
 0x458   : > { %v658_v33 = vmul.f32 %v1737_v31, %v656_v32 }
 0x45a   : > { %660 = vrot.lane.b32.xlu0 %v658_v33, %s1820_s24 }
 0x45b   : > { %v781_v35 = vpop.permute.xlu1 %780  ;;  %v651_v37 = vpop.permute.xlu0 %650 }
 0x45c   : > { %v783_v36 = vmul.f32 %v1739_v34, %v781_v35  ;;  %v653_v38 = vmul.f32 %v1737_v31, %v651_v37 }
 0x45e   : > { %785 = vrot.lane.b32.xlu1 %v783_v36, %s1820_s24 }
 0x45f   : > { %v776_v39 = vpop.permute.xlu1 %775 }
 0x460   : > { %v778_v42 = vmul.f32 %v1739_v34, %v776_v39 }
 0x4cc   : > { %v661_v40 = vpop.permute.xlu0 %660 }
 0x4cd   : > { %v663_v41 = vadd.f32 %v661_v40, %v653_v38 }
 0x4cf   : > { %1740 = vtanh.f32 %v663_v41 }
 0x4d0   : > { %v786_v43 = vpop.permute.xlu1 %785 }
 0x4d1   : > { %v788_v44 = vadd.f32 %v786_v43, %v778_v42 }
 0x4d3   : > { %1742 = vtanh.f32 %v788_v44 }
 0x4d9   : > { %v1741_v45 = vpop.eup %1740 }
 0x4da   : > { %666 = vrot.lane.b32.xlu0 %v1741_v45, %s1821_s14 }
 0x4dd   : > { %v1743_v46 = vpop.eup %1742 }
 0x4de   : > { %791 = vrot.lane.b32.xlu1 %v1743_v46, %s1821_s14 }
 0x54c   : > { %v667_v47 = vpop.permute.xlu0 %666 }
 0x54d   : > { %v669_v48 = vmul.f32 %v1737_v31, %v667_v47 }
 0x54f   : > { %671 = vrot.lane.b32.xlu0 %v669_v48, %s1820_s24 }
 0x550   : > { %v792_v49 = vpop.permute.xlu1 %791 }
 0x551   : > { %v2040_v50 = vmul.f32 %v1739_v34, %v792_v49 }
 0x553   : > { %796 = vrot.lane.b32.xlu1 %v2040_v50, %s1820_s24  ;;  %676 = vrot.lane.b32.xlu0 %v663_v41, %s1822_s12 }
 0x557   : > { %801 = vrot.lane.b32.xlu1 %v788_v44, %s1822_s12  ;;  %v1191_v44 = vunpack.c.l.bf16 %v2072_v58 }
 0x5c1   : > { %v2046_v51 = vpop.permute.xlu0 %671 }
 0x5c2   : > { %674 = vst.msk [vmem:[#allocation2] sm:$0xff] %vm312_vm2, %v2046_v51 }
 0x5c5   : > { %v797_v52 = vpop.permute.xlu1 %796  ;;  %v677_v53 = vpop.permute.xlu0 %676 }
 0x5c6   : > { %799 = vst.msk [vmem:[#allocation4] sm:$0xff] %vm312_vm2, %v797_v52  ;;  %679 = vst.msk [vmem:[#allocation3] sm:$0xff] %vm312_vm2, %v677_v53 }
 0x5c9   : > { %v802_v54 = vpop.permute.xlu1 %801  ;;  %v815_v55 = vld [vmem:[#allocation2] sm:$0xff] }
 0x5ca   : > { %804 = vst.msk [vmem:[#allocation5] sm:$0xff] %vm312_vm2, %v802_v54  ;;  %1582 = vmatmul.mubr.msk.f32.vlgmr.msra.gmra.mrb[4].mxu0 %vm312_vm2, %v815_v55 }
 0x5cb   : > { %1655 = vmatpush3.bf16.msra.mxu0 %v1928_v13  ;;  %1603 = vmatprep.mubr.msk.f32.mxu0 %vm1818_vm1, %v1819_v18  ;;  %v2067_v13 = vld [vmem:[%s263_s28 + $0x8] sm:$0xff]  }
 0x5cc   : > { %1656 = vmatprep.subr.bf16.mxu0 %v1817_v12  ;;  %v814_v57 = vunpack.c.l.bf16 %v2067_v13  ;;  %v1067_v40 = vunpack.c.h.bf16 %v2067_v13 }
 0x5cd   : > { %v940_v56 = vld [vmem:[#allocation4] sm:$0xff]  ;;  %v894_v63 = vld [vmem:[#allocation3] sm:$0xff] }
 0x5ce   : > { %1593 = vmatmul.mubr.msk.f32.vlgmr.msra.gmra.mrb[4].mxu1 %vm312_vm2, %v940_v56 }
 0x5cf   : > { %1658 = vmatpush3.bf16.msra.mxu0 %v1953_v21  ;;  %1661 = vmatpush3.bf16.msra.mxu1 %v1940_v17  ;;  %v939_v17 = vunpack.c.h.bf16 %v2072_v58 }
 0x5d0   : > { %1662 = vmatprep.subr.bf16.mxu1 %v1817_v12  ;;  %1614 = vmatprep.mubr.msk.f32.mxu1 %vm1818_vm1, %v1819_v18 }
 0x5d1   : > { %v1019_v1 = vld [vmem:[#allocation5] sm:$0xff] }
 0x5d3   : > { %1664 = vmatpush3.bf16.msra.mxu1 %v1957_v23 }
 0x69d   : > { %v889_v59 = vpop.f32.mrb[4].mxu0 }
 0x69e   : > { %v893_v60 = vadd.f32 %v889_v59, %v814_v57  ;;  %v1583_v21 = vpop.f32.mrb[5].mxu0 }
 0x6a0   : > { %1744 = vtanh.f32 %v893_v60  ;;  %v1449_v2 = vmul.f32 -1.442695, %v893_v60 }
 0x6a1   : > { %v1014_v12 = vpop.f32.mrb[4].mxu1 }
 0x6a2   : > { %v1018_v61 = vadd.f32 %v1014_v12, %v939_v17  ;;  %v1594_v62 = vpop.f32.mrb[5].mxu1 }
 0x6a4   : > { %1746 = vtanh.f32 %v1018_v61  ;;  %v1459_v3 = vmul.f32 -1.442695, %v1018_v61 }
 0x6a5   : > { %1748 = vpow2.f32 %v1449_v2 }
 0x6a6   : > { %1750 = vpow2.f32 %v1459_v3 }
 0x6aa   : > { %v1745_v18 = vpop.eup %1744 }
 0x6ab   : > { %908 = vrot.lane.b32.xlu0 %v1745_v18, %s1821_s14 }
 0x6ae   : > { %v1747_v23 = vpop.eup %1746 }
 0x6af   : > { %1033 = vrot.lane.b32.xlu1 %v1747_v23, %s1821_s14  ;;  %903 = vrot.lane.b32.xlu0 %v894_v63, %s1820_s24  ;;  %v1749_v4 = vpop.eup %1748 }
 0x6b0   : > { %v898_v5 = vadd.f32 1.0, %v1749_v4  ;;  %v1751_v6 = vpop.eup %1750 }
 0x6b1   : > { %v1023_v7 = vadd.f32 1.0, %v1751_v6 }
 0x6b2   : > { %1752 = vrcp.f32 %v898_v5 }
 0x6b3   : > { %1028 = vrot.lane.b32.xlu1 %v1019_v1, %s1820_s24  ;;  %1754 = vrcp.f32 %v1023_v7 }
 0x6bc   : > { %v1753_v8 = vpop.eup %1752 }
 0x6bd   : > { %v1755_v11 = vpop.eup %1754 }
 0x71d   : > { %v909_v9 = vpop.permute.xlu0 %908 }
 0x71e   : > { %v911_v10 = vmul.f32 %v1753_v8, %v909_v9 }
 0x720   : > { %913 = vrot.lane.b32.xlu0 %v911_v10, %s1820_s24 }
 0x721   : > { %v1034_v14 = vpop.permute.xlu1 %1033  ;;  %v904_v16 = vpop.permute.xlu0 %903 }
 0x722   : > { %v1036_v15 = vmul.f32 %v1755_v11, %v1034_v14  ;;  %v906_v19 = vmul.f32 %v1753_v8, %v904_v16 }
 0x724   : > { %1038 = vrot.lane.b32.xlu1 %v1036_v15, %s1820_s24 }
 0x725   : > { %v1029_v20 = vpop.permute.xlu1 %1028 }
 0x726   : > { %v1031_v25 = vmul.f32 %v1755_v11, %v1029_v20 }
 0x792   : > { %v914_v22 = vpop.permute.xlu0 %913 }
 0x793   : > { %v916_v24 = vadd.f32 %v914_v22, %v906_v19 }
 0x795   : > { %1756 = vtanh.f32 %v916_v24 }
 0x796   : > { %v1039_v26 = vpop.permute.xlu1 %1038 }
 0x797   : > { %v1041_v27 = vadd.f32 %v1039_v26, %v1031_v25 }
 0x799   : > { %1758 = vtanh.f32 %v1041_v27 }
 0x79f   : > { %v1757_v28 = vpop.eup %1756 }
 0x7a0   : > { %919 = vrot.lane.b32.xlu0 %v1757_v28, %s1821_s14 }
 0x7a3   : > { %v1759_v29 = vpop.eup %1758 }
 0x7a4   : > { %1044 = vrot.lane.b32.xlu1 %v1759_v29, %s1821_s14 }
 0x812   : > { %v920_v30 = vpop.permute.xlu0 %919 }
 0x813   : > { %v922_v31 = vmul.f32 %v1753_v8, %v920_v30 }
 0x815   : > { %924 = vrot.lane.b32.xlu0 %v922_v31, %s1820_s24 }
 0x816   : > { %v1045_v32 = vpop.permute.xlu1 %1044 }
 0x817   : > { %v2084_v33 = vmul.f32 %v1755_v11, %v1045_v32 }
 0x819   : > { %1049 = vrot.lane.b32.xlu1 %v2084_v33, %s1820_s24  ;;  %929 = vrot.lane.b32.xlu0 %v916_v24, %s1822_s12 }
 0x81d   : > { %1054 = vrot.lane.b32.xlu1 %v1041_v27, %s1822_s12 }
 0x887   : > { %v2090_v34 = vpop.permute.xlu0 %924 }
 0x888   : > { %927 = vst.msk [vmem:[#allocation2] sm:$0xff] %vm312_vm2, %v2090_v34 }
 0x88b   : > { %v1050_v35 = vpop.permute.xlu1 %1049  ;;  %v930_v36 = vpop.permute.xlu0 %929 }
 0x88c   : > { %1052 = vst.msk [vmem:[#allocation4] sm:$0xff] %vm312_vm2, %v1050_v35  ;;  %932 = vst.msk [vmem:[#allocation3] sm:$0xff] %vm312_vm2, %v930_v36 }
 0x88f   : > { %v1055_v37 = vpop.permute.xlu1 %1054  ;;  %v1068_v38 = vld [vmem:[#allocation2] sm:$0xff] }
 0x890   : > { %1057 = vst.msk [vmem:[#allocation5] sm:$0xff] %vm312_vm2, %v1055_v37  ;;  %1604 = vmatmul.mubr.msk.f32.vlgmr.msra.gmra.mrb[6].mxu0 %vm312_vm2, %v1068_v38 }
 0x893   : > { %v1192_v39 = vld [vmem:[#allocation4] sm:$0xff]  ;;  %v1147_v52 = vld [vmem:[#allocation3] sm:$0xff] }
 0x894   : > { %1615 = vmatmul.mubr.msk.f32.vlgmr.msra.gmra.mrb[6].mxu1 %vm312_vm2, %v1192_v39 }
 0x897   : > { %v1271_v53 = vld [vmem:[#allocation5] sm:$0xff] }
 0x963   : > { %v1142_v41 = vpop.f32.mrb[6].mxu0 }
 0x964   : > { %v1146_v42 = vadd.f32 %v1142_v41, %v1067_v40  ;;  %v1605_v43 = vpop.f32.mrb[7].mxu0 }
 0x966   : > { %1760 = vtanh.f32 %v1146_v42  ;;  %v1465_v54 = vmul.f32 -1.442695, %v1146_v42 }
 0x967   : > { %v1266_v45 = vpop.f32.mrb[6].mxu1 }
 0x968   : > { %v1270_v46 = vadd.f32 %v1266_v45, %v1191_v44  ;;  %v1616_v47 = vpop.f32.mrb[7].mxu1 }
 0x96a   : > { %1762 = vtanh.f32 %v1270_v46  ;;  %v1474_v55 = vmul.f32 -1.442695, %v1270_v46 }
 0x96b   : > { %1764 = vpow2.f32 %v1465_v54 }
 0x96c   : > { %1766 = vpow2.f32 %v1474_v55 }
 0x970   : > { %v1761_v48 = vpop.eup %1760 }
 0x971   : > { %1161 = vrot.lane.b32.xlu0 %v1761_v48, %s1821_s14 }
 0x974   : > { %v1763_v49 = vpop.eup %1762 }
 0x975   : > { %1285 = vrot.lane.b32.xlu1 %v1763_v49, %s1821_s14  ;;  %1156 = vrot.lane.b32.xlu0 %v1147_v52, %s1820_s24  ;;  %v1765_v56 = vpop.eup %1764 }
 0x976   : > { %v1151_v13 = vadd.f32 1.0, %v1765_v56  ;;  %v1767_v57 = vpop.eup %1766 }
 0x977   : > { %v1275_v58 = vadd.f32 1.0, %v1767_v57 }
 0x978   : > { %1768 = vrcp.f32 %v1151_v13 }
 0x979   : > { %1280 = vrot.lane.b32.xlu1 %v1271_v53, %s1820_s24  ;;  %1770 = vrcp.f32 %v1275_v58 }
 0x982   : > { %v1769_v59 = vpop.eup %1768 }
 0x983   : > { %v1771_v17 = vpop.eup %1770 }
 0x9e3   : > { %v1162_v60 = vpop.permute.xlu0 %1161 }
 0x9e4   : > { %v1164_v21 = vmul.f32 %v1769_v59, %v1162_v60 }
 0x9e6   : > { %1166 = vrot.lane.b32.xlu0 %v1164_v21, %s1820_s24 }
 0x9e7   : > { %v1286_v12 = vpop.permute.xlu1 %1285  ;;  %v1157_v62 = vpop.permute.xlu0 %1156 }
 0x9e8   : > { %v1288_v61 = vmul.f32 %v1771_v17, %v1286_v12  ;;  %v1159_v18 = vmul.f32 %v1769_v59, %v1157_v62 }
 0x9ea   : > { %1290 = vrot.lane.b32.xlu1 %v1288_v61, %s1820_s24 }
 0x9eb   : > { %v1281_v23 = vpop.permute.xlu1 %1280 }
 0x9ec   : > { %v1283_v2 = vmul.f32 %v1771_v17, %v1281_v23 }
 0xa58   : > { %v1167_v63 = vpop.permute.xlu0 %1166 }
 0xa59   : > { %v1169_v1 = vadd.f32 %v1167_v63, %v1159_v18 }
 0xa5b   : > { %1772 = vtanh.f32 %v1169_v1 }
 0xa5c   : > { %v1291_v3 = vpop.permute.xlu1 %1290 }
 0xa5d   : > { %v1293_v4 = vadd.f32 %v1291_v3, %v1283_v2 }
 0xa5f   : > { %1774 = vtanh.f32 %v1293_v4 }
 0xa65   : > { %v1773_v5 = vpop.eup %1772 }
 0xa66   : > { %1172 = vrot.lane.b32.xlu0 %v1773_v5, %s1821_s14 }
 0xa69   : > { %v1775_v6 = vpop.eup %1774 }
 0xa6a   : > { %1296 = vrot.lane.b32.xlu1 %v1775_v6, %s1821_s14  ;;  %552 = vrot.lane.b32.xlu0 %v1997_v0, %s1821_s14 }
 0xa6e   : > { %806 = vrot.lane.b32.xlu1 %v2040_v50, %s1821_s14  ;;  %1059 = vrot.lane.b32.xlu0 %v2084_v33, %s1821_s14 }
 0xa72   : > { %1182 = vrot.lane.b32.xlu0 %v1169_v1, %s1822_s12 }
 0xa76   : > { %1306 = vrot.lane.b32.xlu0 %v1293_v4, %s1822_s12 }
 0xad8   : > { %v1173_v7 = vpop.permute.xlu0 %1172 }
 0xad9   : > { %v1175_v8 = vmul.f32 %v1769_v59, %v1173_v7 }
 0xadb   : > { %1177 = vrot.lane.b32.xlu1 %v1175_v8, %s1820_s24 }
 0xadc   : > { %v1297_v0 = vpop.permute.xlu1 %1296  ;;  %v553_v50 = vpop.permute.xlu0 %552 }
 0xadd   : > { %v1299_v9 = vmul.f32 %v1771_v17, %v1297_v0  ;;  %1430 = vst.msk [vmem:[%s1349_s6 + $0x18] sm:$0xff] %vm557_vm3, %v553_v50 }
 0xade   : > { %1436 = vst.msk [vmem:[%s2007_s5 + $0x8] sm:$0xff] %vm312_vm2, %v2046_v51 }
 0xadf   : > { %1301 = vrot.lane.b32.xlu1 %v1299_v9, %s1820_s24 }
 0xae0   : > { %v807_v10 = vpop.permute.xlu1 %806  ;;  %v1060_v11 = vpop.permute.xlu0 %1059 }
 0xae1   : > { %1446 = vst.msk [vmem:[%s1349_s6 + $0x10] sm:$0xff] %vm557_vm3, %v807_v10 }
 0xae2   : > { %1452 = vst.msk [vmem:[%s2007_s5 + $0x10] sm:$0xff] %vm312_vm2, %v2090_v34 }
 0xae3   : > { %1462 = vst.msk [vmem:[%s1349_s6 + $0x8] sm:$0xff] %vm557_vm3, %v1060_v11  ;;  %1310 = vrot.lane.b32.xlu1 %v1299_v9, %s1821_s14 }
 0xae4   : > { %v1183_v14 = vpop.permute.xlu0 %1182 }
 0xae5   : > { %1185 = vst.msk [vmem:[#allocation3] sm:$0xff] %vm312_vm2, %v1183_v14 }
 0xae8   : > { %v1307_v15 = vpop.permute.xlu0 %1306 }
 0xae9   : > { %1309 = vst.msk [vmem:[#allocation5] sm:$0xff] %vm312_vm2, %v1307_v15 }
 0xb4d   : > { %v1178_v51 = vpop.permute.xlu1 %1177 }
 0xb4e   : > { %1180 = vst.msk [vmem:[#allocation2] sm:$0xff] %vm312_vm2, %v1178_v51  ;;  %1468 = vst.msk [vmem:[%s2007_s5 + $0x18] sm:$0xff] %vm312_vm2, %v1178_v51 }
 0xb51   : > { %v1302_v16 = vpop.permute.xlu1 %1301 }
 0xb52   : > { %1304 = vst.msk [vmem:[#allocation4] sm:$0xff] %vm312_vm2, %v1302_v16 }
 0xb55   : > { %v1311_v19 = vpop.permute.xlu1 %1310 }
 0xb56   : > { %1315 = vst.msk [vmem:[%s1349_s6] sm:$0xff] %vm557_vm3, %v1311_v19 }
 0xb57 PF: > { %p10_p12 = scmp.ge.s32.totalorder %s1872_s18, 4   ;;  %s2161_s12 = smov %s1802_s13 }
 0xb58   : > { %s2162_s13 = smov %s1889_s26  ;;  %s2163_s14 = smov %s1810_s15 }
 0xb59   : > { %s2164_s15 = smov %s1882_s22  ;;  %s2165_s16 = smov %s1872_s18 }
 0xb5a   :  { %12 = sbr.rel (!%p10_p12) target bundleno = 3 (0x3), region = 172 }

</bundles_post_ra>
